<compile_context>
chip_gen: v7x
topology: tpu7x:2x2x1
jax: 0.10.0
libtpu: 0.0.40
codegen_flags: <defaults>
</compile_context>

<pallas_src>
import functools

import jax
import jax.numpy as jnp
from jax.experimental import pallas as pl
from jax.experimental.pallas import tpu as pltpu


# ----------------------------------------------------------------------------
# Pallas kernels: one GEMM per conv with fused epilogue
# ----------------------------------------------------------------------------
def _conv_kernel(p_ref, w_ref, b_ref, o_ref, *, relu):
    # p_ref: (bm, K*K*Cin) bf16, w_ref: (K*K*Cin, Cout) bf16, b_ref: (1, Cout) f32
    acc = jnp.dot(p_ref[...], w_ref[...], preferred_element_type=jnp.float32)
    acc = acc + b_ref[...]
    if relu:
        acc = jnp.maximum(acc, 0.0)
    o_ref[...] = acc


def _conv_res_kernel(p_ref, w_ref, b_ref, r_ref, s_ref, o_ref):
    # out = (patches @ W + b) + x_scale * residual   (res_scale already folded into W, b)
    acc = jnp.dot(p_ref[...], w_ref[...], preferred_element_type=jnp.float32)
    acc = acc + b_ref[...]
    o_ref[...] = acc + s_ref[0] * r_ref[...]


def _awms_kernel(p_ref, w_ref, b_ref, sel_ref, a_ref, o_ref):
    # Fused tail: one wide GEMM (Cout = 4*out_feats), PReLU, then branch-sum via a
    # 0/1 selection matrix GEMM (keeps everything lane-dense, no lane slicing).
    y = jnp.dot(p_ref[...], w_ref[...], preferred_element_type=jnp.float32)
    y = y + b_ref[...]
    a = a_ref[0]
    y = jnp.maximum(y, 0.0) + a * jnp.minimum(y, 0.0)           # PReLU (single slope)
    o_ref[...] = jnp.dot(y, sel_ref[...], preferred_element_type=jnp.float32)


# ----------------------------------------------------------------------------
# Helpers
# ----------------------------------------------------------------------------
def _round_up(v, m):
    return ((v + m - 1) // m) * m


def _pad_rows(a, rows):
    if a.shape[0] == rows:
        return a
    return jnp.pad(a, ((0, rows - a.shape[0]),) + ((0, 0),) * (a.ndim - 1))


def _extract_patches(x, K):
    """x: (N,H,W,C) f32 -> (N*H*W, K*K*C) bf16 ('same' padding, stride 1)."""
    N, H, W, C = x.shape
    pad = K // 2
    xp = jnp.pad(x, ((0, 0), (pad, pad), (pad, pad), (0, 0)))
    cols = [xp[:, dy:dy + H, dx:dx + W, :] for dy in range(K) for dx in range(K)]
    p = jnp.concatenate(cols, axis=-1)                # (N,H,W,K*K*C), taps outer / cin inner
    return p.reshape(N * H * W, K * K * C).astype(jnp.bfloat16)


def _row_tiling(n_rows):
    bm = min(256, _round_up(n_rows, 8))
    rows_p = _round_up(n_rows, bm)
    return bm, rows_p


_PARAMS = pltpu.CompilerParams(dimension_semantics=("parallel",))


# ----------------------------------------------------------------------------
# Conv wrappers (one pallas_call each)
# ----------------------------------------------------------------------------
def conv2d_gemm(x, w, b, *, relu=False):
    """'same' conv, stride 1, optional fused ReLU. x:(N,H,W,Cin), w:(K,K,Cin,Cout)."""
    N, H, W, Cin = x.shape
    K, _, _, Cout = w.shape
    n_rows = N * H * W
    patches = _extract_patches(x, K)
    kc = patches.shape[1]
    bm, rows_p = _row_tiling(n_rows)
    patches = _pad_rows(patches, rows_p)
    w2 = w.reshape(kc, Cout).astype(jnp.bfloat16)
    b2 = b.reshape(1, Cout).astype(jnp.float32)

    out = pl.pallas_call(
        functools.partial(_conv_kernel, relu=relu),
        out_shape=jax.ShapeDtypeStruct((rows_p, Cout), jnp.float32),
        grid=(rows_p // bm,),
        in_specs=[
            pl.BlockSpec((bm, kc), lambda i: (i, 0)),
            pl.BlockSpec((kc, Cout), lambda i: (0, 0)),
            pl.BlockSpec((1, Cout), lambda i: (0, 0)),
        ],
        out_specs=pl.BlockSpec((bm, Cout), lambda i: (i, 0)),
        compiler_params=_PARAMS,
    )(patches, w2, b2)
    return out[:n_rows].reshape(N, H, W, Cout)


def conv2d_gemm_residual(x, w, b, res, res_scale, x_scale):
    """out = res_scale * conv(x) + x_scale * res, fully fused in one kernel."""
    N, H, W, Cin = x.shape
    K, _, _, Cout = w.shape
    n_rows = N * H * W
    patches = _extract_patches(x, K)
    kc = patches.shape[1]
    bm, rows_p = _row_tiling(n_rows)
    patches = _pad_rows(patches, rows_p)
    # Fold res_scale into the conv weights / bias (exact: res_scale*(Wp + b)).
    w2 = (w.reshape(kc, Cout) * res_scale).astype(jnp.bfloat16)
    b2 = (b.reshape(1, Cout) * res_scale).astype(jnp.float32)
    r2 = _pad_rows(res.reshape(n_rows, Cout).astype(jnp.float32), rows_p)
    xs = jnp.reshape(x_scale, (1,)).astype(jnp.float32)

    out = pl.pallas_call(
        _conv_res_kernel,
        out_shape=jax.ShapeDtypeStruct((rows_p, Cout), jnp.float32),
        grid=(rows_p // bm,),
        in_specs=[
            pl.BlockSpec((bm, kc), lambda i: (i, 0)),
            pl.BlockSpec((kc, Cout), lambda i: (0, 0)),
            pl.BlockSpec((1, Cout), lambda i: (0, 0)),
            pl.BlockSpec((bm, Cout), lambda i: (i, 0)),
            pl.BlockSpec(memory_space=pltpu.MemorySpace.SMEM),
        ],
        out_specs=pl.BlockSpec((bm, Cout), lambda i: (i, 0)),
        compiler_params=_PARAMS,
    )(patches, w2, b2, r2, xs)
    return out[:n_rows].reshape(N, H, W, Cout)


def awms_fused(x, p, out_feats):
    """All four AWMS branches in one pallas_call (one shared 9x9 im2col)."""
    N, H, W, Cin = x.shape
    Kmax, n_branch = 9, 4
    ws, bs = [], []
    for k in (3, 5, 7, 9):
        wk = p[f"k{k}"]["w"]                                  # (k,k,Cin,out_feats)
        pad = (Kmax - k) // 2
        wk = jnp.pad(wk, ((pad, pad), (pad, pad), (0, 0), (0, 0)))
        sk = p[f"scale_k{k}"]
        ws.append(wk * sk)                                    # fold Scale into W, b
        bs.append(p[f"k{k}"]["b"] * sk)
    wcat = jnp.concatenate(ws, axis=-1)                        # (9,9,Cin,4*out_feats)
    bcat = jnp.concatenate(bs, axis=-1)                        # (4*out_feats,)

    n_rows = N * H * W
    patches = _extract_patches(x, Kmax)
    kc = patches.shape[1]
    bm, rows_p = _row_tiling(n_rows)
    patches = _pad_rows(patches, rows_p)
    cw = n_branch * out_feats
    w2 = wcat.reshape(kc, cw).astype(jnp.bfloat16)
    b2 = bcat.reshape(1, cw).astype(jnp.float32)
    sel = jnp.tile(jnp.eye(out_feats, dtype=jnp.float32), (n_branch, 1))  # (cw, out_feats)
    a = jnp.reshape(p["prelu_a"], (1,)).astype(jnp.float32)

    out = pl.pallas_call(
        _awms_kernel,
        out_shape=jax.ShapeDtypeStruct((rows_p, out_feats), jnp.float32),
        grid=(rows_p // bm,),
        in_specs=[
            pl.BlockSpec((bm, kc), lambda i: (i, 0)),
            pl.BlockSpec((kc, cw), lambda i: (0, 0)),
            pl.BlockSpec((1, cw), lambda i: (0, 0)),
            pl.BlockSpec((cw, out_feats), lambda i: (0, 0)),
            pl.BlockSpec(memory_space=pltpu.MemorySpace.SMEM),
        ],
        out_specs=pl.BlockSpec((bm, out_feats), lambda i: (i, 0)),
        compiler_params=_PARAMS,
    )(patches, w2, b2, sel, a)
    return out[:n_rows].reshape(N, H, W, out_feats)


# ----------------------------------------------------------------------------
# Deterministic parameter construction (synthetic weights, no checkpoint)
# ----------------------------------------------------------------------------
def _conv_params(key, K, cin, cout):
    kw, kb = jax.random.split(key)
    fan_in = K * K * cin
    w = jax.random.normal(kw, (K, K, cin, cout), jnp.float32) / jnp.sqrt(
        jnp.float32(fan_in))
    b = jax.random.normal(kb, (cout,), jnp.float32) * 0.01
    return {"w": w, "b": b}


def init_params(key, args):
    n_feats = args["NFEAT"]
    bf = args["block_feats"]
    out_feats = args["SCALE"] * args["SCALE"] * args["NWEIGT"]
    keys = iter(jax.random.split(key, 256))

    params = {"rgb_mean": jnp.array([0.4488, 0.4371, 0.404], jnp.float32)}
    params["head"] = _conv_params(next(keys), 3, args["IN_CHANNEL"], n_feats)

    body = []
    for _ in range(args["RES_BLOCK"]):
        lfb = {"awru": []}
        for _ in range(8):
            lfb["awru"].append({
                "c0": _conv_params(next(keys), 3, n_feats, bf),
                "c1": _conv_params(next(keys), 3, bf, n_feats),
                "res_scale": jnp.float32(1.0),
                "x_scale": jnp.float32(1.0),
            })
        lfb["reduction"] = _conv_params(next(keys), 3, n_feats * 8, n_feats)
        lfb["res_scale"] = jnp.float32(1.0)
        lfb["x_scale"] = jnp.float32(1.0)
        body.append(lfb)
    params["body"] = body

    tail = {"prelu_a": jnp.float32(0.2)}
    for k in (3, 5, 7, 9):
        tail[f"k{k}"] = _conv_params(next(keys), k, n_feats, out_feats)
        tail[f"scale_k{k}"] = jnp.float32(0.25)
    params["tail"] = tail
    return params


# ----------------------------------------------------------------------------
# Forward pass (NHWC internally, NCHW at the API boundary)
# ----------------------------------------------------------------------------
def awru_forward(x, p):
    h = conv2d_gemm(x, p["c0"]["w"], p["c0"]["b"], relu=True)         # conv+ReLU fused
    return conv2d_gemm_residual(h, p["c1"]["w"], p["c1"]["b"],
                                res=x, res_scale=p["res_scale"],
                                x_scale=p["x_scale"])                 # conv+residual fused


def lfb_forward(x, p):
    feats = []
    h = x
    for ap in p["awru"]:
        h = awru_forward(h, ap)
        feats.append(h)
    cat = jnp.concatenate(feats, axis=-1)                             # channel concat
    return conv2d_gemm_residual(cat, p["reduction"]["w"], p["reduction"]["b"],
                                res=x, res_scale=p["res_scale"],
                                x_scale=p["x_scale"])


def model_forward(x_nchw, params):
    x = jnp.transpose(x_nchw, (0, 2, 3, 1)).astype(jnp.float32)       # NCHW -> NHWC
    x = (x - params["rgb_mean"].reshape(1, 1, 1, -1)) * 2.0
    x = conv2d_gemm(x, params["head"]["w"], params["head"]["b"])
    for lfb in params["body"]:
        x = lfb_forward(x, lfb)
    out_feats = params["tail"]["k3"]["w"].shape[-1]
    x = awms_fused(x, params["tail"], out_feats)
    return jnp.transpose(x, (0, 3, 1, 2))                             # NHWC -> NCHW


# ----------------------------------------------------------------------------
if __name__ == "__main__":
    args = dict(SCALE=2, RES_BLOCK=1, NFEAT=8, block_feats=16,
                NWEIGT=3, IN_CHANNEL=3)
    key = jax.random.PRNGKey(0)
    kp, kx = jax.random.split(key)
    params = init_params(kp, args)

    x = jax.random.uniform(kx, (2, args["IN_CHANNEL"], 16, 16), jnp.float32)

    out = jax.jit(model_forward)(x, params)
    jax.block_until_ready(out)

    out_feats = args["SCALE"] * args["SCALE"] * args["NWEIGT"]
    assert out.shape == (2, out_feats, 16, 16), out.shape
    assert out.dtype == jnp.float32
    print("KERNEL_OK")
</pallas_src>

<mosaic_0001>
module attributes {stable_mosaic.version = 11 : i64} {
  func.func @_conv_kernel(%arg0: i32, %arg1: memref<256x27xbf16, #tpu.memory_space<vmem>>, %arg2: memref<27x8xbf16, #tpu.memory_space<vmem>>, %arg3: memref<1x8xf32, #tpu.memory_space<vmem>>, %arg4: memref<256x8xf32, #tpu.memory_space<vmem>>) attributes {dimension_semantics = [#tpu.dimension_semantics<parallel>], iteration_bounds = array<i64: 2>, scalar_prefetch = 0 : i64, scratch_operands = 0 : i64, tpu.core_type = #tpu.core_type<tc>, window_params = [{transform_indices = @transform_0, window_bounds = array<i64: 256, 27>}, {pipeline_mode = #tpu.pipeline_mode<synchronous>, transform_indices = @transform_1, window_bounds = array<i64: 27, 8>}, {pipeline_mode = #tpu.pipeline_mode<synchronous>, transform_indices = @transform_2, window_bounds = array<i64: 1, 8>}, {transform_indices = @transform_3, window_bounds = array<i64: 256, 8>}]} {
    %c0 = arith.constant 0 : index
    %c0_0 = arith.constant 0 : index
    %0 = vector.load %arg1[%c0, %c0_0] : memref<256x27xbf16, #tpu.memory_space<vmem>>, vector<256x27xbf16>
    %c0_1 = arith.constant 0 : index
    %c0_2 = arith.constant 0 : index
    %1 = vector.load %arg2[%c0_1, %c0_2] : memref<27x8xbf16, #tpu.memory_space<vmem>>, vector<27x8xbf16>
    %cst = arith.constant dense<0.000000e+00> : vector<256x8xf32>
    %2 = tpu.matmul %0, %1, %cst {dimension_numbers = #tpu.dot_dimension_numbers<[1], [0], [0], [1], [0, 0, 1, 1], [], []>} : vector<256x27xbf16>, vector<27x8xbf16>, vector<256x8xf32> -> vector<256x8xf32>
    %c0_3 = arith.constant 0 : index
    %c0_4 = arith.constant 0 : index
    %3 = vector.load %arg3[%c0_3, %c0_4] : memref<1x8xf32, #tpu.memory_space<vmem>>, vector<1x8xf32>
    %4 = vector.broadcast %3 : vector<1x8xf32> to vector<256x8xf32>
    %5 = arith.addf %2, %4 : vector<256x8xf32>
    %c0_5 = arith.constant 0 : index
    %c0_6 = arith.constant 0 : index
    %6 = vector.load %arg4[%c0_5, %c0_6] : memref<256x8xf32, #tpu.memory_space<vmem>>, vector<256x8xf32>
    tpu.vector_store %arg4[%c0_5, %c0_6], %5 {strides = array<i32>} : memref<256x8xf32, #tpu.memory_space<vmem>>, vector<256x8xf32>,
    return
  }
  func.func @transform_0(%arg0: i32) -> (i32, i32) {
    %c0_i32 = arith.constant 0 : i32
    %c0_i32_0 = arith.constant 0 : i32
    return %arg0, %c0_i32 : i32, i32
  }
  func.func @transform_1(%arg0: i32) -> (i32, i32) {
    %c0_i32 = arith.constant 0 : i32
    %c0_i32_0 = arith.constant 0 : i32
    %c0_i32_1 = arith.constant 0 : i32
    return %c0_i32, %c0_i32_0 : i32, i32
  }
  func.func @transform_2(%arg0: i32) -> (i32, i32) {
    %c0_i32 = arith.constant 0 : i32
    %c0_i32_0 = arith.constant 0 : i32
    %c0_i32_1 = arith.constant 0 : i32
    return %c0_i32, %c0_i32_0 : i32, i32
  }
  func.func @transform_3(%arg0: i32) -> (i32, i32) {
    %c0_i32 = arith.constant 0 : i32
    %c0_i32_0 = arith.constant 0 : i32
    return %arg0, %c0_i32 : i32, i32
  }
}

module attributes {stable_mosaic.version = 11 : i64} {
  func.func @_conv_kernel(%arg0: i32, %arg1: memref<256x72xbf16, #tpu.memory_space<vmem>>, %arg2: memref<72x16xbf16, #tpu.memory_space<vmem>>, %arg3: memref<1x16xf32, #tpu.memory_space<vmem>>, %arg4: memref<256x16xf32, #tpu.memory_space<vmem>>) attributes {dimension_semantics = [#tpu.dimension_semantics<parallel>], iteration_bounds = array<i64: 2>, scalar_prefetch = 0 : i64, scratch_operands = 0 : i64, tpu.core_type = #tpu.core_type<tc>, window_params = [{transform_indices = @transform_0, window_bounds = array<i64: 256, 72>}, {pipeline_mode = #tpu.pipeline_mode<synchronous>, transform_indices = @transform_1, window_bounds = array<i64: 72, 16>}, {pipeline_mode = #tpu.pipeline_mode<synchronous>, transform_indices = @transform_2, window_bounds = array<i64: 1, 16>}, {transform_indices = @transform_3, window_bounds = array<i64: 256, 16>}]} {
    %c0 = arith.constant 0 : index
    %c0_0 = arith.constant 0 : index
    %0 = vector.load %arg1[%c0, %c0_0] : memref<256x72xbf16, #tpu.memory_space<vmem>>, vector<256x72xbf16>
    %c0_1 = arith.constant 0 : index
    %c0_2 = arith.constant 0 : index
    %1 = vector.load %arg2[%c0_1, %c0_2] : memref<72x16xbf16, #tpu.memory_space<vmem>>, vector<72x16xbf16>
    %cst = arith.constant dense<0.000000e+00> : vector<256x16xf32>
    %2 = tpu.matmul %0, %1, %cst {dimension_numbers = #tpu.dot_dimension_numbers<[1], [0], [0], [1], [0, 0, 1, 1], [], []>} : vector<256x72xbf16>, vector<72x16xbf16>, vector<256x16xf32> -> vector<256x16xf32>
    %c0_3 = arith.constant 0 : index
    %c0_4 = arith.constant 0 : index
    %3 = vector.load %arg3[%c0_3, %c0_4] : memref<1x16xf32, #tpu.memory_space<vmem>>, vector<1x16xf32>
    %4 = vector.broadcast %3 : vector<1x16xf32> to vector<256x16xf32>
    %5 = arith.addf %2, %4 : vector<256x16xf32>
    %cst_5 = arith.constant 0.000000e+00 : f32
    %6 = vector.broadcast %cst_5 : f32 to vector<256x16xf32>
    %7 = arith.maximumf %5, %6 : vector<256x16xf32>
    %c0_6 = arith.constant 0 : index
    %c0_7 = arith.constant 0 : index
    %8 = vector.load %arg4[%c0_6, %c0_7] : memref<256x16xf32, #tpu.memory_space<vmem>>, vector<256x16xf32>
    tpu.vector_store %arg4[%c0_6, %c0_7], %7 {strides = array<i32>} : memref<256x16xf32, #tpu.memory_space<vmem>>, vector<256x16xf32>,
    return
  }
  func.func @transform_0(%arg0: i32) -> (i32, i32) {
    %c0_i32 = arith.constant 0 : i32
    %c0_i32_0 = arith.constant 0 : i32
    return %arg0, %c0_i32 : i32, i32
  }
  func.func @transform_1(%arg0: i32) -> (i32, i32) {
    %c0_i32 = arith.constant 0 : i32
    %c0_i32_0 = arith.constant 0 : i32
    %c0_i32_1 = arith.constant 0 : i32
    return %c0_i32, %c0_i32_0 : i32, i32
  }
  func.func @transform_2(%arg0: i32) -> (i32, i32) {
    %c0_i32 = arith.constant 0 : i32
    %c0_i32_0 = arith.constant 0 : i32
    %c0_i32_1 = arith.constant 0 : i32
    return %c0_i32, %c0_i32_0 : i32, i32
  }
  func.func @transform_3(%arg0: i32) -> (i32, i32) {
    %c0_i32 = arith.constant 0 : i32
    %c0_i32_0 = arith.constant 0 : i32
    return %arg0, %c0_i32 : i32, i32
  }
}

module attributes {stable_mosaic.version = 11 : i64} {
  func.func @_conv_res_kernel(%arg0: i32, %arg1: memref<256x144xbf16, #tpu.memory_space<vmem>>, %arg2: memref<144x8xbf16, #tpu.memory_space<vmem>>, %arg3: memref<1x8xf32, #tpu.memory_space<vmem>>, %arg4: memref<256x8xf32, #tpu.memory_space<vmem>>, %arg5: memref<1xf32, #tpu.memory_space<smem>>, %arg6: memref<256x8xf32, #tpu.memory_space<vmem>>) attributes {dimension_semantics = [#tpu.dimension_semantics<parallel>], iteration_bounds = array<i64: 2>, scalar_prefetch = 0 : i64, scratch_operands = 0 : i64, tpu.core_type = #tpu.core_type<tc>, window_params = [{transform_indices = @transform_0, window_bounds = array<i64: 256, 144>}, {pipeline_mode = #tpu.pipeline_mode<synchronous>, transform_indices = @transform_1, window_bounds = array<i64: 144, 8>}, {pipeline_mode = #tpu.pipeline_mode<synchronous>, transform_indices = @transform_2, window_bounds = array<i64: 1, 8>}, {transform_indices = @transform_3, window_bounds = array<i64: 256, 8>}, {transform_indices = @transform_4, window_bounds = array<i64: 1>}, {transform_indices = @transform_5, window_bounds = array<i64: 256, 8>}]} {
    %c0 = arith.constant 0 : index
    %c0_0 = arith.constant 0 : index
    %0 = vector.load %arg1[%c0, %c0_0] : memref<256x144xbf16, #tpu.memory_space<vmem>>, vector<256x144xbf16>
    %c0_1 = arith.constant 0 : index
    %c0_2 = arith.constant 0 : index
    %1 = vector.load %arg2[%c0_1, %c0_2] : memref<144x8xbf16, #tpu.memory_space<vmem>>, vector<144x8xbf16>
    %cst = arith.constant dense<0.000000e+00> : vector<256x8xf32>
    %2 = tpu.matmul %0, %1, %cst {dimension_numbers = #tpu.dot_dimension_numbers<[1], [0], [0], [1], [0, 0, 1, 1], [], []>} : vector<256x144xbf16>, vector<144x8xbf16>, vector<256x8xf32> -> vector<256x8xf32>
    %c0_3 = arith.constant 0 : index
    %c0_4 = arith.constant 0 : index
    %3 = vector.load %arg3[%c0_3, %c0_4] : memref<1x8xf32, #tpu.memory_space<vmem>>, vector<1x8xf32>
    %4 = vector.broadcast %3 : vector<1x8xf32> to vector<256x8xf32>
    %5 = arith.addf %2, %4 : vector<256x8xf32>
    %c0_5 = arith.constant 0 : index
    %6 = memref.load %arg5[%c0_5] : memref<1xf32, #tpu.memory_space<smem>>
    %c0_6 = arith.constant 0 : index
    %c0_7 = arith.constant 0 : index
    %7 = vector.load %arg4[%c0_6, %c0_7] : memref<256x8xf32, #tpu.memory_space<vmem>>, vector<256x8xf32>
    %8 = vector.broadcast %6 : f32 to vector<256x8xf32>
    %9 = arith.mulf %8, %7 : vector<256x8xf32>
    %10 = arith.addf %5, %9 : vector<256x8xf32>
    %c0_8 = arith.constant 0 : index
    %c0_9 = arith.constant 0 : index
    %11 = vector.load %arg6[%c0_8, %c0_9] : memref<256x8xf32, #tpu.memory_space<vmem>>, vector<256x8xf32>
    tpu.vector_store %arg6[%c0_8, %c0_9], %10 {strides = array<i32>} : memref<256x8xf32, #tpu.memory_space<vmem>>, vector<256x8xf32>,
    return
  }
  func.func @transform_0(%arg0: i32) -> (i32, i32) {
    %c0_i32 = arith.constant 0 : i32
    %c0_i32_0 = arith.constant 0 : i32
    return %arg0, %c0_i32 : i32, i32
  }
  func.func @transform_1(%arg0: i32) -> (i32, i32) {
    %c0_i32 = arith.constant 0 : i32
    %c0_i32_0 = arith.constant 0 : i32
    %c0_i32_1 = arith.constant 0 : i32
    return %c0_i32, %c0_i32_0 : i32, i32
  }
  func.func @transform_2(%arg0: i32) -> (i32, i32) {
    %c0_i32 = arith.constant 0 : i32
    %c0_i32_0 = arith.constant 0 : i32
    %c0_i32_1 = arith.constant 0 : i32
    return %c0_i32, %c0_i32_0 : i32, i32
  }
  func.func @transform_3(%arg0: i32) -> (i32, i32) {
    %c0_i32 = arith.constant 0 : i32
    %c0_i32_0 = arith.constant 0 : i32
    return %arg0, %c0_i32 : i32, i32
  }
  func.func @transform_4(%arg0: i32) -> i32 {
    %c0_i32 = arith.constant 0 : i32
    %c0_i32_0 = arith.constant 0 : i32
    return %c0_i32 : i32
  }
  func.func @transform_5(%arg0: i32) -> (i32, i32) {
    %c0_i32 = arith.constant 0 : i32
    %c0_i32_0 = arith.constant 0 : i32
    return %arg0, %c0_i32 : i32, i32
  }
}

module attributes {stable_mosaic.version = 11 : i64} {
  func.func @_conv_res_kernel(%arg0: i32, %arg1: memref<256x576xbf16, #tpu.memory_space<vmem>>, %arg2: memref<576x8xbf16, #tpu.memory_space<vmem>>, %arg3: memref<1x8xf32, #tpu.memory_space<vmem>>, %arg4: memref<256x8xf32, #tpu.memory_space<vmem>>, %arg5: memref<1xf32, #tpu.memory_space<smem>>, %arg6: memref<256x8xf32, #tpu.memory_space<vmem>>) attributes {dimension_semantics = [#tpu.dimension_semantics<parallel>], iteration_bounds = array<i64: 2>, scalar_prefetch = 0 : i64, scratch_operands = 0 : i64, tpu.core_type = #tpu.core_type<tc>, window_params = [{transform_indices = @transform_0, window_bounds = array<i64: 256, 576>}, {pipeline_mode = #tpu.pipeline_mode<synchronous>, transform_indices = @transform_1, window_bounds = array<i64: 576, 8>}, {pipeline_mode = #tpu.pipeline_mode<synchronous>, transform_indices = @transform_2, window_bounds = array<i64: 1, 8>}, {transform_indices = @transform_3, window_bounds = array<i64: 256, 8>}, {transform_indices = @transform_4, window_bounds = array<i64: 1>}, {transform_indices = @transform_5, window_bounds = array<i64: 256, 8>}]} {
    %c0 = arith.constant 0 : index
    %c0_0 = arith.constant 0 : index
    %0 = vector.load %arg1[%c0, %c0_0] : memref<256x576xbf16, #tpu.memory_space<vmem>>, vector<256x576xbf16>
    %c0_1 = arith.constant 0 : index
    %c0_2 = arith.constant 0 : index
    %1 = vector.load %arg2[%c0_1, %c0_2] : memref<576x8xbf16, #tpu.memory_space<vmem>>, vector<576x8xbf16>
    %cst = arith.constant dense<0.000000e+00> : vector<256x8xf32>
    %2 = tpu.matmul %0, %1, %cst {dimension_numbers = #tpu.dot_dimension_numbers<[1], [0], [0], [1], [0, 0, 1, 1], [], []>} : vector<256x576xbf16>, vector<576x8xbf16>, vector<256x8xf32> -> vector<256x8xf32>
    %c0_3 = arith.constant 0 : index
    %c0_4 = arith.constant 0 : index
    %3 = vector.load %arg3[%c0_3, %c0_4] : memref<1x8xf32, #tpu.memory_space<vmem>>, vector<1x8xf32>
    %4 = vector.broadcast %3 : vector<1x8xf32> to vector<256x8xf32>
    %5 = arith.addf %2, %4 : vector<256x8xf32>
    %c0_5 = arith.constant 0 : index
    %6 = memref.load %arg5[%c0_5] : memref<1xf32, #tpu.memory_space<smem>>
    %c0_6 = arith.constant 0 : index
    %c0_7 = arith.constant 0 : index
    %7 = vector.load %arg4[%c0_6, %c0_7] : memref<256x8xf32, #tpu.memory_space<vmem>>, vector<256x8xf32>
    %8 = vector.broadcast %6 : f32 to vector<256x8xf32>
    %9 = arith.mulf %8, %7 : vector<256x8xf32>
    %10 = arith.addf %5, %9 : vector<256x8xf32>
    %c0_8 = arith.constant 0 : index
    %c0_9 = arith.constant 0 : index
    %11 = vector.load %arg6[%c0_8, %c0_9] : memref<256x8xf32, #tpu.memory_space<vmem>>, vector<256x8xf32>
    tpu.vector_store %arg6[%c0_8, %c0_9], %10 {strides = array<i32>} : memref<256x8xf32, #tpu.memory_space<vmem>>, vector<256x8xf32>,
    return
  }
  func.func @transform_0(%arg0: i32) -> (i32, i32) {
    %c0_i32 = arith.constant 0 : i32
    %c0_i32_0 = arith.constant 0 : i32
    return %arg0, %c0_i32 : i32, i32
  }
  func.func @transform_1(%arg0: i32) -> (i32, i32) {
    %c0_i32 = arith.constant 0 : i32
    %c0_i32_0 = arith.constant 0 : i32
    %c0_i32_1 = arith.constant 0 : i32
    return %c0_i32, %c0_i32_0 : i32, i32
  }
  func.func @transform_2(%arg0: i32) -> (i32, i32) {
    %c0_i32 = arith.constant 0 : i32
    %c0_i32_0 = arith.constant 0 : i32
    %c0_i32_1 = arith.constant 0 : i32
    return %c0_i32, %c0_i32_0 : i32, i32
  }
  func.func @transform_3(%arg0: i32) -> (i32, i32) {
    %c0_i32 = arith.constant 0 : i32
    %c0_i32_0 = arith.constant 0 : i32
    return %arg0, %c0_i32 : i32, i32
  }
  func.func @transform_4(%arg0: i32) -> i32 {
    %c0_i32 = arith.constant 0 : i32
    %c0_i32_0 = arith.constant 0 : i32
    return %c0_i32 : i32
  }
  func.func @transform_5(%arg0: i32) -> (i32, i32) {
    %c0_i32 = arith.constant 0 : i32
    %c0_i32_0 = arith.constant 0 : i32
    return %arg0, %c0_i32 : i32, i32
  }
}

module attributes {stable_mosaic.version = 11 : i64} {
  func.func @_awms_kernel(%arg0: i32, %arg1: memref<256x648xbf16, #tpu.memory_space<vmem>>, %arg2: memref<648x48xbf16, #tpu.memory_space<vmem>>, %arg3: memref<1x48xf32, #tpu.memory_space<vmem>>, %arg4: memref<48x12xf32, #tpu.memory_space<vmem>>, %arg5: memref<1xf32, #tpu.memory_space<smem>>, %arg6: memref<256x12xf32, #tpu.memory_space<vmem>>) attributes {dimension_semantics = [#tpu.dimension_semantics<parallel>], iteration_bounds = array<i64: 2>, scalar_prefetch = 0 : i64, scratch_operands = 0 : i64, tpu.core_type = #tpu.core_type<tc>, window_params = [{transform_indices = @transform_0, window_bounds = array<i64: 256, 648>}, {pipeline_mode = #tpu.pipeline_mode<synchronous>, transform_indices = @transform_1, window_bounds = array<i64: 648, 48>}, {pipeline_mode = #tpu.pipeline_mode<synchronous>, transform_indices = @transform_2, window_bounds = array<i64: 1, 48>}, {pipeline_mode = #tpu.pipeline_mode<synchronous>, transform_indices = @transform_3, window_bounds = array<i64: 48, 12>}, {transform_indices = @transform_4, window_bounds = array<i64: 1>}, {transform_indices = @transform_5, window_bounds = array<i64: 256, 12>}]} {
    %c0 = arith.constant 0 : index
    %c0_0 = arith.constant 0 : index
    %0 = vector.load %arg1[%c0, %c0_0] : memref<256x648xbf16, #tpu.memory_space<vmem>>, vector<256x648xbf16>
    %c0_1 = arith.constant 0 : index
    %c0_2 = arith.constant 0 : index
    %1 = vector.load %arg2[%c0_1, %c0_2] : memref<648x48xbf16, #tpu.memory_space<vmem>>, vector<648x48xbf16>
    %cst = arith.constant dense<0.000000e+00> : vector<256x48xf32>
    %2 = tpu.matmul %0, %1, %cst {dimension_numbers = #tpu.dot_dimension_numbers<[1], [0], [0], [1], [0, 0, 1, 1], [], []>} : vector<256x648xbf16>, vector<648x48xbf16>, vector<256x48xf32> -> vector<256x48xf32>
    %c0_3 = arith.constant 0 : index
    %c0_4 = arith.constant 0 : index
    %3 = vector.load %arg3[%c0_3, %c0_4] : memref<1x48xf32, #tpu.memory_space<vmem>>, vector<1x48xf32>
    %4 = vector.broadcast %3 : vector<1x48xf32> to vector<256x48xf32>
    %5 = arith.addf %2, %4 : vector<256x48xf32>
    %c0_5 = arith.constant 0 : index
    %6 = memref.load %arg5[%c0_5] : memref<1xf32, #tpu.memory_space<smem>>
    %cst_6 = arith.constant 0.000000e+00 : f32
    %7 = vector.broadcast %cst_6 : f32 to vector<256x48xf32>
    %8 = arith.maximumf %5, %7 : vector<256x48xf32>
    %cst_7 = arith.constant 0.000000e+00 : f32
    %9 = vector.broadcast %cst_7 : f32 to vector<256x48xf32>
    %10 = arith.minimumf %5, %9 : vector<256x48xf32>
    %11 = vector.broadcast %6 : f32 to vector<256x48xf32>
    %12 = arith.mulf %11, %10 : vector<256x48xf32>
    %13 = arith.addf %8, %12 : vector<256x48xf32>
    %c0_8 = arith.constant 0 : index
    %c0_9 = arith.constant 0 : index
    %14 = vector.load %arg4[%c0_8, %c0_9] : memref<48x12xf32, #tpu.memory_space<vmem>>, vector<48x12xf32>
    %cst_10 = arith.constant dense<0.000000e+00> : vector<256x12xf32>
    %15 = tpu.matmul %13, %14, %cst_10 {dimension_numbers = #tpu.dot_dimension_numbers<[1], [0], [0], [1], [0, 0, 1, 1], [], []>} : vector<256x48xf32>, vector<48x12xf32>, vector<256x12xf32> -> vector<256x12xf32>
    %c0_11 = arith.constant 0 : index
    %c0_12 = arith.constant 0 : index
    %16 = vector.load %arg6[%c0_11, %c0_12] : memref<256x12xf32, #tpu.memory_space<vmem>>, vector<256x12xf32>
    tpu.vector_store %arg6[%c0_11, %c0_12], %15 {strides = array<i32>} : memref<256x12xf32, #tpu.memory_space<vmem>>, vector<256x12xf32>,
    return
  }
  func.func @transform_0(%arg0: i32) -> (i32, i32) {
    %c0_i32 = arith.constant 0 : i32
    %c0_i32_0 = arith.constant 0 : i32
    return %arg0, %c0_i32 : i32, i32
  }
  func.func @transform_1(%arg0: i32) -> (i32, i32) {
    %c0_i32 = arith.constant 0 : i32
    %c0_i32_0 = arith.constant 0 : i32
    %c0_i32_1 = arith.constant 0 : i32
    return %c0_i32, %c0_i32_0 : i32, i32
  }
  func.func @transform_2(%arg0: i32) -> (i32, i32) {
    %c0_i32 = arith.constant 0 : i32
    %c0_i32_0 = arith.constant 0 : i32
    %c0_i32_1 = arith.constant 0 : i32
    return %c0_i32, %c0_i32_0 : i32, i32
  }
  func.func @transform_3(%arg0: i32) -> (i32, i32) {
    %c0_i32 = arith.constant 0 : i32
    %c0_i32_0 = arith.constant 0 : i32
    %c0_i32_1 = arith.constant 0 : i32
    return %c0_i32, %c0_i32_0 : i32, i32
  }
  func.func @transform_4(%arg0: i32) -> i32 {
    %c0_i32 = arith.constant 0 : i32
    %c0_i32_0 = arith.constant 0 : i32
    return %c0_i32 : i32
  }
  func.func @transform_5(%arg0: i32) -> (i32, i32) {
    %c0_i32 = arith.constant 0 : i32
    %c0_i32_0 = arith.constant 0 : i32
    return %arg0, %c0_i32 : i32, i32
  }
}

</mosaic_0001>

<bundles_post_ra>
// kernel: model_forward.19
= control target key start
LH: loop header
LB: loop body
LE: loop exit
PB: predicated region body
PF: predicated region fallthrough
CT: control target
= control target key end

     0   :  { %s775_s12 = smov 0   ;;  %s939_s0 = inlined_call_operand.vmem [shape: bf16[512,27], index: 0, kind: input, shape index: {}]   ;;  %s940_s1 = inlined_call_operand.vmem [shape: bf16[27,8], index: 1, kind: input, shape index: {}]   ;;  %s941_s2 = inlined_call_operand.vmem [shape: f32[1,8], index: 2, kind: input, shape index: {}]   ;;  %s942_s3 = inlined_call_operand.vmem [shape: f32[512,8], index: 3, kind: output, shape index: {}]  }
   0x1 LB: > { %s615_s13 = sadd.s32 4294967295, %s752_s12   ;;  %p619_p0 = scmp.ge.s32.totalorder %s752_s12, 1  ;;  %s752_s12 = sphi %s775_s12, %s13_s12  }
   0x2   : > { %p138_p1 = scmp.lt.s32.totalorder %s752_s12, 3 }
   0x4   : > { %p139_p2 = pnand %p619_p0, %p138_p1 }
   0x5   : > { %v728_v0 = vld [vmem:[%s940_s1] sm:$0xff] (!%p139_p2)   ;;  %vm358_vm0 = vcmask (!%p139_p2), 1044480   ;;  %v729_v1 = vld [vmem:[%s940_s1 + $0x8] sm:$0x3f] (!%p139_p2)   ;;  %vm359_vm1 = vcmask (!%p139_p2), 1045504   ;;  %s620_s18 = sshll.u32 (!%p139_p2), %s615_s13, 5 }
   0x6   : > { %142 = sbr.rel (%p139_p2) target bundleno = 261 (0x105), region = 32  ;;  %679 = vmatprep.subr.bf16.mxu0 (!%p139_p2), %v728_v0  ;;  %715 = vmatprep.subr.bf16.mxu1 (!%p139_p2), %v728_v0  ;;  %v754_v2 = vmov (!%p139_p2), 65535   ;;  %p163_p3 = scmp.lt.s32.totalorder (!%p139_p2), %s620_s18, 63  ;;  %vm309_vm2 = vcmask (!%p139_p2), 220160   ;;  %v833_v22 = vld [vmem:[%s941_s2] ss:$0 sm:$0xff] (!%p139_p2) }
   0x7   : > { %680 = vmatpush3.bf16.msra.mxu0 (!%p139_p2), %v728_v0  ;;  %717 = vmatpush3.bf16.msra.mxu1 (!%p139_p2), %v728_v0  ;;  %v360_v3 = vsel (!%p139_p2), %vm358_vm0, 4294967295, %v754_v2  ;;  %vm526_vm3 = vcmask (!%p139_p2), 64512  }
   0x8   : > { %v361_v4 = vsel (!%p139_p2), %vm359_vm1, %v360_v3, 0 }
   0x9   : > { %v363_v5 = vand.u32 (!%p139_p2), %v729_v1, %v361_v4 }
   0xb   : > { %681 = vmatprep.subr.bf16.mxu0 (!%p139_p2), %v363_v5  ;;  %716 = vmatprep.subr.bf16.mxu1 (!%p139_p2), %v363_v5 }
   0xc   : > { %682 = vmatpush3.bf16.msra.mxu0 (!%p139_p2), %v363_v5  ;;  %718 = vmatpush3.bf16.msra.mxu1 (!%p139_p2), %v363_v5 }
   0xd   : > { %s944_s18 = smov (!%p163_p3, %s620_s18), 63 }
   0xe   : > { %s621_s19 = sshll.u32 %s944_s18, 2  ;;  %s623_s23 = sshll.u32 %s944_s18, 3 }
   0xf   : > { %s795_s22 = scalar_lea.vmem %s939_s0, %s621_s19  ;;  %s838_s28 = scalar_lea.vmem %s942_s3, %s623_s23 }
  0x10   : > { %v730_v6 = vld [vmem:[%s795_s22] sm:$0xff]   ;;  %v732_v8 = vld [vmem:[%s795_s22 + $0x8] sm:$0xff]   ;;  %v734_v10 = vld [vmem:[%s795_s22 + $0x10] sm:$0xff]  }
  0x11   : > { %v731_v7 = vld [vmem:[%s795_s22 + $0x40] sm:$0xff]   ;;  %683 = vmatprep.mubr.msk.bf16.mxu0 %vm309_vm2, %v730_v6  ;;  %v733_v9 = vld [vmem:[%s795_s22 + $0x48] sm:$0xff]   ;;  %v735_v11 = vld [vmem:[%s795_s22 + $0x50] sm:$0xff]  }
  0x12   : > { %699 = vmatprep.mubr.msk.bf16.mxu1 %vm309_vm2, %v731_v7  ;;  %684 = vmatmul.mubr.msk.bf16.vlgmr.msra.gmra.mrb[0].mxu0 %vm309_vm2, %v732_v8  ;;  %v736_v12 = vld [vmem:[%s795_s22 + $0x18] sm:$0xff]   ;;  %v738_v14 = vld [vmem:[%s795_s22 + $0x20] sm:$0xff]   ;;  %v740_v16 = vld [vmem:[%s795_s22 + $0x28] sm:$0xff]  }
  0x13   : > { %700 = vmatmul.mubr.msk.bf16.vlgmr.msra.gmra.mrb[0].mxu1 %vm309_vm2, %v733_v9  ;;  %687 = vmatprep.mubr.msk.bf16.mxu0 %vm309_vm2, %v734_v10  ;;  %v737_v13 = vld [vmem:[%s795_s22 + $0x58] sm:$0xff]   ;;  %v739_v15 = vld [vmem:[%s795_s22 + $0x60] sm:$0xff]   ;;  %v741_v17 = vld [vmem:[%s795_s22 + $0x68] sm:$0xff]  }
  0x14   : > { %703 = vmatprep.mubr.msk.bf16.mxu1 %vm309_vm2, %v735_v11  ;;  %v742_v18 = vld [vmem:[%s795_s22 + $0x30] sm:$0xff]   ;;  %v744_v20 = vld [vmem:[%s795_s22 + $0x38] sm:$0xff]  }
  0x15   : > { %v743_v19 = vld [vmem:[%s795_s22 + $0x70] sm:$0xff]   ;;  %v745_v21 = vld [vmem:[%s795_s22 + $0x78] sm:$0xff]  }
  0x1a   : > { %688 = vmatmul.mubr.msk.bf16.gmra.mrb[4].mxu0 %vm309_vm2, %v736_v12 }
  0x1b   : > { %704 = vmatmul.mubr.msk.bf16.gmra.mrb[4].mxu1 %vm309_vm2, %v737_v13  ;;  %691 = vmatprep.mubr.msk.bf16.mxu0 %vm309_vm2, %v738_v14 }
  0x1c   : > { %707 = vmatprep.mubr.msk.bf16.mxu1 %vm309_vm2, %v739_v15 }
  0x22   : > { %692 = vmatmul.mubr.msk.bf16.gmra.mrb[8].mxu0 %vm309_vm2, %v740_v16 }
  0x23   : > { %708 = vmatmul.mubr.msk.bf16.gmra.mrb[8].mxu1 %vm309_vm2, %v741_v17  ;;  %695 = vmatprep.mubr.msk.bf16.mxu0 %vm309_vm2, %v742_v18 }
  0x24   : > { %711 = vmatprep.mubr.msk.bf16.mxu1 %vm309_vm2, %v743_v19 }
  0x2a   : > { %696 = vmatmul.mubr.msk.bf16.gmra.mrb[12].mxu0 %vm309_vm2, %v744_v20 }
  0x2b   : > { %712 = vmatmul.mubr.msk.bf16.gmra.mrb[12].mxu1 %vm309_vm2, %v745_v21 }
  0xe5   : > { %v685_v23 = vpop.f32.mrb[0].mxu0 }
  0xe6   : > { %v408_v24 = vadd.f32 %v685_v23, %v833_v22  ;;  %v701_v25 = vpop.f32.mrb[0].mxu1  ;;  %v399_v26 = vpop.f32.mrb[1].mxu0 }
  0xe7   : > { %v472_v27 = vadd.f32 %v701_v25, %v833_v22  ;;  %v400_v28 = vadd.f32 %v833_v22, %v399_v26  ;;  %v463_v29 = vpop.f32.mrb[1].mxu1  ;;  %v686_v30 = vpop.f32.mrb[2].mxu0 }
  0xe8   : > { %529 = vst.msk [vmem:[%s838_s28 + $0x10] sm:$0xff] %vm526_vm3, %v408_v24  ;;  %v464_v31 = vadd.f32 %v833_v22, %v463_v29  ;;  %v411_v32 = vadd.f32 %v686_v30, %v833_v22  ;;  %v702_v33 = vpop.f32.mrb[2].mxu1  ;;  %v402_v34 = vpop.f32.mrb[3].mxu0 }
  0xe9   : > { %545 = vst.msk [vmem:[%s838_s28 + $0x90] sm:$0xff] %vm526_vm3, %v472_v27  ;;  %527 = vst.msk [vmem:[%s838_s28] sm:$0xff] %vm526_vm3, %v400_v28  ;;  %v475_v35 = vadd.f32 %v702_v33, %v833_v22  ;;  %v403_v36 = vadd.f32 %v833_v22, %v402_v34  ;;  %v466_v37 = vpop.f32.mrb[3].mxu1 }
  0xea   : > { %543 = vst.msk [vmem:[%s838_s28 + $0x80] sm:$0xff] %vm526_vm3, %v464_v31  ;;  %530 = vst.msk [vmem:[%s838_s28 + $0x18] sm:$0xff] %vm526_vm3, %v411_v32  ;;  %v467_v38 = vadd.f32 %v833_v22, %v466_v37 }
  0xeb   : > { %546 = vst.msk [vmem:[%s838_s28 + $0x98] sm:$0xff] %vm526_vm3, %v475_v35  ;;  %528 = vst.msk [vmem:[%s838_s28 + $0x8] sm:$0xff] %vm526_vm3, %v403_v36 }
  0xec   : > { %544 = vst.msk [vmem:[%s838_s28 + $0x88] sm:$0xff] %vm526_vm3, %v467_v38 }
  0xed   : > { %v689_v39 = vpop.f32.mrb[4].mxu0 }
  0xee   : > { %v424_v40 = vadd.f32 %v689_v39, %v833_v22  ;;  %v705_v41 = vpop.f32.mrb[4].mxu1  ;;  %v415_v42 = vpop.f32.mrb[5].mxu0 }
  0xef   : > { %v488_v43 = vadd.f32 %v705_v41, %v833_v22  ;;  %v416_v44 = vadd.f32 %v833_v22, %v415_v42  ;;  %v479_v45 = vpop.f32.mrb[5].mxu1  ;;  %v690_v46 = vpop.f32.mrb[6].mxu0 }
  0xf0   : > { %533 = vst.msk [vmem:[%s838_s28 + $0x30] sm:$0xff] %vm526_vm3, %v424_v40  ;;  %v480_v47 = vadd.f32 %v833_v22, %v479_v45  ;;  %v427_v48 = vadd.f32 %v690_v46, %v833_v22  ;;  %v706_v49 = vpop.f32.mrb[6].mxu1  ;;  %v418_v50 = vpop.f32.mrb[7].mxu0 }
  0xf1   : > { %549 = vst.msk [vmem:[%s838_s28 + $0xb0] sm:$0xff] %vm526_vm3, %v488_v43  ;;  %531 = vst.msk [vmem:[%s838_s28 + $0x20] sm:$0xff] %vm526_vm3, %v416_v44  ;;  %v491_v51 = vadd.f32 %v706_v49, %v833_v22  ;;  %v419_v52 = vadd.f32 %v833_v22, %v418_v50  ;;  %v482_v53 = vpop.f32.mrb[7].mxu1 }
  0xf2   : > { %547 = vst.msk [vmem:[%s838_s28 + $0xa0] sm:$0xff] %vm526_vm3, %v480_v47  ;;  %534 = vst.msk [vmem:[%s838_s28 + $0x38] sm:$0xff] %vm526_vm3, %v427_v48  ;;  %v483_v54 = vadd.f32 %v833_v22, %v482_v53 }
  0xf3   : > { %550 = vst.msk [vmem:[%s838_s28 + $0xb8] sm:$0xff] %vm526_vm3, %v491_v51  ;;  %532 = vst.msk [vmem:[%s838_s28 + $0x28] sm:$0xff] %vm526_vm3, %v419_v52 }
  0xf4   : > { %548 = vst.msk [vmem:[%s838_s28 + $0xa8] sm:$0xff] %vm526_vm3, %v483_v54 }
  0xf5   : > { %v693_v55 = vpop.f32.mrb[8].mxu0 }
  0xf6   : > { %v440_v56 = vadd.f32 %v693_v55, %v833_v22  ;;  %v709_v57 = vpop.f32.mrb[8].mxu1  ;;  %v431_v58 = vpop.f32.mrb[9].mxu0 }
  0xf7   : > { %v504_v59 = vadd.f32 %v709_v57, %v833_v22  ;;  %v432_v60 = vadd.f32 %v833_v22, %v431_v58  ;;  %v495_v61 = vpop.f32.mrb[9].mxu1  ;;  %v694_v62 = vpop.f32.mrb[10].mxu0 }
  0xf8   : > { %537 = vst.msk [vmem:[%s838_s28 + $0x50] sm:$0xff] %vm526_vm3, %v440_v56  ;;  %v496_v63 = vadd.f32 %v833_v22, %v495_v61  ;;  %v443_v0 = vadd.f32 %v694_v62, %v833_v22  ;;  %v710_v1 = vpop.f32.mrb[10].mxu1  ;;  %v434_v2 = vpop.f32.mrb[11].mxu0 }
  0xf9   : > { %553 = vst.msk [vmem:[%s838_s28 + $0xd0] sm:$0xff] %vm526_vm3, %v504_v59  ;;  %535 = vst.msk [vmem:[%s838_s28 + $0x40] sm:$0xff] %vm526_vm3, %v432_v60  ;;  %v507_v3 = vadd.f32 %v710_v1, %v833_v22  ;;  %v435_v4 = vadd.f32 %v833_v22, %v434_v2  ;;  %v498_v5 = vpop.f32.mrb[11].mxu1 }
  0xfa   : > { %551 = vst.msk [vmem:[%s838_s28 + $0xc0] sm:$0xff] %vm526_vm3, %v496_v63  ;;  %538 = vst.msk [vmem:[%s838_s28 + $0x58] sm:$0xff] %vm526_vm3, %v443_v0  ;;  %v499_v6 = vadd.f32 %v833_v22, %v498_v5 }
  0xfb   : > { %554 = vst.msk [vmem:[%s838_s28 + $0xd8] sm:$0xff] %vm526_vm3, %v507_v3  ;;  %536 = vst.msk [vmem:[%s838_s28 + $0x48] sm:$0xff] %vm526_vm3, %v435_v4 }
  0xfc   : > { %552 = vst.msk [vmem:[%s838_s28 + $0xc8] sm:$0xff] %vm526_vm3, %v499_v6 }
  0xfd   : > { %v697_v7 = vpop.f32.mrb[12].mxu0 }
  0xfe   : > { %v456_v8 = vadd.f32 %v697_v7, %v833_v22  ;;  %v713_v9 = vpop.f32.mrb[12].mxu1  ;;  %v447_v10 = vpop.f32.mrb[13].mxu0 }
  0xff   : > { %v520_v11 = vadd.f32 %v713_v9, %v833_v22  ;;  %v448_v12 = vadd.f32 %v833_v22, %v447_v10  ;;  %v511_v13 = vpop.f32.mrb[13].mxu1  ;;  %v698_v14 = vpop.f32.mrb[14].mxu0 }
 0x100   : > { %541 = vst.msk [vmem:[%s838_s28 + $0x70] sm:$0xff] %vm526_vm3, %v456_v8  ;;  %v512_v15 = vadd.f32 %v833_v22, %v511_v13  ;;  %v459_v16 = vadd.f32 %v698_v14, %v833_v22  ;;  %v714_v17 = vpop.f32.mrb[14].mxu1  ;;  %v450_v18 = vpop.f32.mrb[15].mxu0 }
 0x101   : > { %557 = vst.msk [vmem:[%s838_s28 + $0xf0] sm:$0xff] %vm526_vm3, %v520_v11  ;;  %539 = vst.msk [vmem:[%s838_s28 + $0x60] sm:$0xff] %vm526_vm3, %v448_v12  ;;  %v523_v19 = vadd.f32 %v714_v17, %v833_v22  ;;  %v451_v20 = vadd.f32 %v833_v22, %v450_v18  ;;  %v514_v21 = vpop.f32.mrb[15].mxu1 }
 0x102   : > { %555 = vst.msk [vmem:[%s838_s28 + $0xe0] sm:$0xff] %vm526_vm3, %v512_v15  ;;  %542 = vst.msk [vmem:[%s838_s28 + $0x78] sm:$0xff] %vm526_vm3, %v459_v16  ;;  %v515_v23 = vadd.f32 %v833_v22, %v514_v21 }
 0x103   : > { %558 = vst.msk [vmem:[%s838_s28 + $0xf8] sm:$0xff] %vm526_vm3, %v523_v19  ;;  %540 = vst.msk [vmem:[%s838_s28 + $0x68] sm:$0xff] %vm526_vm3, %v451_v20 }
 0x104   : > { %556 = vst.msk [vmem:[%s838_s28 + $0xe8] sm:$0xff] %vm526_vm3, %v515_v23 }
 0x105 PF: > { %s13_s12 = sadd.s32 1, %s752_s12  }
 0x106   : > { %p10_p4 = scmp.ge.s32.totalorder %s13_s12, 4  }
 0x108   :  { %12 = sbr.rel (!%p10_p4) target bundleno = 1 (0x1), region = 62 }

// kernel: model_forward.20
= control target key start
LH: loop header
LB: loop body
LE: loop exit
PB: predicated region body
PF: predicated region fallthrough
CT: control target
= control target key end

     0   :  { %s846_s12 = smov 0   ;;  %s1019_s0 = inlined_call_operand.vmem [shape: bf16[512,72], index: 0, kind: input, shape index: {}]   ;;  %s1020_s1 = inlined_call_operand.vmem [shape: bf16[72,16], index: 1, kind: input, shape index: {}]   ;;  %s1021_s2 = inlined_call_operand.vmem [shape: f32[1,16], index: 2, kind: input, shape index: {}]   ;;  %s1022_s3 = inlined_call_operand.vmem [shape: f32[512,16], index: 3, kind: output, shape index: {}]  }
   0x1 LB: > { %s665_s13 = sadd.s32 4294967295, %s824_s12   ;;  %p669_p0 = scmp.ge.s32.totalorder %s824_s12, 1  ;;  %s824_s12 = sphi %s846_s12, %s13_s12  }
   0x2   : > { %p138_p1 = scmp.lt.s32.totalorder %s824_s12, 3 }
   0x4   : > { %p139_p2 = pnand %p669_p0, %p138_p1 }
   0x5   : > { %v797_v0 = vld [vmem:[%s1020_s1] sm:$0xff] (!%p139_p2)   ;;  %v798_v1 = vld [vmem:[%s1020_s1 + $0x8] sm:$0xff] (!%p139_p2)   ;;  %s670_s18 = sshll.u32 (!%p139_p2), %s665_s13, 5  ;;  %v799_v2 = vld [vmem:[%s1020_s1 + $0x10] sm:$0xff] (!%p139_p2)   ;;  %vm330_vm0 = vcmask (!%p139_p2), 588800   ;;  %vm379_vm1 = vcmask (!%p139_p2), 1043456  }
   0x6   : > { %142 = sbr.rel (%p139_p2) target bundleno = 270 (0x10e), region = 32  ;;  %735 = vmatprep.subr.bf16.mxu0 (!%p139_p2), %v797_v0  ;;  %777 = vmatprep.subr.bf16.mxu1 (!%p139_p2), %v797_v0  ;;  %p163_p3 = scmp.lt.s32.totalorder (!%p139_p2), %s670_s18, 63  ;;  %v800_v3 = vld [vmem:[%s1020_s1 + $0x18] sm:$0xff] (!%p139_p2)   ;;  %v801_v6 = vld [vmem:[%s1020_s1 + $0x20] ss:$0 sps:$4 sm:$0xff] (!%p139_p2)   ;;  %vm576_vm2 = vcmask (!%p139_p2), 130048  }
   0x7   : > { %736 = vmatpush3.bf16.msra.mxu0 (!%p139_p2), %v797_v0  ;;  %782 = vmatpush3.bf16.msra.mxu1 (!%p139_p2), %v797_v0  ;;  %v381_v7 = vsel (!%p139_p2), %vm379_vm1, %v801_v6, 0  ;;  %v912_v22 = vld [vmem:[%s1021_s2] ss:$0 sm:$0xff] (!%p139_p2) }
   0x8   : > { %737 = vmatprep.subr.bf16.mxu0 (!%p139_p2), %v798_v1  ;;  %778 = vmatprep.subr.bf16.mxu1 (!%p139_p2), %v798_v1 }
   0xb   : > { %738 = vmatpush3.bf16.msra.mxu0 (!%p139_p2), %v798_v1  ;;  %783 = vmatpush3.bf16.msra.mxu1 (!%p139_p2), %v798_v1 }
   0xc   : > { %739 = vmatprep.subr.bf16.mxu0 (!%p139_p2), %v799_v2  ;;  %779 = vmatprep.subr.bf16.mxu1 (!%p139_p2), %v799_v2 }
   0xd   : > { %s1024_s18 = smov (!%p163_p3, %s670_s18), 63 }
   0xe   : > { %s671_s21 = sshll.u32 %s1024_s18, 2  ;;  %s673_s4 = sshll.u32 %s1024_s18, 3 }
   0xf   : > { %s872_s26 = scalar_lea.vmem %s1019_s0, %s671_s21  ;;  %740 = vmatpush3.bf16.msra.mxu0 %v799_v2  ;;  %784 = vmatpush3.bf16.msra.mxu1 %v799_v2  ;;  %s920_s7 = scalar_lea.vmem %s1022_s3, %s673_s4 }
  0x10   : > { %v802_v4 = vld [vmem:[%s872_s26] sm:$0xff]   ;;  %741 = vmatprep.subr.bf16.mxu0 %v800_v3  ;;  %780 = vmatprep.subr.bf16.mxu1 %v800_v3  ;;  %v804_v8 = vld [vmem:[%s872_s26 + $0x8] sm:$0xff]   ;;  %v806_v10 = vld [vmem:[%s872_s26 + $0x10] sm:$0xff]  }
  0x11   : > { %v803_v5 = vld [vmem:[%s872_s26 + $0x40] sm:$0xff]   ;;  %745 = vmatprep.mubr.msk.bf16.mxu0 %vm330_vm0, %v802_v4  ;;  %v805_v9 = vld [vmem:[%s872_s26 + $0x48] sm:$0xff]   ;;  %v807_v11 = vld [vmem:[%s872_s26 + $0x50] sm:$0xff]  }
  0x12   : > { %761 = vmatprep.mubr.msk.bf16.mxu1 %vm330_vm0, %v803_v5  ;;  %v808_v12 = vld [vmem:[%s872_s26 + $0x18] sm:$0xff]   ;;  %v810_v14 = vld [vmem:[%s872_s26 + $0x20] sm:$0xff]   ;;  %v812_v16 = vld [vmem:[%s872_s26 + $0x28] sm:$0xff]  }
  0x13   : > { %742 = vmatpush3.bf16.msra.mxu0 %v800_v3  ;;  %785 = vmatpush3.bf16.msra.mxu1 %v800_v3  ;;  %v809_v13 = vld [vmem:[%s872_s26 + $0x58] sm:$0xff]   ;;  %v811_v15 = vld [vmem:[%s872_s26 + $0x60] sm:$0xff]   ;;  %v813_v17 = vld [vmem:[%s872_s26 + $0x68] sm:$0xff]  }
  0x14   : > { %787 = vmatprep.subr.msk.bf16.mxu0 %vm379_vm1, %v801_v6  ;;  %788 = vmatprep.subr.msk.bf16.mxu1 %vm379_vm1, %v801_v6  ;;  %v814_v18 = vld [vmem:[%s872_s26 + $0x30] sm:$0xff]   ;;  %v816_v20 = vld [vmem:[%s872_s26 + $0x38] sm:$0xff]  }
  0x15   : > { %v815_v19 = vld [vmem:[%s872_s26 + $0x70] sm:$0xff]   ;;  %v817_v21 = vld [vmem:[%s872_s26 + $0x78] sm:$0xff]  }
  0x17   : > { %744 = vmatpush3.bf16.msra.mxu0 %v381_v7  ;;  %786 = vmatpush3.bf16.msra.mxu1 %v381_v7 }
  0x1a   : > { %746 = vmatmul.mubr.msk.bf16.vlgmr.msra.gmra.mrb[0].mxu0 %vm330_vm0, %v804_v8  ;;  %762 = vmatmul.mubr.msk.bf16.vlgmr.msra.gmra.mrb[0].mxu1 %vm330_vm0, %v805_v9 }
  0x1b   : > { %749 = vmatprep.mubr.msk.bf16.mxu0 %vm330_vm0, %v806_v10  ;;  %765 = vmatprep.mubr.msk.bf16.mxu1 %vm330_vm0, %v807_v11 }
  0x22   : > { %750 = vmatmul.mubr.msk.bf16.gmra.mrb[4].mxu0 %vm330_vm0, %v808_v12  ;;  %766 = vmatmul.mubr.msk.bf16.gmra.mrb[4].mxu1 %vm330_vm0, %v809_v13 }
  0x23   : > { %753 = vmatprep.mubr.msk.bf16.mxu0 %vm330_vm0, %v810_v14  ;;  %769 = vmatprep.mubr.msk.bf16.mxu1 %vm330_vm0, %v811_v15 }
  0x2a   : > { %754 = vmatmul.mubr.msk.bf16.gmra.mrb[8].mxu0 %vm330_vm0, %v812_v16  ;;  %770 = vmatmul.mubr.msk.bf16.gmra.mrb[8].mxu1 %vm330_vm0, %v813_v17 }
  0x2b   : > { %757 = vmatprep.mubr.msk.bf16.mxu0 %vm330_vm0, %v814_v18  ;;  %773 = vmatprep.mubr.msk.bf16.mxu1 %vm330_vm0, %v815_v19 }
  0x32   : > { %758 = vmatmul.mubr.msk.bf16.gmra.mrb[12].mxu0 %vm330_vm0, %v816_v20  ;;  %774 = vmatmul.mubr.msk.bf16.gmra.mrb[12].mxu1 %vm330_vm0, %v817_v21 }
  0xed   : > { %v747_v23 = vpop.f32.mrb[0].mxu0  ;;  %v763_v24 = vpop.f32.mrb[0].mxu1 }
  0xee   : > { %v426_v25 = vadd.f32 %v747_v23, %v912_v22  ;;  %v490_v26 = vadd.f32 %v763_v24, %v912_v22  ;;  %v417_v27 = vpop.f32.mrb[1].mxu0  ;;  %v481_v28 = vpop.f32.mrb[1].mxu1 }
  0xef   : > { %v418_v29 = vadd.f32 %v912_v22, %v417_v27  ;;  %v482_v30 = vadd.f32 %v912_v22, %v481_v28  ;;  %v748_v31 = vpop.f32.mrb[2].mxu0  ;;  %v764_v32 = vpop.f32.mrb[2].mxu1 }
  0xf0   : > { %v546_v33 = vmax.f32 %v426_v25, 0.0  ;;  %v562_v34 = vmax.f32 %v490_v26, 0.0  ;;  %v429_v35 = vadd.f32 %v748_v31, %v912_v22  ;;  %v493_v36 = vadd.f32 %v764_v32, %v912_v22  ;;  %v420_v37 = vpop.f32.mrb[3].mxu0  ;;  %v484_v38 = vpop.f32.mrb[3].mxu1 }
  0xf1   : > { %v544_v39 = vmax.f32 %v418_v29, 0.0  ;;  %v560_v40 = vmax.f32 %v482_v30, 0.0  ;;  %v421_v41 = vadd.f32 %v912_v22, %v420_v37  ;;  %v485_v42 = vadd.f32 %v912_v22, %v484_v38 }
  0xf2   : > { %579 = vst.msk [vmem:[%s920_s7 + $0x10] sm:$0xff] %vm576_vm2, %v546_v33  ;;  %595 = vst.msk [vmem:[%s920_s7 + $0x90] sm:$0xff] %vm576_vm2, %v562_v34  ;;  %v547_v43 = vmax.f32 %v429_v35, 0.0  ;;  %v563_v44 = vmax.f32 %v493_v36, 0.0 }
  0xf3   : > { %577 = vst.msk [vmem:[%s920_s7] sm:$0xff] %vm576_vm2, %v544_v39  ;;  %593 = vst.msk [vmem:[%s920_s7 + $0x80] sm:$0xff] %vm576_vm2, %v560_v40  ;;  %v545_v45 = vmax.f32 %v421_v41, 0.0  ;;  %v561_v46 = vmax.f32 %v485_v42, 0.0 }
  0xf4   : > { %580 = vst.msk [vmem:[%s920_s7 + $0x18] sm:$0xff] %vm576_vm2, %v547_v43  ;;  %596 = vst.msk [vmem:[%s920_s7 + $0x98] sm:$0xff] %vm576_vm2, %v563_v44 }
  0xf5   : > { %578 = vst.msk [vmem:[%s920_s7 + $0x8] sm:$0xff] %vm576_vm2, %v545_v45  ;;  %594 = vst.msk [vmem:[%s920_s7 + $0x88] sm:$0xff] %vm576_vm2, %v561_v46  ;;  %v751_v47 = vpop.f32.mrb[4].mxu0  ;;  %v767_v48 = vpop.f32.mrb[4].mxu1 }
  0xf6   : > { %v442_v49 = vadd.f32 %v751_v47, %v912_v22  ;;  %v506_v50 = vadd.f32 %v767_v48, %v912_v22  ;;  %v433_v51 = vpop.f32.mrb[5].mxu0  ;;  %v497_v52 = vpop.f32.mrb[5].mxu1 }
  0xf7   : > { %v434_v53 = vadd.f32 %v912_v22, %v433_v51  ;;  %v498_v54 = vadd.f32 %v912_v22, %v497_v52  ;;  %v752_v55 = vpop.f32.mrb[6].mxu0  ;;  %v768_v56 = vpop.f32.mrb[6].mxu1 }
  0xf8   : > { %v550_v57 = vmax.f32 %v442_v49, 0.0  ;;  %v566_v58 = vmax.f32 %v506_v50, 0.0  ;;  %v445_v59 = vadd.f32 %v752_v55, %v912_v22  ;;  %v509_v60 = vadd.f32 %v768_v56, %v912_v22  ;;  %v436_v61 = vpop.f32.mrb[7].mxu0  ;;  %v500_v62 = vpop.f32.mrb[7].mxu1 }
  0xf9   : > { %v548_v63 = vmax.f32 %v434_v53, 0.0  ;;  %v564_v0 = vmax.f32 %v498_v54, 0.0  ;;  %v437_v1 = vadd.f32 %v912_v22, %v436_v61  ;;  %v501_v2 = vadd.f32 %v912_v22, %v500_v62 }
  0xfa   : > { %583 = vst.msk [vmem:[%s920_s7 + $0x30] sm:$0xff] %vm576_vm2, %v550_v57  ;;  %599 = vst.msk [vmem:[%s920_s7 + $0xb0] sm:$0xff] %vm576_vm2, %v566_v58  ;;  %v551_v3 = vmax.f32 %v445_v59, 0.0  ;;  %v567_v4 = vmax.f32 %v509_v60, 0.0 }
  0xfb   : > { %581 = vst.msk [vmem:[%s920_s7 + $0x20] sm:$0xff] %vm576_vm2, %v548_v63  ;;  %597 = vst.msk [vmem:[%s920_s7 + $0xa0] sm:$0xff] %vm576_vm2, %v564_v0  ;;  %v549_v5 = vmax.f32 %v437_v1, 0.0  ;;  %v565_v6 = vmax.f32 %v501_v2, 0.0 }
  0xfc   : > { %584 = vst.msk [vmem:[%s920_s7 + $0x38] sm:$0xff] %vm576_vm2, %v551_v3  ;;  %600 = vst.msk [vmem:[%s920_s7 + $0xb8] sm:$0xff] %vm576_vm2, %v567_v4 }
  0xfd   : > { %582 = vst.msk [vmem:[%s920_s7 + $0x28] sm:$0xff] %vm576_vm2, %v549_v5  ;;  %598 = vst.msk [vmem:[%s920_s7 + $0xa8] sm:$0xff] %vm576_vm2, %v565_v6  ;;  %v755_v7 = vpop.f32.mrb[8].mxu0  ;;  %v771_v8 = vpop.f32.mrb[8].mxu1 }
  0xfe   : > { %v458_v9 = vadd.f32 %v755_v7, %v912_v22  ;;  %v522_v10 = vadd.f32 %v771_v8, %v912_v22  ;;  %v449_v11 = vpop.f32.mrb[9].mxu0  ;;  %v513_v12 = vpop.f32.mrb[9].mxu1 }
  0xff   : > { %v450_v13 = vadd.f32 %v912_v22, %v449_v11  ;;  %v514_v14 = vadd.f32 %v912_v22, %v513_v12  ;;  %v756_v15 = vpop.f32.mrb[10].mxu0  ;;  %v772_v16 = vpop.f32.mrb[10].mxu1 }
 0x100   : > { %v554_v17 = vmax.f32 %v458_v9, 0.0  ;;  %v570_v18 = vmax.f32 %v522_v10, 0.0  ;;  %v461_v19 = vadd.f32 %v756_v15, %v912_v22  ;;  %v525_v20 = vadd.f32 %v772_v16, %v912_v22  ;;  %v452_v21 = vpop.f32.mrb[11].mxu0  ;;  %v516_v23 = vpop.f32.mrb[11].mxu1 }
 0x101   : > { %v552_v24 = vmax.f32 %v450_v13, 0.0  ;;  %v568_v25 = vmax.f32 %v514_v14, 0.0  ;;  %v453_v26 = vadd.f32 %v912_v22, %v452_v21  ;;  %v517_v27 = vadd.f32 %v912_v22, %v516_v23 }
 0x102   : > { %587 = vst.msk [vmem:[%s920_s7 + $0x50] sm:$0xff] %vm576_vm2, %v554_v17  ;;  %603 = vst.msk [vmem:[%s920_s7 + $0xd0] sm:$0xff] %vm576_vm2, %v570_v18  ;;  %v555_v28 = vmax.f32 %v461_v19, 0.0  ;;  %v571_v29 = vmax.f32 %v525_v20, 0.0 }
 0x103   : > { %585 = vst.msk [vmem:[%s920_s7 + $0x40] sm:$0xff] %vm576_vm2, %v552_v24  ;;  %601 = vst.msk [vmem:[%s920_s7 + $0xc0] sm:$0xff] %vm576_vm2, %v568_v25  ;;  %v553_v30 = vmax.f32 %v453_v26, 0.0  ;;  %v569_v31 = vmax.f32 %v517_v27, 0.0 }
 0x104   : > { %588 = vst.msk [vmem:[%s920_s7 + $0x58] sm:$0xff] %vm576_vm2, %v555_v28  ;;  %604 = vst.msk [vmem:[%s920_s7 + $0xd8] sm:$0xff] %vm576_vm2, %v571_v29 }
 0x105   : > { %586 = vst.msk [vmem:[%s920_s7 + $0x48] sm:$0xff] %vm576_vm2, %v553_v30  ;;  %602 = vst.msk [vmem:[%s920_s7 + $0xc8] sm:$0xff] %vm576_vm2, %v569_v31  ;;  %v759_v32 = vpop.f32.mrb[12].mxu0  ;;  %v775_v33 = vpop.f32.mrb[12].mxu1 }
 0x106   : > { %v474_v34 = vadd.f32 %v759_v32, %v912_v22  ;;  %v538_v35 = vadd.f32 %v775_v33, %v912_v22  ;;  %v465_v36 = vpop.f32.mrb[13].mxu0  ;;  %v529_v37 = vpop.f32.mrb[13].mxu1 }
 0x107   : > { %v466_v38 = vadd.f32 %v912_v22, %v465_v36  ;;  %v530_v39 = vadd.f32 %v912_v22, %v529_v37  ;;  %v760_v40 = vpop.f32.mrb[14].mxu0  ;;  %v776_v41 = vpop.f32.mrb[14].mxu1 }
 0x108   : > { %v558_v42 = vmax.f32 %v474_v34, 0.0  ;;  %v574_v43 = vmax.f32 %v538_v35, 0.0  ;;  %v477_v44 = vadd.f32 %v760_v40, %v912_v22  ;;  %v541_v45 = vadd.f32 %v776_v41, %v912_v22  ;;  %v468_v46 = vpop.f32.mrb[15].mxu0  ;;  %v532_v47 = vpop.f32.mrb[15].mxu1 }
 0x109   : > { %v556_v48 = vmax.f32 %v466_v38, 0.0  ;;  %v572_v49 = vmax.f32 %v530_v39, 0.0  ;;  %v469_v50 = vadd.f32 %v912_v22, %v468_v46  ;;  %v533_v51 = vadd.f32 %v912_v22, %v532_v47 }
 0x10a   : > { %591 = vst.msk [vmem:[%s920_s7 + $0x70] sm:$0xff] %vm576_vm2, %v558_v42  ;;  %607 = vst.msk [vmem:[%s920_s7 + $0xf0] sm:$0xff] %vm576_vm2, %v574_v43  ;;  %v559_v52 = vmax.f32 %v477_v44, 0.0  ;;  %v575_v53 = vmax.f32 %v541_v45, 0.0 }
 0x10b   : > { %589 = vst.msk [vmem:[%s920_s7 + $0x60] sm:$0xff] %vm576_vm2, %v556_v48  ;;  %605 = vst.msk [vmem:[%s920_s7 + $0xe0] sm:$0xff] %vm576_vm2, %v572_v49  ;;  %v557_v54 = vmax.f32 %v469_v50, 0.0  ;;  %v573_v55 = vmax.f32 %v533_v51, 0.0 }
 0x10c   : > { %592 = vst.msk [vmem:[%s920_s7 + $0x78] sm:$0xff] %vm576_vm2, %v559_v52  ;;  %608 = vst.msk [vmem:[%s920_s7 + $0xf8] sm:$0xff] %vm576_vm2, %v575_v53 }
 0x10d   : > { %590 = vst.msk [vmem:[%s920_s7 + $0x68] sm:$0xff] %vm576_vm2, %v557_v54  ;;  %606 = vst.msk [vmem:[%s920_s7 + $0xe8] sm:$0xff] %vm576_vm2, %v573_v55 }
 0x10e PF: > { %s13_s12 = sadd.s32 1, %s824_s12  }
 0x10f   : > { %p10_p4 = scmp.ge.s32.totalorder %s13_s12, 4  }
 0x111   :  { %12 = sbr.rel (!%p10_p4) target bundleno = 1 (0x1), region = 62 }

// kernel: model_forward.21
= control target key start
LH: loop header
LB: loop body
LE: loop exit
PB: predicated region body
PF: predicated region fallthrough
CT: control target
= control target key end

     0   :  { %s1118_s20 = smov 0   ;;  %s1391_s0 = inlined_call_operand.vmem [shape: bf16[512,144], index: 0, kind: input, shape index: {}]   ;;  %s1392_s1 = inlined_call_operand.vmem [shape: bf16[144,8], index: 1, kind: input, shape index: {}]   ;;  %s1393_s2 = inlined_call_operand.vmem [shape: f32[1,8], index: 2, kind: input, shape index: {}]   ;;  %s1394_s3 = inlined_call_operand.vmem [shape: f32[512,8], index: 3, kind: input, shape index: {}]   ;;  %s1395_s4 = inlined_call_operand.<no memory space> [shape: f32[1], index: 4, kind: input, shape index: {}]   ;;  %s1396_s5 = inlined_call_operand.vmem [shape: f32[512,8], index: 5, kind: output, shape index: {}]  }
   0x1   :  { %10 = sst [smem:[#allocation2]] %s1395_s4 }
   0x2 LB: > { %s919_s21 = sadd.s32 4294967295, %s1082_s20   ;;  %p923_p0 = scmp.ge.s32.totalorder %s1082_s20, 1  ;;  %s1082_s20 = sphi %s1118_s20, %s16_s20  }
   0x3   : > { %p201_p1 = scmp.lt.s32.totalorder %s1082_s20, 3 }
   0x5   : > { %p202_p2 = pnand %p923_p0, %p201_p1 }
   0x6   : > { %v1019_v0 = vld [vmem:[%s1392_s1] sm:$0xff] (!%p202_p2)   ;;  %v1084_v1 = vmov (!%p202_p2), 0   ;;  %s924_s4 = sshll.u32 (!%p202_p2), %s919_s21, 5  ;;  %v1020_v2 = vld [vmem:[%s1392_s1 + $0x8] sm:$0xff] (!%p202_p2)   ;;  %v1021_v3 = vld [vmem:[%s1392_s1 + $0x10] sm:$0xff] (!%p202_p2)   ;;  %vm510_vm0 = vcmask (!%p202_p2), 130048  }
   0x7   : > { %205 = sbr.rel (%p202_p2) target bundleno = 318 (0x13e), region = 40  ;;  %559 = vmatprep.subr.bf16.mxu0 (!%p202_p2), %v1084_v1  ;;  %992 = vmatprep.subr.bf16.mxu1 (!%p202_p2), %v1084_v1  ;;  %p236_p3 = scmp.lt.s32.totalorder (!%p202_p2), %s924_s4, 63  ;;  %v1022_v4 = vld [vmem:[%s1392_s1 + $0x18] sm:$0xff] (!%p202_p2)   ;;  %v1023_v7 = vld [vmem:[%s1392_s1 + $0x20] sm:$0xff] (!%p202_p2)   ;;  %v1024_v8 = vld [vmem:[%s1392_s1 + $0x28] sm:$0xff] (!%p202_p2)   ;;  %vm818_vm1 = vcmask (!%p202_p2), 64512  }
   0x8   : > { %560 = vmatpush1.bf16.msra.mxu0 (!%p202_p2), %v1019_v0  ;;  %1001 = vmatpush1.bf16.msra.mxu1 (!%p202_p2), %v1019_v0  ;;  %v1025_v9 = vld [vmem:[%s1392_s1 + $0x30] sm:$0xff] (!%p202_p2)   ;;  %v1026_v10 = vld [vmem:[%s1392_s1 + $0x38] sm:$0xff] (!%p202_p2)   ;;  %v1027_v11 = vld [vmem:[%s1392_s1 + $0x40] sm:$0xff] (!%p202_p2)   ;;  %s720_s19 = sld [smem:[#allocation2]] (!%p202_p2) }
   0x9   : > { %561 = vmatprep.subr.bf16.mxu0 (!%p202_p2), %v1084_v1  ;;  %993 = vmatprep.subr.bf16.mxu1 (!%p202_p2), %v1084_v1  ;;  %v1222_v45 = vld [vmem:[%s1393_s2] ss:$0 sm:$0xff] (!%p202_p2) }
   0xc   : > { %562 = vmatpush1.bf16.msra.mxu0 (!%p202_p2), %v1020_v2  ;;  %1002 = vmatpush1.bf16.msra.mxu1 (!%p202_p2), %v1020_v2 }
   0xd   : > { %563 = vmatprep.subr.bf16.mxu0 (!%p202_p2), %v1084_v1  ;;  %994 = vmatprep.subr.bf16.mxu1 (!%p202_p2), %v1084_v1 }
   0xe   : > { %s1398_s4 = smov (!%p236_p3, %s924_s4), 63  ;;  %v1216_v43 = vstv %s720_s19 }
   0xf   : > { %s1135_s28 = sshll.u32 %s1398_s4, 3 }
  0x10   : > { %s1141_s6 = scalar_lea.vmem %s1391_s0, %s1135_s28  ;;  %564 = vmatpush1.bf16.msra.mxu0 %v1021_v3  ;;  %1003 = vmatpush1.bf16.msra.mxu1 %v1021_v3  ;;  %s1213_s23 = scalar_lea.vmem %s1394_s3, %s1135_s28 }
  0x11   : > { %v1030_v5 = vld [vmem:[%s1141_s6 + $0x4] ss:$8 sps:$4 sm:$0xff]   ;;  %565 = vmatprep.subr.bf16.mxu0 %v1084_v1  ;;  %995 = vmatprep.subr.bf16.mxu1 %v1084_v1  ;;  %v1028_v12 = vld [vmem:[%s1141_s6] ss:$8 sps:$4 sm:$0xff]   ;;  %v1034_v14 = vld [vmem:[%s1141_s6 + $0x14] ss:$8 sps:$4 sm:$0xff]   ;;  %s1236_s27 = scalar_lea.vmem %s1396_s5, %s1135_s28 }
  0x12   : > { %v1033_v6 = vld [vmem:[%s1141_s6 + $0x84] ss:$8 sps:$4 sm:$0xff]   ;;  %973 = vmatprep.mubr.msk.bf16.mxu0 %vm510_vm0, %v1030_v5  ;;  %v1031_v13 = vld [vmem:[%s1141_s6 + $0x80] ss:$8 sps:$4 sm:$0xff]   ;;  %v1036_v15 = vld [vmem:[%s1141_s6 + $0x94] ss:$8 sps:$4 sm:$0xff]  }
  0x13   : > { %981 = vmatprep.mubr.msk.bf16.mxu1 %vm510_vm0, %v1033_v6  ;;  %v1038_v16 = vld [vmem:[%s1141_s6 + $0x10] ss:$8 sps:$4 sm:$0xff]   ;;  %v1040_v18 = vld [vmem:[%s1141_s6 + $0x24] ss:$8 sps:$4 sm:$0xff]   ;;  %v1044_v20 = vld [vmem:[%s1141_s6 + $0x20] ss:$8 sps:$4 sm:$0xff]  }
  0x14   : > { %566 = vmatpush1.bf16.msra.mxu0 %v1022_v4  ;;  %1004 = vmatpush1.bf16.msra.mxu1 %v1022_v4  ;;  %v1039_v17 = vld [vmem:[%s1141_s6 + $0x90] ss:$8 sps:$4 sm:$0xff]   ;;  %v1042_v19 = vld [vmem:[%s1141_s6 + $0xa4] ss:$8 sps:$4 sm:$0xff]   ;;  %v1045_v21 = vld [vmem:[%s1141_s6 + $0xa0] ss:$8 sps:$4 sm:$0xff]  }
  0x15   : > { %567 = vmatprep.subr.bf16.mxu0 %v1084_v1  ;;  %996 = vmatprep.subr.bf16.mxu1 %v1084_v1  ;;  %v1046_v22 = vld [vmem:[%s1141_s6 + $0x34] ss:$8 sps:$4 sm:$0xff]   ;;  %v1050_v24 = vld [vmem:[%s1141_s6 + $0x30] ss:$8 sps:$4 sm:$0xff]   ;;  %v1052_v26 = vld [vmem:[%s1141_s6 + $0x44] ss:$8 sps:$4 sm:$0xff]  }
  0x16   : > { %v1048_v23 = vld [vmem:[%s1141_s6 + $0xb4] ss:$8 sps:$4 sm:$0xff]   ;;  %v1051_v25 = vld [vmem:[%s1141_s6 + $0xb0] ss:$8 sps:$4 sm:$0xff]   ;;  %v1054_v27 = vld [vmem:[%s1141_s6 + $0xc4] ss:$8 sps:$4 sm:$0xff]  }
  0x17   : > { %v1056_v28 = vld [vmem:[%s1141_s6 + $0x40] ss:$8 sps:$4 sm:$0xff]   ;;  %v1058_v30 = vld [vmem:[%s1141_s6 + $0x54] ss:$8 sps:$4 sm:$0xff]   ;;  %v1062_v32 = vld [vmem:[%s1141_s6 + $0x50] ss:$8 sps:$4 sm:$0xff]  }
  0x18   : > { %568 = vmatpush1.bf16.msra.mxu0 %v1023_v7  ;;  %1005 = vmatpush1.bf16.msra.mxu1 %v1023_v7  ;;  %v1057_v29 = vld [vmem:[%s1141_s6 + $0xc0] ss:$8 sps:$4 sm:$0xff]   ;;  %v1060_v31 = vld [vmem:[%s1141_s6 + $0xd4] ss:$8 sps:$4 sm:$0xff]   ;;  %v1063_v33 = vld [vmem:[%s1141_s6 + $0xd0] ss:$8 sps:$4 sm:$0xff]  }
  0x19   : > { %569 = vmatprep.subr.bf16.mxu0 %v1084_v1  ;;  %997 = vmatprep.subr.bf16.mxu1 %v1084_v1  ;;  %v1064_v34 = vld [vmem:[%s1141_s6 + $0x64] ss:$8 sps:$4 sm:$0xff]   ;;  %v1068_v36 = vld [vmem:[%s1141_s6 + $0x60] ss:$8 sps:$4 sm:$0xff]   ;;  %v1070_v38 = vld [vmem:[%s1141_s6 + $0x74] ss:$8 sps:$4 sm:$0xff]  }
  0x1a   : > { %v1066_v35 = vld [vmem:[%s1141_s6 + $0xe4] ss:$8 sps:$4 sm:$0xff]   ;;  %v1069_v37 = vld [vmem:[%s1141_s6 + $0xe0] ss:$8 sps:$4 sm:$0xff]   ;;  %v1072_v39 = vld [vmem:[%s1141_s6 + $0xf4] ss:$8 sps:$4 sm:$0xff]  }
  0x1b   : > { %v1074_v40 = vld [vmem:[%s1141_s6 + $0x70] ss:$8 sps:$4 sm:$0xff]   ;;  %v721_v42 = vld [vmem:[%s1213_s23] sm:$0xff]  ;;  %v722_v46 = vld [vmem:[%s1213_s23 + $0x8] sm:$0xff] }
  0x1c   : > { %570 = vmatpush1.bf16.msra.mxu0 %v1024_v8  ;;  %1006 = vmatpush1.bf16.msra.mxu1 %v1024_v8  ;;  %v1075_v41 = vld [vmem:[%s1141_s6 + $0xf0] ss:$8 sps:$4 sm:$0xff]   ;;  %v737_v44 = vld [vmem:[%s1213_s23 + $0x80] sm:$0xff]  ;;  %v738_v47 = vld [vmem:[%s1213_s23 + $0x88] sm:$0xff]  ;;  %v754_v48 = vmul.f32 %v1216_v43, %v721_v42  ;;  %v755_v56 = vmul.f32 %v1216_v43, %v722_v46 }
  0x1d   : > { %571 = vmatprep.subr.bf16.mxu0 %v1084_v1  ;;  %998 = vmatprep.subr.bf16.mxu1 %v1084_v1  ;;  %v770_v49 = vmul.f32 %v1216_v43, %v737_v44  ;;  %v771_v57 = vmul.f32 %v1216_v43, %v738_v47  ;;  %v723_v2 = vld [vmem:[%s1213_s23 + $0x10] sm:$0xff]  ;;  %v724_v6 = vld [vmem:[%s1213_s23 + $0x18] sm:$0xff] }
  0x1e   : > { %v739_v3 = vld [vmem:[%s1213_s23 + $0x90] sm:$0xff]  ;;  %v740_v7 = vld [vmem:[%s1213_s23 + $0x98] sm:$0xff]  ;;  %v756_v8 = vmul.f32 %v1216_v43, %v723_v2 }
  0x20   : > { %572 = vmatpush1.bf16.msra.mxu0 %v1025_v9  ;;  %1007 = vmatpush1.bf16.msra.mxu1 %v1025_v9  ;;  %v772_v9 = vmul.f32 %v1216_v43, %v739_v3 }
  0x21   : > { %573 = vmatprep.subr.bf16.mxu0 %v1084_v1  ;;  %999 = vmatprep.subr.bf16.mxu1 %v1084_v1 }
  0x24   : > { %574 = vmatpush1.bf16.msra.mxu0 %v1026_v10  ;;  %1008 = vmatpush1.bf16.msra.mxu1 %v1026_v10 }
  0x25   : > { %575 = vmatprep.subr.bf16.mxu0 %v1084_v1  ;;  %1000 = vmatprep.subr.bf16.mxu1 %v1084_v1 }
  0x28   : > { %576 = vmatpush1.bf16.msra.mxu0 %v1027_v11  ;;  %1009 = vmatpush1.bf16.msra.mxu1 %v1027_v11 }
  0x2b   : > { %592 = vmatmul.mubr.bf16.vlgmr.msra.gmra.mrb[0].mxu0 %v1028_v12  ;;  %656 = vmatmul.mubr.bf16.vlgmr.msra.gmra.mrb[0].mxu1 %v1031_v13 }
  0x2c   : > { %974 = vmatprep.mubr.msk.bf16.mxu0 %vm510_vm0, %v1034_v14  ;;  %982 = vmatprep.mubr.msk.bf16.mxu1 %vm510_vm0, %v1036_v15 }
  0x33   : > { %600 = vmatmul.mubr.bf16.gmra.mrb[4].mxu0 %v1038_v16  ;;  %664 = vmatmul.mubr.bf16.gmra.mrb[4].mxu1 %v1039_v17  ;;  %v757_v16 = vmul.f32 %v1216_v43, %v724_v6  ;;  %v773_v17 = vmul.f32 %v1216_v43, %v740_v7 }
  0x34   : > { %975 = vmatprep.mubr.msk.bf16.mxu0 %vm510_vm0, %v1040_v18  ;;  %983 = vmatprep.mubr.msk.bf16.mxu1 %vm510_vm0, %v1042_v19 }
  0x3b   : > { %608 = vmatmul.mubr.bf16.gmra.mrb[8].mxu0 %v1044_v20  ;;  %672 = vmatmul.mubr.bf16.gmra.mrb[8].mxu1 %v1045_v21 }
  0x3c   : > { %976 = vmatprep.mubr.msk.bf16.mxu0 %vm510_vm0, %v1046_v22  ;;  %984 = vmatprep.mubr.msk.bf16.mxu1 %vm510_vm0, %v1048_v23 }
  0x43   : > { %616 = vmatmul.mubr.bf16.gmra.mrb[12].mxu0 %v1050_v24  ;;  %680 = vmatmul.mubr.bf16.gmra.mrb[12].mxu1 %v1051_v25 }
  0x44   : > { %977 = vmatprep.mubr.msk.bf16.mxu0 %vm510_vm0, %v1052_v26  ;;  %985 = vmatprep.mubr.msk.bf16.mxu1 %vm510_vm0, %v1054_v27  ;;  %v725_v26 = vld [vmem:[%s1213_s23 + $0x20] sm:$0xff] }
  0x45   : > { %v741_v27 = vld [vmem:[%s1213_s23 + $0xa0] sm:$0xff] }
  0x4b   : > { %624 = vmatmul.mubr.bf16.gmra.mrb[16].mxu0 %v1056_v28  ;;  %688 = vmatmul.mubr.bf16.gmra.mrb[16].mxu1 %v1057_v29 }
  0x4c   : > { %978 = vmatprep.mubr.msk.bf16.mxu0 %vm510_vm0, %v1058_v30  ;;  %986 = vmatprep.mubr.msk.bf16.mxu1 %vm510_vm0, %v1060_v31  ;;  %v726_v30 = vld [vmem:[%s1213_s23 + $0x28] sm:$0xff] }
  0x4d   : > { %v742_v31 = vld [vmem:[%s1213_s23 + $0xa8] sm:$0xff] }
  0x53   : > { %632 = vmatmul.mubr.bf16.gmra.mrb[20].mxu0 %v1062_v32  ;;  %696 = vmatmul.mubr.bf16.gmra.mrb[20].mxu1 %v1063_v33  ;;  %v758_v32 = vmul.f32 %v1216_v43, %v725_v26  ;;  %v774_v33 = vmul.f32 %v1216_v43, %v741_v27 }
  0x54   : > { %979 = vmatprep.mubr.msk.bf16.mxu0 %vm510_vm0, %v1064_v34  ;;  %987 = vmatprep.mubr.msk.bf16.mxu1 %vm510_vm0, %v1066_v35 }
  0x5b   : > { %640 = vmatmul.mubr.bf16.gmra.mrb[24].mxu0 %v1068_v36  ;;  %704 = vmatmul.mubr.bf16.gmra.mrb[24].mxu1 %v1069_v37 }
  0x5c   : > { %980 = vmatprep.mubr.msk.bf16.mxu0 %vm510_vm0, %v1070_v38  ;;  %988 = vmatprep.mubr.msk.bf16.mxu1 %vm510_vm0, %v1072_v39 }
  0x63   : > { %648 = vmatmul.mubr.bf16.gmra.mrb[28].mxu0 %v1074_v40  ;;  %712 = vmatmul.mubr.bf16.gmra.mrb[28].mxu1 %v1075_v41  ;;  %v759_v40 = vmul.f32 %v1216_v43, %v726_v30  ;;  %v775_v41 = vmul.f32 %v1216_v43, %v742_v31 }
  0xfe   : > { %v593_v50 = vpop.f32.mrb[0].mxu0  ;;  %v657_v51 = vpop.f32.mrb[0].mxu1 }
  0xff   : > { %v594_v52 = vadd.f32 %v1222_v45, %v593_v50  ;;  %v658_v53 = vadd.f32 %v1222_v45, %v657_v51  ;;  %v595_v54 = vpop.f32.mrb[1].mxu0  ;;  %v659_v55 = vpop.f32.mrb[1].mxu1 }
 0x100   : > { %v596_v58 = vpop.f32.mrb[2].mxu0  ;;  %v660_v59 = vpop.f32.mrb[2].mxu1 }
 0x101   : > { %v786_v60 = vadd.f32 %v754_v48, %v594_v52  ;;  %v802_v61 = vadd.f32 %v770_v49, %v658_v53  ;;  %v597_v62 = vadd.f32 %v1222_v45, %v596_v58  ;;  %v661_v63 = vadd.f32 %v1222_v45, %v660_v59  ;;  %v598_v0 = vpop.f32.mrb[3].mxu0  ;;  %v662_v1 = vpop.f32.mrb[3].mxu1  ;;  %v727_v52 = vld [vmem:[%s1213_s23 + $0x30] sm:$0xff] }
 0x102   : > { %v743_v53 = vld [vmem:[%s1213_s23 + $0xb0] sm:$0xff]  ;;  %v760_v58 = vmul.f32 %v1216_v43, %v727_v52 }
 0x103   : > { %819 = vst.msk [vmem:[%s1236_s27] sm:$0xff] %vm818_vm1, %v786_v60  ;;  %835 = vst.msk [vmem:[%s1236_s27 + $0x80] sm:$0xff] %vm818_vm1, %v802_v61  ;;  %v787_v4 = vadd.f32 %v755_v56, %v597_v62  ;;  %v803_v5 = vadd.f32 %v771_v57, %v661_v63  ;;  %v728_v56 = vld [vmem:[%s1213_s23 + $0x38] sm:$0xff]  ;;  %v776_v59 = vmul.f32 %v1216_v43, %v743_v53 }
 0x104   : > { %v744_v57 = vld [vmem:[%s1213_s23 + $0xb8] sm:$0xff]  ;;  %v761_v2 = vmul.f32 %v1216_v43, %v728_v56 }
 0x105   : > { %820 = vst.msk [vmem:[%s1236_s27 + $0x8] sm:$0xff] %vm818_vm1, %v787_v4  ;;  %836 = vst.msk [vmem:[%s1236_s27 + $0x88] sm:$0xff] %vm818_vm1, %v803_v5  ;;  %v777_v3 = vmul.f32 %v1216_v43, %v744_v57 }
 0x106   : > { %v601_v10 = vpop.f32.mrb[4].mxu0  ;;  %v665_v11 = vpop.f32.mrb[4].mxu1 }
 0x107   : > { %v602_v12 = vadd.f32 %v1222_v45, %v601_v10  ;;  %v666_v13 = vadd.f32 %v1222_v45, %v665_v11  ;;  %v603_v14 = vpop.f32.mrb[5].mxu0  ;;  %v667_v15 = vpop.f32.mrb[5].mxu1 }
 0x108   : > { %v604_v18 = vpop.f32.mrb[6].mxu0  ;;  %v668_v19 = vpop.f32.mrb[6].mxu1 }
 0x109   : > { %v788_v20 = vadd.f32 %v756_v8, %v602_v12  ;;  %v804_v21 = vadd.f32 %v772_v9, %v666_v13  ;;  %v605_v22 = vadd.f32 %v1222_v45, %v604_v18  ;;  %v669_v23 = vadd.f32 %v1222_v45, %v668_v19  ;;  %v606_v24 = vpop.f32.mrb[7].mxu0  ;;  %v670_v25 = vpop.f32.mrb[7].mxu1  ;;  %v729_v12 = vld [vmem:[%s1213_s23 + $0x40] sm:$0xff] }
 0x10a   : > { %v745_v13 = vld [vmem:[%s1213_s23 + $0xc0] sm:$0xff]  ;;  %v762_v18 = vmul.f32 %v1216_v43, %v729_v12 }
 0x10b   : > { %821 = vst.msk [vmem:[%s1236_s27 + $0x10] sm:$0xff] %vm818_vm1, %v788_v20  ;;  %837 = vst.msk [vmem:[%s1236_s27 + $0x90] sm:$0xff] %vm818_vm1, %v804_v21  ;;  %v789_v28 = vadd.f32 %v757_v16, %v605_v22  ;;  %v805_v29 = vadd.f32 %v773_v17, %v669_v23  ;;  %v730_v16 = vld [vmem:[%s1213_s23 + $0x48] sm:$0xff]  ;;  %v778_v19 = vmul.f32 %v1216_v43, %v745_v13 }
 0x10c   : > { %v746_v17 = vld [vmem:[%s1213_s23 + $0xc8] sm:$0xff]  ;;  %v763_v26 = vmul.f32 %v1216_v43, %v730_v16 }
 0x10d   : > { %822 = vst.msk [vmem:[%s1236_s27 + $0x18] sm:$0xff] %vm818_vm1, %v789_v28  ;;  %838 = vst.msk [vmem:[%s1236_s27 + $0x98] sm:$0xff] %vm818_vm1, %v805_v29  ;;  %v779_v27 = vmul.f32 %v1216_v43, %v746_v17 }
 0x10e   : > { %v609_v34 = vpop.f32.mrb[8].mxu0  ;;  %v673_v35 = vpop.f32.mrb[8].mxu1 }
 0x10f   : > { %v610_v36 = vadd.f32 %v1222_v45, %v609_v34  ;;  %v674_v37 = vadd.f32 %v1222_v45, %v673_v35  ;;  %v611_v38 = vpop.f32.mrb[9].mxu0  ;;  %v675_v39 = vpop.f32.mrb[9].mxu1 }
 0x110   : > { %v612_v42 = vpop.f32.mrb[10].mxu0  ;;  %v676_v44 = vpop.f32.mrb[10].mxu1 }
 0x111   : > { %v790_v46 = vadd.f32 %v758_v32, %v610_v36  ;;  %v806_v47 = vadd.f32 %v774_v33, %v674_v37  ;;  %v613_v48 = vadd.f32 %v1222_v45, %v612_v42  ;;  %v677_v49 = vadd.f32 %v1222_v45, %v676_v44  ;;  %v614_v50 = vpop.f32.mrb[11].mxu0  ;;  %v678_v51 = vpop.f32.mrb[11].mxu1  ;;  %v731_v36 = vld [vmem:[%s1213_s23 + $0x50] sm:$0xff] }
 0x112   : > { %v747_v37 = vld [vmem:[%s1213_s23 + $0xd0] sm:$0xff]  ;;  %v764_v42 = vmul.f32 %v1216_v43, %v731_v36 }
 0x113   : > { %823 = vst.msk [vmem:[%s1236_s27 + $0x20] sm:$0xff] %vm818_vm1, %v790_v46  ;;  %839 = vst.msk [vmem:[%s1236_s27 + $0xa0] sm:$0xff] %vm818_vm1, %v806_v47  ;;  %v791_v54 = vadd.f32 %v759_v40, %v613_v48  ;;  %v807_v55 = vadd.f32 %v775_v41, %v677_v49  ;;  %v732_v40 = vld [vmem:[%s1213_s23 + $0x58] sm:$0xff]  ;;  %v780_v44 = vmul.f32 %v1216_v43, %v747_v37 }
 0x114   : > { %v748_v41 = vld [vmem:[%s1213_s23 + $0xd8] sm:$0xff]  ;;  %v765_v52 = vmul.f32 %v1216_v43, %v732_v40 }
 0x115   : > { %824 = vst.msk [vmem:[%s1236_s27 + $0x28] sm:$0xff] %vm818_vm1, %v791_v54  ;;  %840 = vst.msk [vmem:[%s1236_s27 + $0xa8] sm:$0xff] %vm818_vm1, %v807_v55  ;;  %v781_v53 = vmul.f32 %v1216_v43, %v748_v41 }
 0x116   : > { %v617_v60 = vpop.f32.mrb[12].mxu0  ;;  %v681_v61 = vpop.f32.mrb[12].mxu1 }
 0x117   : > { %v618_v62 = vadd.f32 %v1222_v45, %v617_v60  ;;  %v682_v63 = vadd.f32 %v1222_v45, %v681_v61  ;;  %v619_v0 = vpop.f32.mrb[13].mxu0  ;;  %v683_v1 = vpop.f32.mrb[13].mxu1 }
 0x118   : > { %v620_v4 = vpop.f32.mrb[14].mxu0  ;;  %v684_v5 = vpop.f32.mrb[14].mxu1 }
 0x119   : > { %v792_v6 = vadd.f32 %v760_v58, %v618_v62  ;;  %v808_v7 = vadd.f32 %v776_v59, %v682_v63  ;;  %v621_v8 = vadd.f32 %v1222_v45, %v620_v4  ;;  %v685_v9 = vadd.f32 %v1222_v45, %v684_v5  ;;  %v622_v10 = vpop.f32.mrb[15].mxu0  ;;  %v686_v11 = vpop.f32.mrb[15].mxu1  ;;  %v733_v62 = vld [vmem:[%s1213_s23 + $0x60] sm:$0xff] }
 0x11a   : > { %v749_v63 = vld [vmem:[%s1213_s23 + $0xe0] sm:$0xff]  ;;  %v766_v4 = vmul.f32 %v1216_v43, %v733_v62 }
 0x11b   : > { %825 = vst.msk [vmem:[%s1236_s27 + $0x30] sm:$0xff] %vm818_vm1, %v792_v6  ;;  %841 = vst.msk [vmem:[%s1236_s27 + $0xb0] sm:$0xff] %vm818_vm1, %v808_v7  ;;  %v793_v14 = vadd.f32 %v761_v2, %v621_v8  ;;  %v809_v15 = vadd.f32 %v777_v3, %v685_v9  ;;  %v734_v2 = vld [vmem:[%s1213_s23 + $0x68] sm:$0xff]  ;;  %v782_v5 = vmul.f32 %v1216_v43, %v749_v63 }
 0x11c   : > { %v750_v3 = vld [vmem:[%s1213_s23 + $0xe8] sm:$0xff]  ;;  %v767_v12 = vmul.f32 %v1216_v43, %v734_v2 }
 0x11d   : > { %826 = vst.msk [vmem:[%s1236_s27 + $0x38] sm:$0xff] %vm818_vm1, %v793_v14  ;;  %842 = vst.msk [vmem:[%s1236_s27 + $0xb8] sm:$0xff] %vm818_vm1, %v809_v15  ;;  %v783_v13 = vmul.f32 %v1216_v43, %v750_v3 }
 0x11e   : > { %v625_v20 = vpop.f32.mrb[16].mxu0  ;;  %v689_v21 = vpop.f32.mrb[16].mxu1 }
 0x11f   : > { %v626_v22 = vadd.f32 %v1222_v45, %v625_v20  ;;  %v690_v23 = vadd.f32 %v1222_v45, %v689_v21  ;;  %v627_v24 = vpop.f32.mrb[17].mxu0  ;;  %v691_v25 = vpop.f32.mrb[17].mxu1 }
 0x120   : > { %v628_v28 = vpop.f32.mrb[18].mxu0  ;;  %v692_v29 = vpop.f32.mrb[18].mxu1 }
 0x121   : > { %v794_v30 = vadd.f32 %v762_v18, %v626_v22  ;;  %v810_v31 = vadd.f32 %v778_v19, %v690_v23  ;;  %v629_v32 = vadd.f32 %v1222_v45, %v628_v28  ;;  %v693_v33 = vadd.f32 %v1222_v45, %v692_v29  ;;  %v630_v34 = vpop.f32.mrb[19].mxu0  ;;  %v694_v35 = vpop.f32.mrb[19].mxu1  ;;  %v735_v22 = vld [vmem:[%s1213_s23 + $0x70] sm:$0xff] }
 0x122   : > { %v751_v23 = vld [vmem:[%s1213_s23 + $0xf0] sm:$0xff]  ;;  %v768_v28 = vmul.f32 %v1216_v43, %v735_v22 }
 0x123   : > { %827 = vst.msk [vmem:[%s1236_s27 + $0x40] sm:$0xff] %vm818_vm1, %v794_v30  ;;  %843 = vst.msk [vmem:[%s1236_s27 + $0xc0] sm:$0xff] %vm818_vm1, %v810_v31  ;;  %v795_v38 = vadd.f32 %v763_v26, %v629_v32  ;;  %v811_v39 = vadd.f32 %v779_v27, %v693_v33  ;;  %v736_v26 = vld [vmem:[%s1213_s23 + $0x78] sm:$0xff]  ;;  %v784_v29 = vmul.f32 %v1216_v43, %v751_v23 }
 0x124   : > { %v752_v27 = vld [vmem:[%s1213_s23 + $0xf8] sm:$0xff]  ;;  %v769_v36 = vmul.f32 %v1216_v43, %v736_v26 }
 0x125   : > { %828 = vst.msk [vmem:[%s1236_s27 + $0x48] sm:$0xff] %vm818_vm1, %v795_v38  ;;  %844 = vst.msk [vmem:[%s1236_s27 + $0xc8] sm:$0xff] %vm818_vm1, %v811_v39  ;;  %v785_v37 = vmul.f32 %v1216_v43, %v752_v27 }
 0x126   : > { %v633_v46 = vpop.f32.mrb[20].mxu0  ;;  %v697_v47 = vpop.f32.mrb[20].mxu1 }
 0x127   : > { %v634_v48 = vadd.f32 %v1222_v45, %v633_v46  ;;  %v698_v49 = vadd.f32 %v1222_v45, %v697_v47  ;;  %v635_v50 = vpop.f32.mrb[21].mxu0  ;;  %v699_v51 = vpop.f32.mrb[21].mxu1 }
 0x128   : > { %v636_v54 = vpop.f32.mrb[22].mxu0  ;;  %v700_v55 = vpop.f32.mrb[22].mxu1 }
 0x129   : > { %v796_v56 = vadd.f32 %v764_v42, %v634_v48  ;;  %v812_v57 = vadd.f32 %v780_v44, %v698_v49  ;;  %v637_v58 = vadd.f32 %v1222_v45, %v636_v54  ;;  %v701_v59 = vadd.f32 %v1222_v45, %v700_v55  ;;  %v638_v60 = vpop.f32.mrb[23].mxu0  ;;  %v702_v61 = vpop.f32.mrb[23].mxu1 }
 0x12b   : > { %829 = vst.msk [vmem:[%s1236_s27 + $0x50] sm:$0xff] %vm818_vm1, %v796_v56  ;;  %845 = vst.msk [vmem:[%s1236_s27 + $0xd0] sm:$0xff] %vm818_vm1, %v812_v57  ;;  %v797_v0 = vadd.f32 %v765_v52, %v637_v58  ;;  %v813_v1 = vadd.f32 %v781_v53, %v701_v59 }
 0x12d   : > { %830 = vst.msk [vmem:[%s1236_s27 + $0x58] sm:$0xff] %vm818_vm1, %v797_v0  ;;  %846 = vst.msk [vmem:[%s1236_s27 + $0xd8] sm:$0xff] %vm818_vm1, %v813_v1 }
 0x12e   : > { %v641_v6 = vpop.f32.mrb[24].mxu0  ;;  %v705_v7 = vpop.f32.mrb[24].mxu1 }
 0x12f   : > { %v642_v8 = vadd.f32 %v1222_v45, %v641_v6  ;;  %v706_v9 = vadd.f32 %v1222_v45, %v705_v7  ;;  %v643_v10 = vpop.f32.mrb[25].mxu0  ;;  %v707_v11 = vpop.f32.mrb[25].mxu1 }
 0x130   : > { %v644_v14 = vpop.f32.mrb[26].mxu0  ;;  %v708_v15 = vpop.f32.mrb[26].mxu1 }
 0x131   : > { %v798_v16 = vadd.f32 %v766_v4, %v642_v8  ;;  %v814_v17 = vadd.f32 %v782_v5, %v706_v9  ;;  %v645_v18 = vadd.f32 %v1222_v45, %v644_v14  ;;  %v709_v19 = vadd.f32 %v1222_v45, %v708_v15  ;;  %v646_v20 = vpop.f32.mrb[27].mxu0  ;;  %v710_v21 = vpop.f32.mrb[27].mxu1 }
 0x133   : > { %831 = vst.msk [vmem:[%s1236_s27 + $0x60] sm:$0xff] %vm818_vm1, %v798_v16  ;;  %847 = vst.msk [vmem:[%s1236_s27 + $0xe0] sm:$0xff] %vm818_vm1, %v814_v17  ;;  %v799_v24 = vadd.f32 %v767_v12, %v645_v18  ;;  %v815_v25 = vadd.f32 %v783_v13, %v709_v19 }
 0x135   : > { %832 = vst.msk [vmem:[%s1236_s27 + $0x68] sm:$0xff] %vm818_vm1, %v799_v24  ;;  %848 = vst.msk [vmem:[%s1236_s27 + $0xe8] sm:$0xff] %vm818_vm1, %v815_v25 }
 0x136   : > { %v649_v30 = vpop.f32.mrb[28].mxu0  ;;  %v713_v31 = vpop.f32.mrb[28].mxu1 }
 0x137   : > { %v650_v32 = vadd.f32 %v1222_v45, %v649_v30  ;;  %v714_v33 = vadd.f32 %v1222_v45, %v713_v31  ;;  %v651_v34 = vpop.f32.mrb[29].mxu0  ;;  %v715_v35 = vpop.f32.mrb[29].mxu1 }
 0x138   : > { %v652_v38 = vpop.f32.mrb[30].mxu0  ;;  %v716_v39 = vpop.f32.mrb[30].mxu1 }
 0x139   : > { %v800_v40 = vadd.f32 %v768_v28, %v650_v32  ;;  %v816_v41 = vadd.f32 %v784_v29, %v714_v33  ;;  %v653_v42 = vadd.f32 %v1222_v45, %v652_v38  ;;  %v717_v44 = vadd.f32 %v1222_v45, %v716_v39  ;;  %v654_v46 = vpop.f32.mrb[31].mxu0  ;;  %v718_v47 = vpop.f32.mrb[31].mxu1 }
 0x13b   : > { %833 = vst.msk [vmem:[%s1236_s27 + $0x70] sm:$0xff] %vm818_vm1, %v800_v40  ;;  %849 = vst.msk [vmem:[%s1236_s27 + $0xf0] sm:$0xff] %vm818_vm1, %v816_v41  ;;  %v801_v48 = vadd.f32 %v769_v36, %v653_v42  ;;  %v817_v49 = vadd.f32 %v785_v37, %v717_v44 }
 0x13d   : > { %834 = vst.msk [vmem:[%s1236_s27 + $0x78] sm:$0xff] %vm818_vm1, %v801_v48  ;;  %850 = vst.msk [vmem:[%s1236_s27 + $0xf8] sm:$0xff] %vm818_vm1, %v817_v49 }
 0x13e PF: > { %s16_s20 = sadd.s32 1, %s1082_s20  }
 0x13f   : > { %p13_p4 = scmp.ge.s32.totalorder %s16_s20, 4  }
 0x141   :  { %15 = sbr.rel (!%p13_p4) target bundleno = 2 (0x2), region = 73 }

// kernel: model_forward.36
= control target key start
LH: loop header
LB: loop body
LE: loop exit
PB: predicated region body
PF: predicated region fallthrough
CT: control target
= control target key end

     0   :  { %s2421_s20 = smov 0   ;;  %s2949_s0 = inlined_call_operand.vmem [shape: bf16[512,576], index: 0, kind: input, shape index: {}]   ;;  %s2950_s1 = inlined_call_operand.vmem [shape: bf16[576,8], index: 1, kind: input, shape index: {}]   ;;  %s2951_s2 = inlined_call_operand.vmem [shape: f32[1,8], index: 2, kind: input, shape index: {}]   ;;  %s2952_s3 = inlined_call_operand.vmem [shape: f32[512,8], index: 3, kind: input, shape index: {}]   ;;  %s2953_s4 = inlined_call_operand.<no memory space> [shape: f32[1], index: 4, kind: input, shape index: {}]   ;;  %s2954_s5 = inlined_call_operand.vmem [shape: f32[512,8], index: 5, kind: output, shape index: {}]  }
   0x1   :  { %10 = sst [smem:[#allocation2]] %s2953_s4 }
   0x2 LB: > { %s1777_s21 = sadd.s32 4294967295, %s2386_s20   ;;  %p1781_p0 = scmp.ge.s32.totalorder %s2386_s20, 1  ;;  %s2386_s20 = sphi %s2421_s20, %s16_s20  }
   0x3   : > { %p201_p1 = scmp.lt.s32.totalorder %s2386_s20, 3 }
   0x5   : > { %p202_p2 = pnand %p1781_p0, %p201_p1 }
   0x6   : > { %v2232_v0 = vld [vmem:[%s2950_s1 + $0x40] sm:$0xff] (!%p202_p2)   ;;  %s1782_s4 = sshll.u32 (!%p202_p2), %s1777_s21, 5  ;;  %v2234_v2 = vld [vmem:[%s2950_s1 + $0x48] sm:$0xff] (!%p202_p2)   ;;  %v2236_v4 = vld [vmem:[%s2950_s1 + $0x50] sm:$0xff] (!%p202_p2)   ;;  %vm1046_vm0 = vcmask (!%p202_p2), 523264   ;;  %s1578_s29 = sld [smem:[#allocation2]] (!%p202_p2) }
   0x7   : > { %205 = sbr.rel (%p202_p2) target bundleno = 415 (0x19f), region = 40  ;;  %v2233_v1 = vld [vmem:[%s2950_s1] sm:$0xff] (!%p202_p2)   ;;  %1923 = vmatprep.subr.bf16.mxu0 (!%p202_p2), %v2232_v0  ;;  %2207 = vmatprep.subr.bf16.mxu1 (!%p202_p2), %v2232_v0  ;;  %p236_p3 = scmp.lt.s32.totalorder (!%p202_p2), %s1782_s4, 63  ;;  %v2235_v3 = vld [vmem:[%s2950_s1 + $0x8] sm:$0xff] (!%p202_p2)   ;;  %v2237_v5 = vld [vmem:[%s2950_s1 + $0x10] sm:$0xff] (!%p202_p2)   ;;  %vm1676_vm1 = vcmask (!%p202_p2), 64512  }
   0x8   : > { %1924 = vmatpush3.bf16.msra.mxu0 (!%p202_p2), %v2233_v1  ;;  %2215 = vmatpush3.bf16.msra.mxu1 (!%p202_p2), %v2233_v1  ;;  %v2238_v6 = vld [vmem:[%s2950_s1 + $0x58] sm:$0xff] (!%p202_p2)   ;;  %v2240_v8 = vld [vmem:[%s2950_s1 + $0x60] sm:$0xff] (!%p202_p2)   ;;  %v2242_v10 = vld [vmem:[%s2950_s1 + $0x68] sm:$0xff] (!%p202_p2)  }
   0x9   : > { %1925 = vmatprep.subr.bf16.mxu0 (!%p202_p2), %v2234_v2  ;;  %2208 = vmatprep.subr.bf16.mxu1 (!%p202_p2), %v2234_v2  ;;  %v2239_v7 = vld [vmem:[%s2950_s1 + $0x18] sm:$0xff] (!%p202_p2)   ;;  %v2241_v9 = vld [vmem:[%s2950_s1 + $0x20] sm:$0xff] (!%p202_p2)   ;;  %v2243_v13 = vld [vmem:[%s2950_s1 + $0x28] sm:$0xff] (!%p202_p2)  }
   0xa   : > { %v2244_v14 = vld [vmem:[%s2950_s1 + $0x70] sm:$0xff] (!%p202_p2)   ;;  %v2246_v16 = vld [vmem:[%s2950_s1 + $0x78] sm:$0xff] (!%p202_p2)   ;;  %v2254_v18 = vld [vmem:[%s2950_s1 + $0xc0] sm:$0xff] (!%p202_p2)  }
   0xb   : > { %v2245_v15 = vld [vmem:[%s2950_s1 + $0x30] sm:$0xff] (!%p202_p2)   ;;  %v2247_v17 = vld [vmem:[%s2950_s1 + $0x38] sm:$0xff] (!%p202_p2)   ;;  %v2257_v19 = vld [vmem:[%s2950_s1 + $0x100] sm:$0xff] (!%p202_p2)  }
   0xc   : > { %1926 = vmatpush3.bf16.msra.mxu0 (!%p202_p2), %v2235_v3  ;;  %2216 = vmatpush3.bf16.msra.mxu1 (!%p202_p2), %v2235_v3  ;;  %v2255_v22 = vld [vmem:[%s2950_s1 + $0x80] sm:$0xff] (!%p202_p2)   ;;  %v2256_v23 = vld [vmem:[%s2950_s1 + $0xc8] sm:$0xff] (!%p202_p2)   ;;  %v2265_v28 = vld [vmem:[%s2950_s1 + $0xd0] sm:$0xff] (!%p202_p2)  }
   0xd   : > { %1927 = vmatprep.subr.bf16.mxu0 (!%p202_p2), %v2236_v4  ;;  %2209 = vmatprep.subr.bf16.mxu1 (!%p202_p2), %v2236_v4  ;;  %v2258_v26 = vld [vmem:[%s2950_s1 + $0x88] sm:$0xff] (!%p202_p2)   ;;  %v2266_v30 = vld [vmem:[%s2950_s1 + $0x90] sm:$0xff] (!%p202_p2)   ;;  %v2267_v31 = vld [vmem:[%s2950_s1 + $0xd8] sm:$0xff] (!%p202_p2)  }
   0xe   : > { %s2956_s4 = smov (!%p236_p3, %s1782_s4), 63  ;;  %v2268_v34 = vld [vmem:[%s2950_s1 + $0x98] sm:$0xff]   ;;  %v2288_v35 = vld [vmem:[%s2950_s1 + $0x108] sm:$0xff]   ;;  %v2275_v37 = vld [vmem:[%s2950_s1 + $0xe0] sm:$0xff]  }
   0xf   : > { %s2223_s11 = smul.u32 20, %s2956_s4  ;;  %v2276_v39 = vld [vmem:[%s2950_s1 + $0xa0] sm:$0xff]   ;;  %v2277_v40 = vld [vmem:[%s2950_s1 + $0xe8] sm:$0xff]   ;;  %v2285_v46 = vld [vmem:[%s2950_s1 + $0xf0] sm:$0xff]   ;;  %s1785_s30 = sshll.u32 %s2956_s4, 3 }
  0x10   : > { %1928 = vmatpush3.bf16.msra.mxu0 %v2237_v5  ;;  %2217 = vmatpush3.bf16.msra.mxu1 %v2237_v5  ;;  %v2278_v43 = vld [vmem:[%s2950_s1 + $0xa8] sm:$0xff]   ;;  %v2308_v47 = vld [vmem:[%s2950_s1 + $0x110] sm:$0xff]   ;;  %v2287_v49 = vld [vmem:[%s2950_s1 + $0xf8] sm:$0xff]   ;;  %s2729_s8 = scalar_lea.vmem %s2952_s3, %s1785_s30 }
  0x11   : > { %1929 = vmatprep.subr.bf16.mxu0 %v2238_v6  ;;  %2210 = vmatprep.subr.bf16.mxu1 %v2238_v6  ;;  %s2462_s18 = scalar_lea.vmem %s2949_s0, %s2223_s11  ;;  %v2286_v48 = vld [vmem:[%s2950_s1 + $0xb0] sm:$0xff]   ;;  %v2289_v52 = vld [vmem:[%s2950_s1 + $0xb8] sm:$0xff]   ;;  %s2760_s11 = scalar_lea.vmem %s2954_s5, %s1785_s30 }
  0x12   : > { %v2250_v11 = vld [vmem:[%s2462_s18 + $0x4] ss:$20 sps:$4 sm:$0xff]   ;;  %v2248_v20 = vld [vmem:[%s2462_s18] ss:$20 sps:$4 sm:$0xff]   ;;  %v2263_v27 = vld [vmem:[%s2462_s18 + $0x28] ss:$20 sps:$4 sm:$0xff]  }
  0x13   : > { %v2253_v12 = vld [vmem:[%s2462_s18 + $0x1e4] ss:$20 sps:$4 sm:$0xff]   ;;  %1127 = vmatprep.mubr.bf16.mxu0 %v2250_v11  ;;  %v2251_v21 = vld [vmem:[%s2462_s18 + $0x1e0] ss:$20 sps:$4 sm:$0xff]   ;;  %v2264_v29 = vld [vmem:[%s2462_s18 + $0x208] ss:$20 sps:$4 sm:$0xff]  }
  0x14   : > { %1930 = vmatpush3.bf16.msra.mxu0 %v2239_v7  ;;  %2218 = vmatpush3.bf16.msra.mxu1 %v2239_v7  ;;  %v2259_v24 = vld [vmem:[%s2462_s18 + $0x2c] ss:$20 sps:$4 sm:$0xff]   ;;  %v2269_v32 = vld [vmem:[%s2462_s18 + $0x54] ss:$20 sps:$4 sm:$0xff]   ;;  %v2273_v36 = vld [vmem:[%s2462_s18 + $0x50] ss:$20 sps:$4 sm:$0xff]  }
  0x15   : > { %1931 = vmatprep.subr.bf16.mxu0 %v2240_v8  ;;  %2211 = vmatprep.subr.bf16.mxu1 %v2240_v8  ;;  %v2261_v25 = vld [vmem:[%s2462_s18 + $0x20c] ss:$20 sps:$4 sm:$0xff]   ;;  %v2271_v33 = vld [vmem:[%s2462_s18 + $0x234] ss:$20 sps:$4 sm:$0xff]   ;;  %v2274_v38 = vld [vmem:[%s2462_s18 + $0x230] ss:$20 sps:$4 sm:$0xff]  }
  0x16   : > { %1223 = vmatprep.mubr.bf16.mxu1 %v2253_v12  ;;  %v2279_v41 = vld [vmem:[%s2462_s18 + $0x7c] ss:$20 sps:$4 sm:$0xff]   ;;  %v2283_v44 = vld [vmem:[%s2462_s18 + $0x78] ss:$20 sps:$4 sm:$0xff]   ;;  %v2295_v54 = vld [vmem:[%s2462_s18 + $0xa0] ss:$20 sps:$4 sm:$0xff]  }
  0x17   : > { %v2281_v42 = vld [vmem:[%s2462_s18 + $0x25c] ss:$20 sps:$4 sm:$0xff]   ;;  %v2284_v45 = vld [vmem:[%s2462_s18 + $0x258] ss:$20 sps:$4 sm:$0xff]   ;;  %v2298_v57 = vld [vmem:[%s2462_s18 + $0x34] ss:$20 sps:$4 sm:$0xff]  }
  0x18   : > { %1932 = vmatpush3.bf16.msra.mxu0 %v2241_v9  ;;  %2219 = vmatpush3.bf16.msra.mxu1 %v2241_v9  ;;  %v2290_v50 = vld [vmem:[%s2462_s18 + $0xa4] ss:$20 sps:$4 sm:$0xff]   ;;  %v2294_v51 = vld [vmem:[%s2462_s18 + $0xc] ss:$20 sps:$4 sm:$0xff]   ;;  %v2292_v53 = vld [vmem:[%s2462_s18 + $0x8] ss:$20 sps:$4 sm:$0xff]  }
  0x19   : > { %1933 = vmatprep.subr.bf16.mxu0 %v2242_v10  ;;  %2212 = vmatprep.subr.bf16.mxu1 %v2242_v10  ;;  %v2296_v55 = vld [vmem:[%s2462_s18 + $0xcc] ss:$20 sps:$4 sm:$0xff]   ;;  %v2327_v56 = vld [vmem:[%s2950_s1 + $0x118] sm:$0xff]   ;;  %v2301_v59 = vld [vmem:[%s2462_s18 + $0x30] ss:$20 sps:$4 sm:$0xff]  }
  0x1a   : > { %v2300_v58 = vld [vmem:[%s2462_s18 + $0xc8] ss:$20 sps:$4 sm:$0xff]   ;;  %v2306_v62 = vld [vmem:[%s2462_s18 + $0xf0] ss:$20 sps:$4 sm:$0xff]   ;;  %v2307_v63 = vld [vmem:[%s2462_s18 + $0x58] ss:$20 sps:$4 sm:$0xff]  }
  0x1b   : > { %v2302_v60 = vld [vmem:[%s2462_s18 + $0xf4] ss:$20 sps:$4 sm:$0xff]   ;;  %v2304_v61 = vld [vmem:[%s2462_s18 + $0x5c] ss:$20 sps:$4 sm:$0xff]   ;;  %v2311_v1 = vld [vmem:[%s2462_s18 + $0x84] ss:$20 sps:$4 sm:$0xff]  }
  0x1c   : > { %1934 = vmatpush3.bf16.msra.mxu0 %v2243_v13  ;;  %2220 = vmatpush3.bf16.msra.mxu1 %v2243_v13  ;;  %v2309_v0 = vld [vmem:[%s2462_s18 + $0x11c] ss:$20 sps:$4 sm:$0xff]   ;;  %v2313_v2 = vld [vmem:[%s2462_s18 + $0x118] ss:$20 sps:$4 sm:$0xff]   ;;  %v2314_v3 = vld [vmem:[%s2462_s18 + $0x80] ss:$20 sps:$4 sm:$0xff]  }
  0x1d   : > { %1935 = vmatprep.subr.bf16.mxu0 %v2244_v14  ;;  %2213 = vmatprep.subr.bf16.mxu1 %v2244_v14  ;;  %v2315_v4 = vld [vmem:[%s2462_s18 + $0x144] ss:$20 sps:$4 sm:$0xff]   ;;  %v2317_v5 = vld [vmem:[%s2462_s18 + $0xac] ss:$20 sps:$4 sm:$0xff]   ;;  %v2320_v7 = vld [vmem:[%s2462_s18 + $0xa8] ss:$20 sps:$4 sm:$0xff]  }
  0x1e   : > { %v2319_v6 = vld [vmem:[%s2462_s18 + $0x140] ss:$20 sps:$4 sm:$0xff]   ;;  %v2325_v10 = vld [vmem:[%s2462_s18 + $0x168] ss:$20 sps:$4 sm:$0xff]   ;;  %v2326_v11 = vld [vmem:[%s2462_s18 + $0xd0] ss:$20 sps:$4 sm:$0xff]  }
  0x1f   : > { %v2321_v8 = vld [vmem:[%s2462_s18 + $0x16c] ss:$20 sps:$4 sm:$0xff]   ;;  %v2323_v9 = vld [vmem:[%s2462_s18 + $0xd4] ss:$20 sps:$4 sm:$0xff]   ;;  %v2330_v13 = vld [vmem:[%s2462_s18 + $0xfc] ss:$20 sps:$4 sm:$0xff]  }
  0x20   : > { %1936 = vmatpush3.bf16.msra.mxu0 %v2245_v15  ;;  %2221 = vmatpush3.bf16.msra.mxu1 %v2245_v15  ;;  %v2328_v12 = vld [vmem:[%s2462_s18 + $0x194] ss:$20 sps:$4 sm:$0xff]   ;;  %v2332_v14 = vld [vmem:[%s2462_s18 + $0x190] ss:$20 sps:$4 sm:$0xff]   ;;  %v2333_v15 = vld [vmem:[%s2462_s18 + $0xf8] ss:$20 sps:$4 sm:$0xff]  }
  0x21   : > { %1937 = vmatprep.subr.bf16.mxu0 %v2246_v16  ;;  %2214 = vmatprep.subr.bf16.mxu1 %v2246_v16  ;;  %v2334_v16 = vld [vmem:[%s2462_s18 + $0x1bc] ss:$20 sps:$4 sm:$0xff]  }
  0x24   : > { %1938 = vmatpush3.bf16.msra.mxu0 %v2247_v17  ;;  %2222 = vmatpush3.bf16.msra.mxu1 %v2247_v17  ;;  %v2336_v17 = vld [vmem:[%s2462_s18 + $0x124] ss:$20 sps:$4 sm:$0xff]  }
  0x25   : > { %2035 = vmatprep.subr.bf16.mxu1 %v2254_v18  ;;  %2167 = vmatprep.subr.bf16.mxu0 %v2257_v19  ;;  %v2338_v18 = vld [vmem:[%s2462_s18 + $0x1b8] ss:$20 sps:$4 sm:$0xff]  }
  0x27   : > { %1128 = vmatmul.mubr.bf16.vlgmr.msra.gmra.mrb[0].mxu0 %v2248_v20  ;;  %1224 = vmatmul.mubr.bf16.vlgmr.msra.gmra.mrb[0].mxu1 %v2251_v21  ;;  %v2340_v20 = vld [vmem:[%s2462_s18 + $0x14c] ss:$20 sps:$4 sm:$0xff]   ;;  %v2342_v21 = vld [vmem:[%s2462_s18 + $0x10] ss:$20 sps:$4 sm:$0xff]  }
  0x28   : > { %2036 = vmatpush3.bf16.msra.mxu1 %v2255_v22  ;;  %2168 = vmatpush3.bf16.msra.mxu0 %v2257_v19  ;;  %v2339_v19 = vld [vmem:[%s2462_s18 + $0x120] ss:$20 sps:$4 sm:$0xff]   ;;  %v2343_v22 = vld [vmem:[%s2462_s18 + $0x148] ss:$20 sps:$4 sm:$0xff]  }
  0x29   : > { %2037 = vmatprep.subr.bf16.mxu1 %v2256_v23  ;;  %1135 = vmatprep.mubr.bf16.mxu0 %v2259_v24  ;;  %v2344_v23 = vld [vmem:[%s2462_s18 + $0x38] ss:$20 sps:$4 sm:$0xff]   ;;  %v2345_v24 = vld [vmem:[%s2462_s18 + $0x174] ss:$20 sps:$4 sm:$0xff]  }
  0x2a   : > { %1231 = vmatprep.mubr.bf16.mxu1 %v2261_v25  ;;  %2169 = vmatprep.subr.bf16.mxu0 %v2288_v35  ;;  %v2347_v25 = vld [vmem:[%s2462_s18 + $0x60] ss:$20 sps:$4 sm:$0xff]  }
  0x2c   : > { %2038 = vmatpush3.bf16.msra.mxu1 %v2258_v26  ;;  %2170 = vmatpush3.bf16.msra.mxu0 %v2288_v35  ;;  %v2348_v26 = vld [vmem:[%s2462_s18 + $0x170] ss:$20 sps:$4 sm:$0xff]   ;;  %v2359_v35 = vld [vmem:[%s2462_s18 + $0x128] ss:$20 sps:$4 sm:$0xff]  }
  0x2d   : > { %2039 = vmatprep.subr.bf16.mxu1 %v2265_v28  ;;  %2171 = vmatprep.subr.bf16.mxu0 %v2308_v47  ;;  %v2350_v28 = vld [vmem:[%s2462_s18 + $0x19c] ss:$20 sps:$4 sm:$0xff]  }
  0x2f   : > { %1136 = vmatmul.mubr.bf16.gmra.mrb[4].mxu0 %v2263_v27  ;;  %1232 = vmatmul.mubr.bf16.gmra.mrb[4].mxu1 %v2264_v29  ;;  %v2349_v27 = vld [vmem:[%s2462_s18 + $0x88] ss:$20 sps:$4 sm:$0xff]   ;;  %v2352_v29 = vld [vmem:[%s2462_s18 + $0xb0] ss:$20 sps:$4 sm:$0xff]  }
  0x30   : > { %2040 = vmatpush3.bf16.msra.mxu1 %v2266_v30  ;;  %1143 = vmatprep.mubr.bf16.mxu0 %v2269_v32  ;;  %v2353_v30 = vld [vmem:[%s2462_s18 + $0x198] ss:$20 sps:$4 sm:$0xff]  }
  0x31   : > { %2041 = vmatprep.subr.bf16.mxu1 %v2267_v31  ;;  %1239 = vmatprep.mubr.bf16.mxu1 %v2271_v33  ;;  %v2354_v31 = vld [vmem:[%s2462_s18 + $0xd8] ss:$20 sps:$4 sm:$0xff]   ;;  %v2357_v33 = vld [vmem:[%s2462_s18 + $0x100] ss:$20 sps:$4 sm:$0xff]  }
  0x32   : > { %2172 = vmatpush3.bf16.msra.mxu0 %v2308_v47  ;;  %v2355_v32 = vld [vmem:[%s2462_s18 + $0x1c4] ss:$20 sps:$4 sm:$0xff]  }
  0x33   : > { %2173 = vmatprep.subr.bf16.mxu0 %v2327_v56  ;;  %v2374_v47 = vld [vmem:[%s2462_s18 + $0x218] ss:$20 sps:$4 sm:$0xff]  }
  0x34   : > { %2042 = vmatpush3.bf16.msra.mxu1 %v2268_v34  ;;  %v2358_v34 = vld [vmem:[%s2462_s18 + $0x1c0] ss:$20 sps:$4 sm:$0xff]  }
  0x35   : > { %2043 = vmatprep.subr.bf16.mxu1 %v2275_v37  ;;  %v2362_v37 = vld [vmem:[%s2462_s18 + $0x150] ss:$20 sps:$4 sm:$0xff]  }
  0x36   : > { %2174 = vmatpush3.bf16.msra.mxu0 %v2327_v56 }
  0x37   : > { %1144 = vmatmul.mubr.bf16.gmra.mrb[8].mxu0 %v2273_v36  ;;  %1240 = vmatmul.mubr.bf16.gmra.mrb[8].mxu1 %v2274_v38  ;;  %v2360_v36 = vld [vmem:[%s2462_s18 + $0x1ec] ss:$20 sps:$4 sm:$0xff]   ;;  %v2363_v38 = vld [vmem:[%s2462_s18 + $0x1e8] ss:$20 sps:$4 sm:$0xff]  }
  0x38   : > { %2044 = vmatpush3.bf16.msra.mxu1 %v2276_v39  ;;  %1151 = vmatprep.mubr.bf16.mxu0 %v2279_v41  ;;  %v2364_v39 = vld [vmem:[%s2462_s18 + $0x178] ss:$20 sps:$4 sm:$0xff]   ;;  %v2367_v41 = vld [vmem:[%s2462_s18 + $0x1a0] ss:$20 sps:$4 sm:$0xff]  }
  0x39   : > { %2045 = vmatprep.subr.bf16.mxu1 %v2277_v40  ;;  %1247 = vmatprep.mubr.bf16.mxu1 %v2281_v42  ;;  %v2365_v40 = vld [vmem:[%s2462_s18 + $0x214] ss:$20 sps:$4 sm:$0xff]   ;;  %v2368_v42 = vld [vmem:[%s2462_s18 + $0x210] ss:$20 sps:$4 sm:$0xff]  }
  0x3c   : > { %2046 = vmatpush3.bf16.msra.mxu1 %v2278_v43  ;;  %v2369_v43 = vld [vmem:[%s2462_s18 + $0x1c8] ss:$20 sps:$4 sm:$0xff]  }
  0x3d   : > { %2047 = vmatprep.subr.bf16.mxu1 %v2285_v46  ;;  %v2373_v46 = vld [vmem:[%s2462_s18 + $0x238] ss:$20 sps:$4 sm:$0xff]  }
  0x3f   : > { %1152 = vmatmul.mubr.bf16.gmra.mrb[12].mxu0 %v2283_v44  ;;  %1248 = vmatmul.mubr.bf16.gmra.mrb[12].mxu1 %v2284_v45  ;;  %v2370_v44 = vld [vmem:[%s2462_s18 + $0x23c] ss:$20 sps:$4 sm:$0xff]  }
  0x40   : > { %2048 = vmatpush3.bf16.msra.mxu1 %v2286_v48  ;;  %1159 = vmatprep.mubr.bf16.mxu0 %v2290_v50  ;;  %v2372_v45 = vld [vmem:[%s2462_s18 + $0x1f0] ss:$20 sps:$4 sm:$0xff]   ;;  %v2378_v50 = vld [vmem:[%s2462_s18 + $0x260] ss:$20 sps:$4 sm:$0xff]  }
  0x41   : > { %2049 = vmatprep.subr.bf16.mxu1 %v2287_v49  ;;  %1288 = vmatprep.mubr.bf16.mxu1 %v2294_v51  ;;  %v2375_v48 = vld [vmem:[%s2462_s18 + $0x264] ss:$20 sps:$4 sm:$0xff]   ;;  %v2377_v49 = vld [vmem:[%s2462_s18 + $0x240] ss:$20 sps:$4 sm:$0xff]   ;;  %v2379_v51 = vld [vmem:[%s2462_s18 + $0x268] ss:$20 sps:$4 sm:$0xff]  }
  0x44   : > { %2050 = vmatpush3.bf16.msra.mxu1 %v2289_v52 }
  0x47   : > { %1160 = vmatmul.mubr.bf16.gmra.mrb[16].mxu0 %v2295_v54  ;;  %1289 = vmatmul.mubr.bf16.vlgmr.msra.gmra.mrb[16].mxu1 %v2292_v53 }
  0x48   : > { %1167 = vmatprep.mubr.bf16.mxu0 %v2296_v55  ;;  %1296 = vmatprep.mubr.bf16.mxu1 %v2298_v57 }
  0x4f   : > { %1168 = vmatmul.mubr.bf16.gmra.mrb[20].mxu0 %v2300_v58  ;;  %1297 = vmatmul.mubr.bf16.gmra.mrb[20].mxu1 %v2301_v59 }
  0x50   : > { %1175 = vmatprep.mubr.bf16.mxu0 %v2302_v60  ;;  %1304 = vmatprep.mubr.bf16.mxu1 %v2304_v61 }
  0x57   : > { %1176 = vmatmul.mubr.bf16.gmra.mrb[24].mxu0 %v2306_v62  ;;  %1305 = vmatmul.mubr.bf16.gmra.mrb[24].mxu1 %v2307_v63 }
  0x58   : > { %1183 = vmatprep.mubr.bf16.mxu0 %v2309_v0  ;;  %1312 = vmatprep.mubr.bf16.mxu1 %v2311_v1 }
  0x5f   : > { %1184 = vmatmul.mubr.bf16.gmra.mrb[28].mxu0 %v2313_v2  ;;  %1313 = vmatmul.mubr.bf16.gmra.mrb[28].mxu1 %v2314_v3 }
  0x60   : > { %1191 = vmatprep.mubr.bf16.mxu0 %v2315_v4  ;;  %1320 = vmatprep.mubr.bf16.mxu1 %v2317_v5 }
  0x67   : > { %1192 = vmatmul.mubr.bf16.gmra.mrb[32].mxu0 %v2319_v6  ;;  %1321 = vmatmul.mubr.bf16.gmra.mrb[32].mxu1 %v2320_v7 }
  0x68   : > { %1199 = vmatprep.mubr.bf16.mxu0 %v2321_v8  ;;  %1328 = vmatprep.mubr.bf16.mxu1 %v2323_v9 }
  0x6f   : > { %1200 = vmatmul.mubr.bf16.gmra.mrb[36].mxu0 %v2325_v10  ;;  %1329 = vmatmul.mubr.bf16.gmra.mrb[36].mxu1 %v2326_v11 }
  0x70   : > { %1207 = vmatprep.mubr.bf16.mxu0 %v2328_v12  ;;  %1336 = vmatprep.mubr.bf16.mxu1 %v2330_v13 }
  0x77   : > { %1208 = vmatmul.mubr.bf16.gmra.mrb[40].mxu0 %v2332_v14  ;;  %1337 = vmatmul.mubr.bf16.gmra.mrb[40].mxu1 %v2333_v15 }
  0x78   : > { %1215 = vmatprep.mubr.bf16.mxu0 %v2334_v16  ;;  %1344 = vmatprep.mubr.bf16.mxu1 %v2336_v17 }
  0x7f   : > { %1216 = vmatmul.mubr.bf16.gmra.mrb[44].mxu0 %v2338_v18  ;;  %1345 = vmatmul.mubr.bf16.gmra.mrb[44].mxu1 %v2339_v19 }
  0x80   : > { %1352 = vmatprep.mubr.bf16.mxu1 %v2340_v20  ;;  %2175 = vmatprep.mubr.msk.bf16.mxu0 %vm1046_vm0, %v2342_v21 }
  0x87   : > { %1353 = vmatmul.mubr.bf16.gmra.mrb[48].mxu1 %v2343_v22  ;;  %2176 = vmatmul.mubr.msk.bf16.vlgmr.msra.gmra.mrb[48].mxu0 %vm1046_vm0, %v2344_v23 }
  0x88   : > { %1360 = vmatprep.mubr.bf16.mxu1 %v2345_v24  ;;  %2179 = vmatprep.mubr.msk.bf16.mxu0 %vm1046_vm0, %v2347_v25 }
  0x8f   : > { %1361 = vmatmul.mubr.bf16.gmra.mrb[52].mxu1 %v2348_v26  ;;  %2180 = vmatmul.mubr.msk.bf16.gmra.mrb[52].mxu0 %vm1046_vm0, %v2349_v27 }
  0x90   : > { %1368 = vmatprep.mubr.bf16.mxu1 %v2350_v28  ;;  %2183 = vmatprep.mubr.msk.bf16.mxu0 %vm1046_vm0, %v2352_v29 }
  0x97   : > { %1369 = vmatmul.mubr.bf16.gmra.mrb[56].mxu1 %v2353_v30  ;;  %2184 = vmatmul.mubr.msk.bf16.gmra.mrb[56].mxu0 %vm1046_vm0, %v2354_v31 }
  0x98   : > { %1376 = vmatprep.mubr.bf16.mxu1 %v2355_v32  ;;  %2187 = vmatprep.mubr.msk.bf16.mxu0 %vm1046_vm0, %v2357_v33 }
  0x9f   : > { %1377 = vmatmul.mubr.bf16.gmra.mrb[60].mxu1 %v2358_v34  ;;  %2188 = vmatmul.mubr.msk.bf16.gmra.mrb[60].mxu0 %vm1046_vm0, %v2359_v35 }
  0xa0   : > { %1384 = vmatprep.mubr.bf16.mxu1 %v2360_v36  ;;  %2191 = vmatprep.mubr.msk.bf16.mxu0 %vm1046_vm0, %v2362_v37 }
  0xa7   : > { %1385 = vmatmul.mubr.bf16.gmra.mrb[64].mxu1 %v2363_v38  ;;  %2192 = vmatmul.mubr.msk.bf16.gmra.mrb[64].mxu0 %vm1046_vm0, %v2364_v39  ;;  %v2660_v38 = vld [vmem:[%s2951_s2] ss:$0 sm:$0xff] }
  0xa8   : > { %1392 = vmatprep.mubr.bf16.mxu1 %v2365_v40  ;;  %2195 = vmatprep.mubr.msk.bf16.mxu0 %vm1046_vm0, %v2367_v41 }
  0xaf   : > { %1393 = vmatmul.mubr.bf16.gmra.mrb[68].mxu1 %v2368_v42  ;;  %2196 = vmatmul.mubr.msk.bf16.gmra.mrb[68].mxu0 %vm1046_vm0, %v2369_v43 }
  0xb0   : > { %1400 = vmatprep.mubr.bf16.mxu1 %v2370_v44  ;;  %2199 = vmatprep.mubr.msk.bf16.mxu0 %vm1046_vm0, %v2372_v45 }
  0xb7   : > { %1401 = vmatmul.mubr.bf16.gmra.mrb[72].mxu1 %v2373_v46  ;;  %2200 = vmatmul.mubr.msk.bf16.gmra.mrb[72].mxu0 %vm1046_vm0, %v2374_v47 }
  0xb8   : > { %1408 = vmatprep.mubr.bf16.mxu1 %v2375_v48  ;;  %2203 = vmatprep.mubr.msk.bf16.mxu0 %vm1046_vm0, %v2377_v49 }
  0xbf   : > { %1409 = vmatmul.mubr.bf16.gmra.mrb[76].mxu1 %v2378_v50  ;;  %2204 = vmatmul.mubr.msk.bf16.gmra.mrb[76].mxu0 %vm1046_vm0, %v2379_v51 }
  0xfa   : > { %v2011_v52 = vpop.f32.mrb[0].mxu1  ;;  %v1939_v53 = vpop.f32.mrb[0].mxu0 }
  0xfb   : > { %v2012_v54 = vpop.f32.mrb[1].mxu1  ;;  %v1940_v55 = vpop.f32.mrb[1].mxu0 }
  0xfc   : > { %v2641_v56 = vadd.f32 %v2012_v54, %v2011_v52  ;;  %v2014_v57 = vpop.f32.mrb[2].mxu1  ;;  %v1941_v58 = vadd.f32 %v1940_v55, %v1939_v53  ;;  %v1942_v59 = vpop.f32.mrb[2].mxu0 }
  0xfd   : > { %v2015_v60 = vpop.f32.mrb[3].mxu1  ;;  %v1943_v61 = vpop.f32.mrb[3].mxu0 }
  0xfe   : > { %v2643_v62 = vadd.f32 %v2015_v60, %v2014_v57  ;;  %v1944_v63 = vadd.f32 %v1943_v61, %v1942_v59  ;;  %v1130_v41 = vadd.f32 %v1941_v58, %v2660_v38 }
 0x100   : > { %v1133_v48 = vadd.f32 %v1944_v63, %v2660_v38 }
 0x102   : > { %v2017_v0 = vpop.f32.mrb[4].mxu1  ;;  %v1945_v1 = vpop.f32.mrb[4].mxu0 }
 0x103   : > { %v2018_v2 = vpop.f32.mrb[5].mxu1  ;;  %v1946_v3 = vpop.f32.mrb[5].mxu0 }
 0x104   : > { %v2645_v4 = vadd.f32 %v2018_v2, %v2017_v0  ;;  %v2020_v5 = vpop.f32.mrb[6].mxu1  ;;  %v1947_v6 = vadd.f32 %v1946_v3, %v1945_v1  ;;  %v1948_v7 = vpop.f32.mrb[6].mxu0 }
 0x105   : > { %v2021_v8 = vpop.f32.mrb[7].mxu1  ;;  %v1949_v9 = vpop.f32.mrb[7].mxu0 }
 0x106   : > { %v2647_v10 = vadd.f32 %v2021_v8, %v2020_v5  ;;  %v1950_v11 = vadd.f32 %v1949_v9, %v1948_v7  ;;  %v1138_v58 = vadd.f32 %v1947_v6, %v2660_v38 }
 0x108   : > { %v1141_v63 = vadd.f32 %v1950_v11, %v2660_v38 }
 0x10a   : > { %v2023_v12 = vpop.f32.mrb[8].mxu1  ;;  %v1951_v13 = vpop.f32.mrb[8].mxu0 }
 0x10b   : > { %v2024_v14 = vpop.f32.mrb[9].mxu1  ;;  %v1952_v15 = vpop.f32.mrb[9].mxu0 }
 0x10c   : > { %v2649_v16 = vadd.f32 %v2024_v14, %v2023_v12  ;;  %v2026_v17 = vpop.f32.mrb[10].mxu1  ;;  %v1953_v18 = vadd.f32 %v1952_v15, %v1951_v13  ;;  %v1954_v19 = vpop.f32.mrb[10].mxu0 }
 0x10d   : > { %v2027_v20 = vpop.f32.mrb[11].mxu1  ;;  %v1955_v21 = vpop.f32.mrb[11].mxu0 }
 0x10e   : > { %v2651_v22 = vadd.f32 %v2027_v20, %v2026_v17  ;;  %v1956_v23 = vadd.f32 %v1955_v21, %v1954_v19  ;;  %v1146_v6 = vadd.f32 %v1953_v18, %v2660_v38 }
 0x110   : > { %v1149_v11 = vadd.f32 %v1956_v23, %v2660_v38 }
 0x112   : > { %v2029_v24 = vpop.f32.mrb[12].mxu1  ;;  %v1957_v25 = vpop.f32.mrb[12].mxu0 }
 0x113   : > { %v2030_v26 = vpop.f32.mrb[13].mxu1  ;;  %v1958_v27 = vpop.f32.mrb[13].mxu0 }
 0x114   : > { %v2653_v28 = vadd.f32 %v2030_v26, %v2029_v24  ;;  %v2032_v29 = vpop.f32.mrb[14].mxu1  ;;  %v1959_v30 = vadd.f32 %v1958_v27, %v1957_v25  ;;  %v1960_v31 = vpop.f32.mrb[14].mxu0 }
 0x115   : > { %v2033_v32 = vpop.f32.mrb[15].mxu1  ;;  %v1961_v33 = vpop.f32.mrb[15].mxu0 }
 0x116   : > { %v2655_v34 = vadd.f32 %v2033_v32, %v2032_v29  ;;  %v1962_v35 = vadd.f32 %v1961_v33, %v1960_v31  ;;  %v1154_v18 = vadd.f32 %v1959_v30, %v2660_v38 }
 0x11a   : > { %v2051_v36 = vpop.f32.mrb[16].mxu1  ;;  %v1963_v37 = vpop.f32.mrb[16].mxu0 }
 0x11b   : > { %v2052_v39 = vpop.f32.mrb[17].mxu1  ;;  %v1964_v40 = vpop.f32.mrb[17].mxu0 }
 0x11c   : > { %v2053_v42 = vadd.f32 %v2052_v39, %v2051_v36  ;;  %v2054_v43 = vpop.f32.mrb[18].mxu1  ;;  %v1965_v44 = vadd.f32 %v1964_v40, %v1963_v37  ;;  %v1966_v45 = vpop.f32.mrb[18].mxu0 }
 0x11d   : > { %v2055_v46 = vpop.f32.mrb[19].mxu1  ;;  %v1967_v47 = vpop.f32.mrb[19].mxu0 }
 0x11e   : > { %v2056_v49 = vadd.f32 %v2055_v46, %v2054_v43  ;;  %v1968_v50 = vadd.f32 %v1967_v47, %v1966_v45  ;;  %v2664_v51 = vadd.f32 %v2053_v42, %v1130_v41  ;;  %v1157_v43 = vadd.f32 %v1962_v35, %v2660_v38 }
 0x120   : > { %v2666_v52 = vadd.f32 %v2056_v49, %v1133_v48 }
 0x122   : > { %v2057_v53 = vpop.f32.mrb[20].mxu1  ;;  %v1969_v54 = vpop.f32.mrb[20].mxu0 }
 0x123   : > { %v2058_v55 = vpop.f32.mrb[21].mxu1  ;;  %v1970_v57 = vpop.f32.mrb[21].mxu0 }
 0x124   : > { %v2059_v59 = vadd.f32 %v2058_v55, %v2057_v53  ;;  %v2060_v60 = vpop.f32.mrb[22].mxu1  ;;  %v1971_v61 = vadd.f32 %v1970_v57, %v1969_v54  ;;  %v1972_v0 = vpop.f32.mrb[22].mxu0  ;;  %v1162_v55 = vadd.f32 %v1965_v44, %v2660_v38 }
 0x125   : > { %v2061_v1 = vpop.f32.mrb[23].mxu1  ;;  %v1973_v2 = vpop.f32.mrb[23].mxu0 }
 0x126   : > { %v2062_v3 = vadd.f32 %v2061_v1, %v2060_v60  ;;  %v1974_v5 = vadd.f32 %v1973_v2, %v1972_v0  ;;  %v2670_v7 = vadd.f32 %v2059_v59, %v1138_v58  ;;  %v1165_v1 = vadd.f32 %v1968_v50, %v2660_v38 }
 0x128   : > { %v2672_v8 = vadd.f32 %v2062_v3, %v1141_v63 }
 0x12a   : > { %v2063_v9 = vpop.f32.mrb[24].mxu1  ;;  %v1975_v12 = vpop.f32.mrb[24].mxu0 }
 0x12b   : > { %v2064_v13 = vpop.f32.mrb[25].mxu1  ;;  %v1976_v14 = vpop.f32.mrb[25].mxu0 }
 0x12c   : > { %v2065_v15 = vadd.f32 %v2064_v13, %v2063_v9  ;;  %v2066_v17 = vpop.f32.mrb[26].mxu1  ;;  %v1977_v19 = vadd.f32 %v1976_v14, %v1975_v12  ;;  %v1978_v20 = vpop.f32.mrb[26].mxu0 }
 0x12d   : > { %v2067_v21 = vpop.f32.mrb[27].mxu1  ;;  %v1979_v24 = vpop.f32.mrb[27].mxu0 }
 0x12e   : > { %v2068_v25 = vadd.f32 %v2067_v21, %v2066_v17  ;;  %v2676_v26 = vadd.f32 %v1979_v24, %v1978_v20  ;;  %v2678_v27 = vadd.f32 %v2065_v15, %v1146_v6  ;;  %v1170_v6 = vadd.f32 %v1971_v61, %v2660_v38 }
 0x130   : > { %v2680_v29 = vadd.f32 %v2068_v25, %v1149_v11  ;;  %v1173_v11 = vadd.f32 %v1974_v5, %v2660_v38 }
 0x132   : > { %v2069_v31 = vpop.f32.mrb[28].mxu1  ;;  %v1981_v32 = vpop.f32.mrb[28].mxu0 }
 0x133   : > { %v2070_v33 = vpop.f32.mrb[29].mxu1  ;;  %v1982_v36 = vpop.f32.mrb[29].mxu0 }
 0x134   : > { %v2071_v37 = vadd.f32 %v2070_v33, %v2069_v31  ;;  %v2072_v39 = vpop.f32.mrb[30].mxu1  ;;  %v2683_v40 = vadd.f32 %v1982_v36, %v1981_v32  ;;  %v1984_v41 = vpop.f32.mrb[30].mxu0 }
 0x135   : > { %v2073_v42 = vpop.f32.mrb[31].mxu1  ;;  %v1985_v23 = vpop.f32.mrb[31].mxu0 }
 0x136   : > { %v2074_v45 = vadd.f32 %v2073_v42, %v2072_v39  ;;  %v2686_v46 = vadd.f32 %v1985_v23, %v1984_v41  ;;  %v2688_v47 = vadd.f32 %v2071_v37, %v1154_v18  ;;  %v1178_v39 = vadd.f32 %v1977_v19, %v2660_v38 }
 0x138   : > { %v2690_v48 = vadd.f32 %v2074_v45, %v1157_v43 }
 0x13a   : > { %v2075_v49 = vpop.f32.mrb[32].mxu1  ;;  %v1987_v53 = vpop.f32.mrb[32].mxu0 }
 0x13b   : > { %v2076_v54 = vpop.f32.mrb[33].mxu1  ;;  %v1988_v30 = vpop.f32.mrb[33].mxu0 }
 0x13c   : > { %v2077_v57 = vadd.f32 %v2076_v54, %v2075_v49  ;;  %v2078_v58 = vpop.f32.mrb[34].mxu1  ;;  %v2693_v59 = vadd.f32 %v1988_v30, %v1987_v53  ;;  %v1990_v60 = vpop.f32.mrb[34].mxu0  ;;  %v1181_v49 = vadd.f32 %v2676_v26, %v2660_v38  ;;  %v1186_v26 = vadd.f32 %v2683_v40, %v2660_v38  ;;  %v1579_v40 = vld [vmem:[%s2729_s8] sm:$0xff] }
 0x13d   : > { %v2079_v0 = vpop.f32.mrb[35].mxu1  ;;  %v1991_v35 = vpop.f32.mrb[35].mxu0 }
 0x13e   : > { %v2080_v2 = vadd.f32 %v2079_v0, %v2078_v58  ;;  %v2696_v63 = vadd.f32 %v1991_v35, %v1990_v60  ;;  %v2698_v3 = vadd.f32 %v2077_v57, %v1162_v55 }
 0x140   : > { %v2700_v9 = vadd.f32 %v2080_v2, %v1165_v1 }
 0x142   : > { %v2081_v12 = vpop.f32.mrb[36].mxu1  ;;  %v1993_v13 = vpop.f32.mrb[36].mxu0 }
 0x143   : > { %v2082_v14 = vpop.f32.mrb[37].mxu1  ;;  %v1994_v44 = vpop.f32.mrb[37].mxu0 }
 0x144   : > { %v2083_v15 = vadd.f32 %v2082_v14, %v2081_v12  ;;  %v2084_v17 = vpop.f32.mrb[38].mxu1  ;;  %v2703_v20 = vadd.f32 %v1994_v44, %v1993_v13  ;;  %v1996_v21 = vpop.f32.mrb[38].mxu0  ;;  %v2735_v14 = vstv %s1578_s29  ;;  %v1189_v44 = vadd.f32 %v2686_v46, %v2660_v38 }
 0x145   : > { %v2085_v24 = vpop.f32.mrb[39].mxu1  ;;  %v1997_v50 = vpop.f32.mrb[39].mxu0 }
 0x146   : > { %v2086_v25 = vadd.f32 %v2085_v24, %v2084_v17  ;;  %v2706_v31 = vadd.f32 %v1997_v50, %v1996_v21  ;;  %v2708_v32 = vadd.f32 %v2083_v15, %v1170_v6  ;;  %v1581_v17 = vld [vmem:[%s2729_s8 + $0x10] sm:$0xff]  ;;  %v1582_v24 = vld [vmem:[%s2729_s8 + $0x18] sm:$0xff] }
 0x148   : > { %v2710_v33 = vadd.f32 %v2086_v25, %v1173_v11  ;;  %v1614_v11 = vmul.f32 %v2735_v14, %v1581_v17  ;;  %v1580_v25 = vld [vmem:[%s2729_s8 + $0x8] sm:$0xff] }
 0x14a   : > { %v2087_v36 = vpop.f32.mrb[40].mxu1  ;;  %v1999_v18 = vpop.f32.mrb[40].mxu0 }
 0x14b   : > { %v2088_v61 = vpop.f32.mrb[41].mxu1  ;;  %v2000_v37 = vpop.f32.mrb[41].mxu0 }
 0x14c   : > { %v2089_v41 = vadd.f32 %v2088_v61, %v2087_v36  ;;  %v2090_v42 = vpop.f32.mrb[42].mxu1  ;;  %v2713_v23 = vadd.f32 %v2000_v37, %v1999_v18  ;;  %v2002_v5 = vpop.f32.mrb[42].mxu0  ;;  %v1612_v61 = vmul.f32 %v2735_v14, %v1579_v40 }
 0x14d   : > { %v2091_v43 = vpop.f32.mrb[43].mxu1  ;;  %v2003_v45 = vpop.f32.mrb[43].mxu0 }
 0x14e   : > { %v2092_v53 = vadd.f32 %v2091_v43, %v2090_v42  ;;  %v2717_v54 = vadd.f32 %v2003_v45, %v2002_v5  ;;  %v2719_v30 = vadd.f32 %v2089_v41, %v1178_v39  ;;  %v1615_v41 = vmul.f32 %v2735_v14, %v1582_v24 }
 0x14f   : > { %v1194_v42 = vadd.f32 %v2693_v59, %v2660_v38  ;;  %v1197_v59 = vadd.f32 %v2696_v63, %v2660_v38 }
 0x150   : > { %v2722_v55 = vadd.f32 %v2092_v53, %v1181_v49  ;;  %v1613_v49 = vmul.f32 %v2735_v14, %v1580_v25 }
 0x152   : > { %v2093_v19 = vpop.f32.mrb[44].mxu1  ;;  %v2005_v57 = vpop.f32.mrb[44].mxu0 }
 0x153   : > { %v2094_v58 = vpop.f32.mrb[45].mxu1  ;;  %v2006_v60 = vpop.f32.mrb[45].mxu0 }
 0x154   : > { %v2095_v0 = vadd.f32 %v2094_v58, %v2093_v19  ;;  %v2096_v35 = vpop.f32.mrb[46].mxu1  ;;  %v2733_v1 = vadd.f32 %v2006_v60, %v2005_v57  ;;  %v2008_v2 = vpop.f32.mrb[46].mxu0 }
 0x155   : > { %v2097_v12 = vpop.f32.mrb[47].mxu1  ;;  %v2009_v13 = vpop.f32.mrb[47].mxu0 }
 0x156   : > { %v2098_v6 = vadd.f32 %v2097_v12, %v2096_v35  ;;  %v2739_v15 = vadd.f32 %v2009_v13, %v2008_v2  ;;  %v2742_v21 = vadd.f32 %v2095_v0, %v1186_v26  ;;  %v1585_v0 = vld [vmem:[%s2729_s8 + $0x30] sm:$0xff]  ;;  %v1583_v12 = vld [vmem:[%s2729_s8 + $0x20] sm:$0xff]  ;;  %v1586_v13 = vld [vmem:[%s2729_s8 + $0x38] sm:$0xff] }
 0x157   : > { %v1616_v40 = vmul.f32 %v2735_v14, %v1583_v12 }
 0x158   : > { %v2746_v50 = vadd.f32 %v2098_v6, %v1189_v44  ;;  %v1618_v44 = vmul.f32 %v2735_v14, %v1585_v0  ;;  %v1584_v6 = vld [vmem:[%s2729_s8 + $0x28] sm:$0xff] }
 0x15a   : > { %v2099_v36 = vpop.f32.mrb[48].mxu1  ;;  %v2177_v18 = vpop.f32.mrb[48].mxu0 }
 0x15b   : > { %v1460_v46 = vadd.f32 %v2177_v18, %v2670_v7  ;;  %v2100_v37 = vpop.f32.mrb[49].mxu1  ;;  %v1451_v39 = vpop.f32.mrb[49].mxu0  ;;  %v1202_v18 = vadd.f32 %v2703_v20, %v2660_v38 }
 0x15c   : > { %v2101_v5 = vadd.f32 %v2100_v37, %v2099_v36  ;;  %v1452_v43 = vadd.f32 %v1451_v39, %v2664_v51  ;;  %v2102_v7 = vpop.f32.mrb[50].mxu1  ;;  %v2178_v45 = vpop.f32.mrb[50].mxu0  ;;  %v1619_v36 = vmul.f32 %v2735_v14, %v1586_v13  ;;  %v1210_v13 = vadd.f32 %v2713_v23, %v2660_v38 }
 0x15d   : > { %v1646_v53 = vadd.f32 %v1614_v11, %v1460_v46  ;;  %v1463_v19 = vadd.f32 %v2178_v45, %v2672_v8  ;;  %v2103_v57 = vpop.f32.mrb[51].mxu1  ;;  %v1454_v58 = vpop.f32.mrb[51].mxu0 }
 0x15e   : > { %v1644_v60 = vadd.f32 %v1612_v61, %v1452_v43  ;;  %v2104_v51 = vadd.f32 %v2103_v57, %v2102_v7  ;;  %v1455_v26 = vadd.f32 %v1454_v58, %v2666_v52  ;;  %v2769_v35 = vadd.f32 %v2101_v5, %v1194_v42  ;;  %v1590_v57 = vld [vmem:[%s2729_s8 + $0x58] sm:$0xff] }
 0x15f   : > { %1679 = vst.msk [vmem:[%s2760_s11 + $0x10] sm:$0xff] %vm1676_vm1, %v1646_v53  ;;  %v1647_v2 = vadd.f32 %v1615_v41, %v1463_v19  ;;  %v1617_v41 = vmul.f32 %v2735_v14, %v1584_v6  ;;  %v1587_v19 = vld [vmem:[%s2729_s8 + $0x40] sm:$0xff] }
 0x160   : > { %1677 = vst.msk [vmem:[%s2760_s11] sm:$0xff] %vm1676_vm1, %v1644_v60  ;;  %v1645_v63 = vadd.f32 %v1613_v49, %v1455_v26  ;;  %v2777_v8 = vadd.f32 %v2104_v51, %v1197_v59  ;;  %v1589_v49 = vld [vmem:[%s2729_s8 + $0x50] sm:$0xff]  ;;  %v1588_v60 = vld [vmem:[%s2729_s8 + $0x48] sm:$0xff]  ;;  %v1620_v26 = vmul.f32 %v2735_v14, %v1587_v19 }
 0x161   : > { %1680 = vst.msk [vmem:[%s2760_s11 + $0x18] sm:$0xff] %vm1676_vm1, %v1647_v2  ;;  %v1622_v58 = vmul.f32 %v2735_v14, %v1589_v49  ;;  %v1218_v49 = vadd.f32 %v2733_v1, %v2660_v38 }
 0x162   : > { %1678 = vst.msk [vmem:[%s2760_s11 + $0x8] sm:$0xff] %vm1676_vm1, %v1645_v63  ;;  %v2105_v52 = vpop.f32.mrb[52].mxu1  ;;  %v2181_v17 = vpop.f32.mrb[52].mxu0  ;;  %v1623_v63 = vmul.f32 %v2735_v14, %v1590_v57 }
 0x163   : > { %v1476_v24 = vadd.f32 %v2181_v17, %v2688_v47  ;;  %v2106_v11 = vpop.f32.mrb[53].mxu1  ;;  %v1467_v25 = vpop.f32.mrb[53].mxu0  ;;  %v1205_v47 = vadd.f32 %v2706_v31, %v2660_v38 }
 0x164   : > { %v2107_v61 = vadd.f32 %v2106_v11, %v2105_v52  ;;  %v1468_v46 = vadd.f32 %v1467_v25, %v2678_v27  ;;  %v2108_v37 = vpop.f32.mrb[54].mxu1  ;;  %v2182_v39 = vpop.f32.mrb[54].mxu0 }
 0x165   : > { %v1650_v42 = vadd.f32 %v1618_v44, %v1476_v24  ;;  %v1479_v5 = vadd.f32 %v2182_v39, %v2690_v48  ;;  %v2109_v43 = vpop.f32.mrb[55].mxu1  ;;  %v1470_v20 = vpop.f32.mrb[55].mxu0  ;;  %v1591_v39 = vld [vmem:[%s2729_s8 + $0x60] sm:$0xff] }
 0x166   : > { %v1648_v7 = vadd.f32 %v1616_v40, %v1468_v46  ;;  %v2110_v27 = vadd.f32 %v2109_v43, %v2108_v37  ;;  %v1471_v45 = vadd.f32 %v1470_v20, %v2680_v29  ;;  %v2797_v59 = vadd.f32 %v2107_v61, %v1202_v18  ;;  %v1593_v61 = vld [vmem:[%s2729_s8 + $0x70] sm:$0xff] }
 0x167   : > { %1683 = vst.msk [vmem:[%s2760_s11 + $0x30] sm:$0xff] %vm1676_vm1, %v1650_v42  ;;  %v1651_v53 = vadd.f32 %v1619_v36, %v1479_v5  ;;  %v1621_v40 = vmul.f32 %v2735_v14, %v1588_v60  ;;  %v1592_v42 = vld [vmem:[%s2729_s8 + $0x68] sm:$0xff]  ;;  %v1624_v43 = vmul.f32 %v2735_v14, %v1591_v39 }
 0x168   : > { %1681 = vst.msk [vmem:[%s2760_s11 + $0x20] sm:$0xff] %vm1676_vm1, %v1648_v7  ;;  %v1649_v31 = vadd.f32 %v1617_v41, %v1471_v45  ;;  %v2805_v48 = vadd.f32 %v2110_v27, %v1205_v47  ;;  %v1594_v41 = vld [vmem:[%s2729_s8 + $0x78] sm:$0xff]  ;;  %v1626_v47 = vmul.f32 %v2735_v14, %v1593_v61 }
 0x169   : > { %1684 = vst.msk [vmem:[%s2760_s11 + $0x38] sm:$0xff] %vm1676_vm1, %v1651_v53  ;;  %v1627_v45 = vmul.f32 %v2735_v14, %v1594_v41 }
 0x16a   : > { %1682 = vst.msk [vmem:[%s2760_s11 + $0x28] sm:$0xff] %vm1676_vm1, %v1649_v31  ;;  %v2111_v29 = vpop.f32.mrb[56].mxu1  ;;  %v2185_v51 = vpop.f32.mrb[56].mxu0 }
 0x16b   : > { %v1492_v0 = vadd.f32 %v2185_v51, %v2708_v32  ;;  %v2112_v2 = vpop.f32.mrb[57].mxu1  ;;  %v1483_v12 = vpop.f32.mrb[57].mxu0  ;;  %v1213_v32 = vadd.f32 %v2717_v54, %v2660_v38 }
 0x16c   : > { %v2113_v44 = vadd.f32 %v2112_v2, %v2111_v29  ;;  %v1484_v6 = vadd.f32 %v1483_v12, %v2698_v3  ;;  %v2114_v52 = vpop.f32.mrb[58].mxu1  ;;  %v2186_v17 = vpop.f32.mrb[58].mxu0  ;;  %v1597_v2 = vld [vmem:[%s2729_s8 + $0x90] sm:$0xff] }
 0x16d   : > { %v1654_v24 = vadd.f32 %v1622_v58, %v1492_v0  ;;  %v1495_v11 = vadd.f32 %v2186_v17, %v2710_v33  ;;  %v2115_v25 = vpop.f32.mrb[59].mxu1  ;;  %v1486_v23 = vpop.f32.mrb[59].mxu0  ;;  %v1625_v58 = vmul.f32 %v2735_v14, %v1592_v42 }
 0x16e   : > { %v1652_v36 = vadd.f32 %v1620_v26, %v1484_v6  ;;  %v2116_v3 = vadd.f32 %v2115_v25, %v2114_v52  ;;  %v1487_v18 = vadd.f32 %v1486_v23, %v2700_v9  ;;  %v2825_v46 = vadd.f32 %v2113_v44, %v1210_v13  ;;  %v1595_v13 = vld [vmem:[%s2729_s8 + $0x80] sm:$0xff]  ;;  %v1598_v44 = vld [vmem:[%s2729_s8 + $0x98] sm:$0xff]  ;;  %v1596_v52 = vld [vmem:[%s2729_s8 + $0x88] sm:$0xff] }
 0x16f   : > { %1687 = vst.msk [vmem:[%s2760_s11 + $0x50] sm:$0xff] %vm1676_vm1, %v1654_v24  ;;  %v1655_v37 = vadd.f32 %v1623_v63, %v1495_v11  ;;  %v1631_v25 = vmul.f32 %v2735_v14, %v1598_v44  ;;  %v1226_v23 = vadd.f32 %v2641_v56, %v2660_v38  ;;  %v1605_v44 = vld [vmem:[%s2729_s8 + $0xd0] sm:$0xff] }
 0x170   : > { %1685 = vst.msk [vmem:[%s2760_s11 + $0x40] sm:$0xff] %vm1676_vm1, %v1652_v36  ;;  %v1653_v54 = vadd.f32 %v1621_v40, %v1487_v18  ;;  %v2833_v33 = vadd.f32 %v2116_v3, %v1213_v32  ;;  %v1628_v40 = vmul.f32 %v2735_v14, %v1595_v13 }
 0x171   : > { %1688 = vst.msk [vmem:[%s2760_s11 + $0x58] sm:$0xff] %vm1676_vm1, %v1655_v37  ;;  %v1629_v37 = vmul.f32 %v2735_v14, %v1596_v52  ;;  %v1603_v52 = vld [vmem:[%s2729_s8 + $0xc0] sm:$0xff] }
 0x172   : > { %1686 = vst.msk [vmem:[%s2760_s11 + $0x48] sm:$0xff] %vm1676_vm1, %v1653_v54  ;;  %v2117_v9 = vpop.f32.mrb[60].mxu1  ;;  %v2189_v5 = vpop.f32.mrb[60].mxu0 }
 0x173   : > { %v1508_v20 = vadd.f32 %v2189_v5, %v2742_v21  ;;  %v2118_v7 = vpop.f32.mrb[61].mxu1  ;;  %v1499_v27 = vpop.f32.mrb[61].mxu0  ;;  %v1221_v21 = vadd.f32 %v2739_v15, %v2660_v38 }
 0x174   : > { %v2119_v53 = vadd.f32 %v2118_v7, %v2117_v9  ;;  %v1500_v19 = vadd.f32 %v1499_v27, %v2719_v30  ;;  %v2120_v31 = vpop.f32.mrb[62].mxu1  ;;  %v2190_v57 = vpop.f32.mrb[62].mxu0  ;;  %v1601_v9 = vld [vmem:[%s2729_s8 + $0xb0] sm:$0xff]  ;;  %v1602_v7 = vld [vmem:[%s2729_s8 + $0xb8] sm:$0xff] }
 0x175   : > { %v1658_v60 = vadd.f32 %v1626_v47, %v1508_v20  ;;  %v1511_v29 = vadd.f32 %v2190_v57, %v2746_v50  ;;  %v2121_v51 = vpop.f32.mrb[63].mxu1  ;;  %v1502_v1 = vpop.f32.mrb[63].mxu0  ;;  %v1630_v50 = vmul.f32 %v2735_v14, %v1597_v2  ;;  %v1599_v20 = vld [vmem:[%s2729_s8 + $0xa0] sm:$0xff] }
 0x176   : > { %v1656_v26 = vadd.f32 %v1624_v43, %v1500_v19  ;;  %v2122_v30 = vadd.f32 %v2121_v51, %v2120_v31  ;;  %v1503_v0 = vadd.f32 %v1502_v1, %v2722_v55  ;;  %v1379_v12 = vadd.f32 %v2119_v53, %v1218_v49 }
 0x177   : > { %1691 = vst.msk [vmem:[%s2760_s11 + $0x70] sm:$0xff] %vm1676_vm1, %v1658_v60  ;;  %v1659_v63 = vadd.f32 %v1627_v45, %v1511_v29  ;;  %v1600_v45 = vld [vmem:[%s2729_s8 + $0xa8] sm:$0xff]  ;;  %v1632_v53 = vmul.f32 %v2735_v14, %v1599_v20  ;;  %v1607_v20 = vld [vmem:[%s2729_s8 + $0xe0] sm:$0xff] }
 0x178   : > { %1689 = vst.msk [vmem:[%s2760_s11 + $0x60] sm:$0xff] %vm1676_vm1, %v1656_v26  ;;  %v1657_v15 = vadd.f32 %v1625_v58, %v1503_v0  ;;  %v1382_v6 = vadd.f32 %v2122_v30, %v1221_v21  ;;  %v1635_v58 = vmul.f32 %v2735_v14, %v1602_v7  ;;  %v1234_v21 = vadd.f32 %v2645_v4, %v2660_v38 }
 0x179   : > { %1692 = vst.msk [vmem:[%s2760_s11 + $0x78] sm:$0xff] %vm1676_vm1, %v1659_v63  ;;  %v1633_v26 = vmul.f32 %v2735_v14, %v1600_v45  ;;  %v1237_v30 = vadd.f32 %v2647_v10, %v2660_v38 }
 0x17a   : > { %1690 = vst.msk [vmem:[%s2760_s11 + $0x68] sm:$0xff] %vm1676_vm1, %v1657_v15  ;;  %v2123_v17 = vpop.f32.mrb[64].mxu1  ;;  %v2193_v55 = vpop.f32.mrb[64].mxu0 }
 0x17b   : > { %v1524_v32 = vadd.f32 %v2193_v55, %v2797_v59  ;;  %v2124_v24 = vpop.f32.mrb[65].mxu1  ;;  %v1515_v11 = vpop.f32.mrb[65].mxu0  ;;  %v1229_v59 = vadd.f32 %v2643_v62, %v2660_v38  ;;  %v1606_v55 = vld [vmem:[%s2729_s8 + $0xd8] sm:$0xff] }
 0x17c   : > { %v2125_v36 = vadd.f32 %v2124_v24, %v2123_v17  ;;  %v1516_v3 = vadd.f32 %v1515_v11, %v2769_v35  ;;  %v2126_v18 = vpop.f32.mrb[66].mxu1  ;;  %v2194_v61 = vpop.f32.mrb[66].mxu0  ;;  %v1636_v24 = vmul.f32 %v2735_v14, %v1603_v52 }
 0x17d   : > { %v1662_v39 = vadd.f32 %v1630_v50, %v1524_v32  ;;  %v1527_v54 = vadd.f32 %v2194_v61, %v2805_v48  ;;  %v2127_v41 = vpop.f32.mrb[67].mxu1  ;;  %v1518_v56 = vpop.f32.mrb[67].mxu0  ;;  %v1634_v48 = vmul.f32 %v2735_v14, %v1601_v9 }
 0x17e   : > { %v1660_v47 = vadd.f32 %v1628_v40, %v1516_v3  ;;  %v2128_v35 = vadd.f32 %v2127_v41, %v2126_v18  ;;  %v1519_v42 = vadd.f32 %v1518_v56, %v2777_v8  ;;  %v1387_v5 = vadd.f32 %v2125_v36, %v1226_v23  ;;  %v1604_v40 = vld [vmem:[%s2729_s8 + $0xc8] sm:$0xff] }
 0x17f   : > { %1695 = vst.msk [vmem:[%s2760_s11 + $0x90] sm:$0xff] %vm1676_vm1, %v1662_v39  ;;  %v1663_v43 = vadd.f32 %v1631_v25, %v1527_v54  ;;  %v1639_v36 = vmul.f32 %v2735_v14, %v1606_v55  ;;  %v1242_v3 = vadd.f32 %v2649_v16, %v2660_v38  ;;  %v1637_v39 = vmul.f32 %v2735_v14, %v1604_v40 }
 0x180   : > { %1693 = vst.msk [vmem:[%s2760_s11 + $0x80] sm:$0xff] %vm1676_vm1, %v1660_v47  ;;  %v1661_v62 = vadd.f32 %v1629_v37, %v1519_v42  ;;  %v1390_v27 = vadd.f32 %v2128_v35, %v1229_v59  ;;  %v1245_v54 = vadd.f32 %v2651_v22, %v2660_v38  ;;  %v1608_v22 = vld [vmem:[%s2729_s8 + $0xe8] sm:$0xff] }
 0x181   : > { %1696 = vst.msk [vmem:[%s2760_s11 + $0x98] sm:$0xff] %vm1676_vm1, %v1663_v43 }
 0x182   : > { %1694 = vst.msk [vmem:[%s2760_s11 + $0x88] sm:$0xff] %vm1676_vm1, %v1661_v62  ;;  %v2129_v49 = vpop.f32.mrb[68].mxu1  ;;  %v2197_v8 = vpop.f32.mrb[68].mxu0 }
 0x183   : > { %v1540_v19 = vadd.f32 %v2197_v8, %v1379_v12  ;;  %v2130_v31 = vpop.f32.mrb[69].mxu1  ;;  %v1531_v57 = vpop.f32.mrb[69].mxu0 }
 0x184   : > { %v2131_v60 = vadd.f32 %v2130_v31, %v2129_v49  ;;  %v1532_v29 = vadd.f32 %v1531_v57, %v2825_v46  ;;  %v2132_v51 = vpop.f32.mrb[70].mxu1  ;;  %v2198_v1 = vpop.f32.mrb[70].mxu0  ;;  %v1609_v49 = vld [vmem:[%s2729_s8 + $0xf0] sm:$0xff] }
 0x185   : > { %v1666_v0 = vadd.f32 %v1634_v48, %v1540_v19  ;;  %v1543_v2 = vadd.f32 %v2198_v1, %v1382_v6  ;;  %v2133_v12 = vpop.f32.mrb[71].mxu1  ;;  %v1534_v4 = vpop.f32.mrb[71].mxu0  ;;  %v1638_v6 = vmul.f32 %v2735_v14, %v1605_v44  ;;  %v1250_v19 = vadd.f32 %v2653_v28, %v2660_v38 }
 0x186   : > { %v1664_v63 = vadd.f32 %v1632_v53, %v1532_v29  ;;  %v2134_v13 = vadd.f32 %v2133_v12, %v2132_v51  ;;  %v1535_v46 = vadd.f32 %v1534_v4, %v2833_v33  ;;  %v1395_v15 = vadd.f32 %v2131_v60, %v1234_v21 }
 0x187   : > { %1699 = vst.msk [vmem:[%s2760_s11 + $0xb0] sm:$0xff] %vm1676_vm1, %v1666_v0  ;;  %v1667_v50 = vadd.f32 %v1635_v58, %v1543_v2  ;;  %v1641_v60 = vmul.f32 %v2735_v14, %v1608_v22  ;;  %v1253_v29 = vadd.f32 %v2655_v34, %v2660_v38  ;;  %v1642_v51 = vmul.f32 %v2735_v14, %v1609_v49 }
 0x188   : > { %1697 = vst.msk [vmem:[%s2760_s11 + $0xa0] sm:$0xff] %vm1676_vm1, %v1664_v63  ;;  %v1665_v10 = vadd.f32 %v1633_v26, %v1535_v46  ;;  %v1398_v17 = vadd.f32 %v2134_v13, %v1237_v30  ;;  %v1610_v26 = vld [vmem:[%s2729_s8 + $0xf8] sm:$0xff] }
 0x189   : > { %1700 = vst.msk [vmem:[%s2760_s11 + $0xb8] sm:$0xff] %vm1676_vm1, %v1667_v50  ;;  %v1643_v13 = vmul.f32 %v2735_v14, %v1610_v26 }
 0x18a   : > { %1698 = vst.msk [vmem:[%s2760_s11 + $0xa8] sm:$0xff] %vm1676_vm1, %v1665_v10  ;;  %v2135_v32 = vpop.f32.mrb[72].mxu1  ;;  %v2201_v33 = vpop.f32.mrb[72].mxu0 }
 0x18b   : > { %v1556_v11 = vadd.f32 %v2201_v33, %v1395_v15  ;;  %v2136_v25 = vpop.f32.mrb[73].mxu1  ;;  %v1547_v23 = vpop.f32.mrb[73].mxu0 }
 0x18c   : > { %v2137_v18 = vadd.f32 %v2136_v25, %v2135_v32  ;;  %v1548_v61 = vadd.f32 %v1547_v23, %v1387_v5  ;;  %v2138_v37 = vpop.f32.mrb[74].mxu1  ;;  %v2202_v59 = vpop.f32.mrb[74].mxu0 }
 0x18d   : > { %v1670_v41 = vadd.f32 %v1638_v6, %v1556_v11  ;;  %v1559_v56 = vadd.f32 %v2202_v59, %v1398_v17  ;;  %v2139_v47 = vpop.f32.mrb[75].mxu1  ;;  %v1550_v35 = vpop.f32.mrb[75].mxu0 }
 0x18e   : > { %v1668_v16 = vadd.f32 %v1636_v24, %v1548_v61  ;;  %v2140_v42 = vadd.f32 %v2139_v47, %v2138_v37  ;;  %v1551_v9 = vadd.f32 %v1550_v35, %v1390_v27  ;;  %v1403_v5 = vadd.f32 %v2137_v18, %v1242_v3 }
 0x18f   : > { %1703 = vst.msk [vmem:[%s2760_s11 + $0xd0] sm:$0xff] %vm1676_vm1, %v1670_v41  ;;  %v1671_v43 = vadd.f32 %v1639_v36, %v1559_v56  ;;  %v1640_v27 = vmul.f32 %v2735_v14, %v1607_v20 }
 0x190   : > { %1701 = vst.msk [vmem:[%s2760_s11 + $0xc0] sm:$0xff] %vm1676_vm1, %v1668_v16  ;;  %v1669_v62 = vadd.f32 %v1637_v39, %v1551_v9  ;;  %v1406_v7 = vadd.f32 %v2140_v42, %v1245_v54 }
 0x191   : > { %1704 = vst.msk [vmem:[%s2760_s11 + $0xd8] sm:$0xff] %vm1676_vm1, %v1671_v43 }
 0x192   : > { %1702 = vst.msk [vmem:[%s2760_s11 + $0xc8] sm:$0xff] %vm1676_vm1, %v1669_v62  ;;  %v2141_v48 = vpop.f32.mrb[76].mxu1  ;;  %v2205_v45 = vpop.f32.mrb[76].mxu0 }
 0x193   : > { %v2142_v8 = vpop.f32.mrb[77].mxu1  ;;  %v1563_v53 = vpop.f32.mrb[77].mxu0 }
 0x194   : > { %v2143_v31 = vadd.f32 %v2142_v8, %v2141_v48  ;;  %v1564_v57 = vadd.f32 %v1563_v53, %v1403_v5  ;;  %v2144_v58 = vpop.f32.mrb[78].mxu1  ;;  %v2206_v21 = vpop.f32.mrb[78].mxu0 }
 0x195   : > { %v2145_v1 = vpop.f32.mrb[79].mxu1  ;;  %v1566_v30 = vpop.f32.mrb[79].mxu0 }
 0x196   : > { %v1411_v0 = vadd.f32 %v2143_v31, %v1250_v19  ;;  %v1672_v28 = vadd.f32 %v1640_v27, %v1564_v57  ;;  %v2146_v2 = vadd.f32 %v2145_v1, %v2144_v58  ;;  %v1567_v12 = vadd.f32 %v1566_v30, %v1406_v7 }
 0x198   : > { %v1572_v4 = vadd.f32 %v2205_v45, %v1411_v0  ;;  %1705 = vst.msk [vmem:[%s2760_s11 + $0xe0] sm:$0xff] %vm1676_vm1, %v1672_v28  ;;  %v1414_v63 = vadd.f32 %v2146_v2, %v1253_v29  ;;  %v1673_v46 = vadd.f32 %v1641_v60, %v1567_v12 }
 0x19a   : > { %v1674_v34 = vadd.f32 %v1642_v51, %v1572_v4  ;;  %v1575_v38 = vadd.f32 %v2206_v21, %v1414_v63  ;;  %1706 = vst.msk [vmem:[%s2760_s11 + $0xe8] sm:$0xff] %vm1676_vm1, %v1673_v46 }
 0x19c   : > { %1707 = vst.msk [vmem:[%s2760_s11 + $0xf0] sm:$0xff] %vm1676_vm1, %v1674_v34  ;;  %v1675_v15 = vadd.f32 %v1643_v13, %v1575_v38 }
 0x19e   : > { %1708 = vst.msk [vmem:[%s2760_s11 + $0xf8] sm:$0xff] %vm1676_vm1, %v1675_v15 }
 0x19f PF: > { %s16_s20 = sadd.s32 1, %s2386_s20  }
 0x1a0   : > { %p13_p4 = scmp.ge.s32.totalorder %s16_s20, 4  }
 0x1a2   :  { %15 = sbr.rel (!%p13_p4) target bundleno = 2 (0x2), region = 73 }

// kernel: tile.9
= control target key start
LH: loop header
LB: loop body
LE: loop exit
PB: predicated region body
PF: predicated region fallthrough
CT: control target
= control target key end

     0   :  { %vm62_vm0 = vcmask 1047556   ;;  %s151_s30 = smov 36   ;;  %vm64_vm1 = vcmask 97280   ;;  %s152_s6 = smov 12   ;;  %vm79_vm2 = vcmask 392480   ;;  %vm96_vm3 = vcmask 294080   ;;  %s227_s0 = inlined_call_operand.vmem [shape: f32[4,12,12], index: 0, kind: input, shape index: {}]   ;;  %s228_s1 = inlined_call_operand.vmem [shape: f32[48,12], index: 1, kind: output, shape index: {}]  }
   0x1   :  { %v132_v0 = vld [vmem:[%s227_s0 + $0x2c] sm:$0xf]  ;;  %v133_v1 = vld [vmem:[%s227_s0 + $0x28] sm:$0xf]  ;;  %v134_v2 = vld [vmem:[%s227_s0 + $0x24] sm:$0xf] }
   0x2   :  { %8 = vst [vmem:[#allocation0 + $0x58] sm:$0xf] %v132_v0  ;;  %13 = vst [vmem:[#allocation0 + $0x50] sm:$0xf] %v133_v1  ;;  %v135_v3 = vld [vmem:[%s227_s0 + $0x20] sm:$0xf] }
   0x3   :  { %18 = vst [vmem:[#allocation0 + $0x48] sm:$0xf] %v134_v2  ;;  %v136_v4 = vld [vmem:[%s227_s0 + $0x1c] sm:$0xf]  ;;  %23 = vst [vmem:[#allocation0 + $0x40] sm:$0xf] %v135_v3 }
   0x4   :  { %28 = vst [vmem:[#allocation0 + $0x38] sm:$0xf] %v136_v4  ;;  %v137_v5 = vld [vmem:[%s227_s0 + $0x18] sm:$0xf]  ;;  %v138_v6 = vld [vmem:[%s227_s0 + $0x14] sm:$0xf] }
   0x5   :  { %v139_v7 = vld [vmem:[%s227_s0 + $0x10] sm:$0xf]  ;;  %33 = vst [vmem:[#allocation0 + $0x30] sm:$0xf] %v137_v5  ;;  %38 = vst [vmem:[#allocation0 + $0x28] sm:$0xf] %v138_v6 }
   0x6   :  { %43 = vst [vmem:[#allocation0 + $0x20] sm:$0xf] %v139_v7  ;;  %v140_v8 = vld [vmem:[%s227_s0 + $0xc] sm:$0xf]  ;;  %v141_v9 = vld [vmem:[%s227_s0 + $0x8] sm:$0xf] }
   0x7   :  { %v142_v10 = vld [vmem:[%s227_s0 + $0x4] sm:$0xf]  ;;  %48 = vst [vmem:[#allocation0 + $0x18] sm:$0xf] %v140_v8  ;;  %53 = vst [vmem:[#allocation0 + $0x10] sm:$0xf] %v141_v9 }
   0x8   :  { %57 = vst [vmem:[#allocation0 + $0x8] sm:$0xf] %v142_v10  ;;  %v58_v11 = vld [vmem:[%s227_s0] sm:$0xf]  ;;  %s150_s0 = smov 24   ;;  %vm113_vm4 = vcmask 195680  }
   0x9   :  { %59 = vst [vmem:[#allocation0] sm:$0xf] %v58_v11 }
   0xa   :  { %v99_v12 = vld [vmem:[#allocation0 + $0x42] ss:$8 sm:$0xf]   ;;  %v82_v13 = vld [vmem:[#allocation0 + $0x43] ss:$8 sm:$0xf]  }
   0xb   :  { %100 = vrot.lane.b32.xlu1 %v99_v12, %s150_s0  ;;  %83 = vrot.lane.b32.xlu0 %v82_v13, %s151_s30  ;;  %v67_v22 = vld [vmem:[#allocation0 + $0x40] ss:$8 sm:$0xf]   ;;  %v116_v25 = vld [vmem:[#allocation0 + $0x41] ss:$8 sm:$0xf]  }
   0xc   :  { %143 = vst.msk [vmem:[%s228_s1 + $0x8] sm:$0xf] %vm64_vm1, %v67_v22  }
   0xd   :  { %v91_v14 = vld [vmem:[#allocation0 + $0x2] ss:$8 sm:$0xf0]   ;;  %v74_v15 = vld [vmem:[#allocation0 + $0x3] ss:$8 sm:$0xf0]  }
   0xe   :  { %v108_v16 = vld [vmem:[#allocation0 + $0x1] ss:$8 sm:$0xf0]   ;;  %v61_v24 = vld [vmem:[#allocation0] ss:$8 sm:$0xf0]  }
  0x10   :  { %v89_v17 = vld [vmem:[#allocation0 + $0x2] ss:$8 sm:$0xf]   ;;  %v72_v18 = vld [vmem:[#allocation0 + $0x3] ss:$8 sm:$0xf]  }
  0x11   :  { %v93_v19 = vsel %vm62_vm0, %v91_v14, %v89_v17  ;;  %v76_v20 = vsel %vm62_vm0, %v74_v15, %v72_v18  ;;  %v106_v21 = vld [vmem:[#allocation0 + $0x1] ss:$8 sm:$0xf]   ;;  %v60_v23 = vld [vmem:[#allocation0] ss:$8 sm:$0xf]  }
  0x12   :  { %94 = vrot.lane.b32.xlu1 %v93_v19, %s150_s0  ;;  %77 = vrot.lane.b32.xlu0 %v76_v20, %s151_s30  ;;  %v110_v26 = vsel %vm62_vm0, %v108_v16, %v106_v21  ;;  %v63_v27 = vsel %vm62_vm0, %v61_v24, %v60_v23 }
  0x13   :  { %65 = vst.msk [vmem:[%s228_s1] sm:$0xff] %vm64_vm1, %v63_v27  }
  0x16   :  { %117 = vrot.lane.b32.xlu1 %v116_v25, %s152_s6  ;;  %111 = vrot.lane.b32.xlu0 %v110_v26, %s152_s6 }
  0x7d   :  { %v101_v28 = vpop.permute.xlu1 %100   ;;  %v84_v29 = vpop.permute.xlu0 %83  }
  0x7e   :  { %144 = vst.msk [vmem:[%s228_s1 + $0x8] sm:$0xf] %vm79_vm2, %v84_v29  }
  0x7f   :  { %145 = vst.msk [vmem:[%s228_s1 + $0x8] sm:$0xf] %vm96_vm3, %v101_v28  }
  0x84   :  { %v95_v30 = vpop.permute.xlu1 %94   ;;  %v78_v31 = vpop.permute.xlu0 %77  }
  0x85   :  { %80 = vst.msk [vmem:[%s228_s1] sm:$0xff] %vm79_vm2, %v78_v31  }
  0x86   :  { %97 = vst.msk [vmem:[%s228_s1] sm:$0xff] %vm96_vm3, %v95_v30  }
  0x88   :  { %v118_v32 = vpop.permute.xlu1 %117   ;;  %v112_v33 = vpop.permute.xlu0 %111  }
  0x89   :  { %146 = vst.msk [vmem:[%s228_s1 + $0x8] sm:$0xf] %vm113_vm4, %v118_v32   ;;  %114 = vst.msk [vmem:[%s228_s1] sm:$0xff] %vm113_vm4, %v112_v33  }

// kernel: model_forward.37
= control target key start
LH: loop header
LB: loop body
LE: loop exit
PB: predicated region body
PF: predicated region fallthrough
CT: control target
= control target key end

     0   :  { %s2991_s20 = smov 0   ;;  %s3613_s0 = inlined_call_operand.vmem [shape: bf16[512,648], index: 0, kind: input, shape index: {}]   ;;  %s3614_s1 = inlined_call_operand.vmem [shape: bf16[648,48], index: 1, kind: input, shape index: {}]   ;;  %s3615_s2 = inlined_call_operand.vmem [shape: f32[1,48], index: 2, kind: input, shape index: {}]   ;;  %s3616_s3 = inlined_call_operand.vmem [shape: f32[48,12], index: 3, kind: input, shape index: {}]   ;;  %s3617_s4 = inlined_call_operand.<no memory space> [shape: f32[1], index: 4, kind: input, shape index: {}]   ;;  %s3618_s5 = inlined_call_operand.vmem [shape: f32[512,12], index: 5, kind: output, shape index: {}]  }
   0x1   :  { %10 = sst [smem:[#allocation2]] %s3617_s4 }
   0x2 LB: > { %s2207_s21 = sadd.s32 4294967295, %s2955_s20   ;;  %p2211_p0 = scmp.ge.s32.totalorder %s2955_s20, 1  ;;  %s2955_s20 = sphi %s2991_s20, %s16_s20  }
   0x3   : > { %p190_p1 = scmp.lt.s32.totalorder %s2955_s20, 3 }
   0x5   : > { %p191_p2 = pnand %p2211_p0, %p190_p1 }
   0x6   : > { %v2764_v0 = vld [vmem:[%s3614_s1 + $0x40] sm:$0xff] (!%p191_p2)   ;;  %s2212_s4 = sshll.u32 (!%p191_p2), %s2207_s21, 5  ;;  %v2766_v2 = vld [vmem:[%s3614_s1 + $0x48] sm:$0xff] (!%p191_p2)   ;;  %v2768_v4 = vld [vmem:[%s3614_s1 + $0x50] sm:$0xff] (!%p191_p2)   ;;  %v2957_v24 = vmov (!%p191_p2), 0   ;;  %vm1173_vm0 = vcmask (!%p191_p2), 1043456  }
   0x7   : > { %194 = sbr.rel (%p191_p2) target bundleno = 691 (0x2b3), region = 40  ;;  %v2765_v1 = vld [vmem:[%s3614_s1] sm:$0xff] (!%p191_p2)   ;;  %2404 = vmatprep.subr.bf16.mxu0 (!%p191_p2), %v2764_v0  ;;  %2738 = vmatprep.subr.bf16.mxu1 (!%p191_p2), %v2764_v0  ;;  %p220_p3 = scmp.lt.s32.totalorder (!%p191_p2), %s2212_s4, 63  ;;  %v2767_v3 = vld [vmem:[%s3614_s1 + $0x8] sm:$0xff] (!%p191_p2)   ;;  %v2769_v5 = vld [vmem:[%s3614_s1 + $0x10] sm:$0xff] (!%p191_p2)   ;;  %vm1124_vm1 = vcmask (!%p191_p2), 64512  }
   0x8   : > { %2405 = vmatpush3.bf16.msra.mxu0 (!%p191_p2), %v2765_v1  ;;  %2746 = vmatpush3.bf16.msra.mxu1 (!%p191_p2), %v2765_v1  ;;  %v2770_v6 = vld [vmem:[%s3614_s1 + $0x58] sm:$0xff] (!%p191_p2)   ;;  %v2772_v8 = vld [vmem:[%s3614_s1 + $0x60] sm:$0xff] (!%p191_p2)   ;;  %v2774_v10 = vld [vmem:[%s3614_s1 + $0x68] sm:$0xff] (!%p191_p2)   ;;  %s1660_s28 = sld [smem:[#allocation2]] (!%p191_p2)  ;;  %vm1796_vm2 = vcmask (!%p191_p2), 392192   ;;  %vm2118_vm3 = vcmask (!%p191_p2), 97280  }
   0x9   : > { %2406 = vmatprep.subr.bf16.mxu0 (!%p191_p2), %v2766_v2  ;;  %2739 = vmatprep.subr.bf16.mxu1 (!%p191_p2), %v2766_v2  ;;  %v2771_v7 = vld [vmem:[%s3614_s1 + $0x18] sm:$0xff] (!%p191_p2)   ;;  %v2773_v9 = vld [vmem:[%s3614_s1 + $0x20] sm:$0xff] (!%p191_p2)   ;;  %v2775_v13 = vld [vmem:[%s3614_s1 + $0x28] sm:$0xff] (!%p191_p2)  }
   0xa   : > { %v2776_v14 = vld [vmem:[%s3614_s1 + $0x70] sm:$0xff] (!%p191_p2)   ;;  %v2778_v16 = vld [vmem:[%s3614_s1 + $0x78] sm:$0xff] (!%p191_p2)   ;;  %v2786_v20 = vld [vmem:[%s3614_s1 + $0xc0] sm:$0xff] (!%p191_p2)  }
   0xb   : > { %v2777_v15 = vld [vmem:[%s3614_s1 + $0x30] sm:$0xff] (!%p191_p2)   ;;  %v2779_v17 = vld [vmem:[%s3614_s1 + $0x38] sm:$0xff] (!%p191_p2)   ;;  %v2787_v21 = vld [vmem:[%s3614_s1 + $0x80] sm:$0xff] (!%p191_p2)  }
   0xc   : > { %2407 = vmatpush3.bf16.msra.mxu0 (!%p191_p2), %v2767_v3  ;;  %2747 = vmatpush3.bf16.msra.mxu1 (!%p191_p2), %v2767_v3  ;;  %v2788_v22 = vld [vmem:[%s3614_s1 + $0x100] sm:$0xff] (!%p191_p2)   ;;  %v2789_v23 = vld [vmem:[%s3614_s1 + $0xc8] sm:$0xff] (!%p191_p2)   ;;  %v2797_v31 = vld [vmem:[%s3614_s1 + $0xd0] sm:$0xff] (!%p191_p2)  }
   0xd   : > { %2408 = vmatprep.subr.bf16.mxu0 (!%p191_p2), %v2768_v4  ;;  %2740 = vmatprep.subr.bf16.mxu1 (!%p191_p2), %v2768_v4  ;;  %v2790_v27 = vld [vmem:[%s3614_s1 + $0x88] sm:$0xff] (!%p191_p2)   ;;  %v2798_v32 = vld [vmem:[%s3614_s1 + $0x90] sm:$0xff] (!%p191_p2)   ;;  %v2799_v33 = vld [vmem:[%s3614_s1 + $0xd8] sm:$0xff] (!%p191_p2)  }
   0xe   : > { %s3620_s4 = smov (!%p220_p3, %s2212_s4), 63  ;;  %v2800_v28 = vld [vmem:[%s3614_s1 + $0x108] sm:$0xff]   ;;  %v2816_v36 = vld [vmem:[%s3614_s1 + $0x110] sm:$0xff]   ;;  %v2801_v37 = vld [vmem:[%s3614_s1 + $0x98] sm:$0xff]  }
   0xf   : > { %s2754_s11 = smul.u32 24, %s3620_s4  ;;  %v2808_v39 = vld [vmem:[%s3614_s1 + $0xe0] sm:$0xff]   ;;  %v2810_v42 = vld [vmem:[%s3614_s1 + $0xe8] sm:$0xff]   ;;  %v2829_v45 = vld [vmem:[%s3614_s1 + $0x118] sm:$0xff]   ;;  %s2215_s29 = sshll.u32 %s3620_s4, 3 }
  0x10   : > { %2409 = vmatpush3.bf16.msra.mxu0 %v2769_v5  ;;  %2748 = vmatpush3.bf16.msra.mxu1 %v2769_v5  ;;  %v2809_v41 = vld [vmem:[%s3614_s1 + $0xa0] sm:$0xff]   ;;  %v2811_v46 = vld [vmem:[%s3614_s1 + $0xa8] sm:$0xff]   ;;  %v2819_v49 = vld [vmem:[%s3614_s1 + $0xf0] sm:$0xff]   ;;  %s3544_s7 = scalar_lea.vmem %s3618_s5, %s2215_s29 }
  0x11   : > { %2410 = vmatprep.subr.bf16.mxu0 %v2770_v6  ;;  %2741 = vmatprep.subr.bf16.mxu1 %v2770_v6  ;;  %s3032_s18 = scalar_lea.vmem %s3613_s0, %s2754_s11  ;;  %v2836_v50 = vld [vmem:[%s3614_s1 + $0x120] sm:$0xff]   ;;  %v2820_v51 = vld [vmem:[%s3614_s1 + $0xb0] sm:$0xff]   ;;  %v2821_v52 = vld [vmem:[%s3614_s1 + $0xf8] sm:$0xff]  }
  0x12   : > { %v2782_v11 = vld [vmem:[%s3032_s18 + $0x4] ss:$24 sps:$4 sm:$0xff]   ;;  %v2780_v18 = vld [vmem:[%s3032_s18] ss:$24 sps:$4 sm:$0xff]   ;;  %v2791_v25 = vld [vmem:[%s3032_s18 + $0x34] ss:$24 sps:$4 sm:$0xff]  }
  0x13   : > { %v2785_v12 = vld [vmem:[%s3032_s18 + $0x244] ss:$24 sps:$4 sm:$0xff]   ;;  %1209 = vmatprep.mubr.bf16.mxu0 %v2782_v11  ;;  %v2783_v19 = vld [vmem:[%s3032_s18 + $0x240] ss:$24 sps:$4 sm:$0xff]   ;;  %v2793_v26 = vld [vmem:[%s3032_s18 + $0x274] ss:$24 sps:$4 sm:$0xff]  }
  0x14   : > { %2411 = vmatpush3.bf16.msra.mxu0 %v2771_v7  ;;  %2749 = vmatpush3.bf16.msra.mxu1 %v2771_v7  ;;  %v2795_v29 = vld [vmem:[%s3032_s18 + $0x30] ss:$24 sps:$4 sm:$0xff]   ;;  %v2802_v34 = vld [vmem:[%s3032_s18 + $0x64] ss:$24 sps:$4 sm:$0xff]   ;;  %v2806_v38 = vld [vmem:[%s3032_s18 + $0x60] ss:$24 sps:$4 sm:$0xff]  }
  0x15   : > { %2412 = vmatprep.subr.bf16.mxu0 %v2772_v8  ;;  %2742 = vmatprep.subr.bf16.mxu1 %v2772_v8  ;;  %v2796_v30 = vld [vmem:[%s3032_s18 + $0x270] ss:$24 sps:$4 sm:$0xff]   ;;  %v2804_v35 = vld [vmem:[%s3032_s18 + $0x2a4] ss:$24 sps:$4 sm:$0xff]   ;;  %v2807_v40 = vld [vmem:[%s3032_s18 + $0x2a0] ss:$24 sps:$4 sm:$0xff]  }
  0x16   : > { %1305 = vmatprep.mubr.bf16.mxu1 %v2785_v12  ;;  %v2812_v43 = vld [vmem:[%s3032_s18 + $0x94] ss:$24 sps:$4 sm:$0xff]   ;;  %v2817_v47 = vld [vmem:[%s3032_s18 + $0x90] ss:$24 sps:$4 sm:$0xff]   ;;  %v2823_v53 = vld [vmem:[%s3032_s18 + $0xc4] ss:$24 sps:$4 sm:$0xff]  }
  0x17   : > { %v2814_v44 = vld [vmem:[%s3032_s18 + $0x2d4] ss:$24 sps:$4 sm:$0xff]   ;;  %v2818_v48 = vld [vmem:[%s3032_s18 + $0x2d0] ss:$24 sps:$4 sm:$0xff]   ;;  %v2822_v56 = vld [vmem:[%s3614_s1 + $0xb8] sm:$0xff]  }
  0x18   : > { %2413 = vmatpush3.bf16.msra.mxu0 %v2773_v9  ;;  %2750 = vmatpush3.bf16.msra.mxu1 %v2773_v9  ;;  %v2827_v54 = vld [vmem:[%s3032_s18 + $0xc] ss:$24 sps:$4 sm:$0xff]   ;;  %v2825_v57 = vld [vmem:[%s3032_s18 + $0x8] ss:$24 sps:$4 sm:$0xff]   ;;  %v2832_v60 = vld [vmem:[%s3032_s18 + $0x3c] ss:$24 sps:$4 sm:$0xff]  }
  0x19   : > { %2414 = vmatprep.subr.bf16.mxu0 %v2774_v10  ;;  %2743 = vmatprep.subr.bf16.mxu1 %v2774_v10  ;;  %v2847_v55 = vld [vmem:[%s3614_s1 + $0x128] sm:$0xff]   ;;  %v2828_v58 = vld [vmem:[%s3032_s18 + $0xc0] ss:$24 sps:$4 sm:$0xff]   ;;  %v2856_v61 = vld [vmem:[%s3614_s1 + $0x130] sm:$0xff]  }
  0x1a   : > { %v2830_v59 = vld [vmem:[%s3032_s18 + $0xf4] ss:$24 sps:$4 sm:$0xff]   ;;  %v2834_v62 = vld [vmem:[%s3032_s18 + $0xf0] ss:$24 sps:$4 sm:$0xff]   ;;  %v2863_v63 = vld [vmem:[%s3614_s1 + $0x138] sm:$0xff]  }
  0x1b   : > { %v2835_v0 = vld [vmem:[%s3032_s18 + $0x38] ss:$24 sps:$4 sm:$0xff]   ;;  %v2837_v1 = vld [vmem:[%s3032_s18 + $0x124] ss:$24 sps:$4 sm:$0xff]   ;;  %v2874_v3 = vld [vmem:[%s3614_s1 + $0x140] ss:$0 sps:$4 sm:$0xff]  }
  0x1c   : > { %2415 = vmatpush3.bf16.msra.mxu0 %v2775_v13  ;;  %2751 = vmatpush3.bf16.msra.mxu1 %v2775_v13  ;;  %v2839_v2 = vld [vmem:[%s3032_s18 + $0x6c] ss:$24 sps:$4 sm:$0xff]   ;;  %v1175_v4 = vsel %vm1173_vm0, %v2874_v3, 0  ;;  %v2841_v5 = vld [vmem:[%s3032_s18 + $0x120] ss:$24 sps:$4 sm:$0xff]   ;;  %v1792_v3 = vld [vmem:[%s3616_s3 + $0x10] sm:$0xff] }
  0x1d   : > { %2416 = vmatprep.subr.bf16.mxu0 %v2776_v14  ;;  %2744 = vmatprep.subr.bf16.mxu1 %v2776_v14  ;;  %v2842_v6 = vld [vmem:[%s3032_s18 + $0x68] ss:$24 sps:$4 sm:$0xff]   ;;  %v2843_v7 = vld [vmem:[%s3032_s18 + $0x154] ss:$24 sps:$4 sm:$0xff]   ;;  %v2849_v10 = vld [vmem:[%s3032_s18 + $0x98] ss:$24 sps:$4 sm:$0xff]  }
  0x1e   : > { %v2845_v8 = vld [vmem:[%s3032_s18 + $0x9c] ss:$24 sps:$4 sm:$0xff]   ;;  %v2848_v9 = vld [vmem:[%s3032_s18 + $0x150] ss:$24 sps:$4 sm:$0xff]   ;;  %v2852_v12 = vld [vmem:[%s3032_s18 + $0xcc] ss:$24 sps:$4 sm:$0xff]  }
  0x1f   : > { %v2850_v11 = vld [vmem:[%s3032_s18 + $0x184] ss:$24 sps:$4 sm:$0xff]   ;;  %v2854_v13 = vld [vmem:[%s3032_s18 + $0x180] ss:$24 sps:$4 sm:$0xff]  }
  0x20   : > { %2417 = vmatpush3.bf16.msra.mxu0 %v2777_v15  ;;  %2752 = vmatpush3.bf16.msra.mxu1 %v2777_v15  ;;  %v2855_v14 = vld [vmem:[%s3032_s18 + $0xc8] ss:$24 sps:$4 sm:$0xff]   ;;  %v2857_v15 = vld [vmem:[%s3032_s18 + $0x1b4] ss:$24 sps:$4 sm:$0xff]  }
  0x21   : > { %2418 = vmatprep.subr.bf16.mxu0 %v2778_v16  ;;  %2745 = vmatprep.subr.bf16.mxu1 %v2778_v16  ;;  %v2859_v16 = vld [vmem:[%s3032_s18 + $0xfc] ss:$24 sps:$4 sm:$0xff]  }
  0x24   : > { %2419 = vmatpush3.bf16.msra.mxu0 %v2779_v17  ;;  %2753 = vmatpush3.bf16.msra.mxu1 %v2779_v17  ;;  %v2861_v17 = vld [vmem:[%s3032_s18 + $0x1b0] ss:$24 sps:$4 sm:$0xff]  }
  0x25   : > { %2516 = vmatprep.subr.bf16.mxu1 %v2786_v20  ;;  %1499 = vmatprep.subr.bf16.mxu0 %v2957_v24  ;;  %v2866_v20 = vld [vmem:[%s3032_s18 + $0x12c] ss:$24 sps:$4 sm:$0xff]  }
  0x27   : > { %1210 = vmatmul.mubr.bf16.vlgmr.msra.gmra.mrb[0].mxu0 %v2780_v18  ;;  %1306 = vmatmul.mubr.bf16.vlgmr.msra.gmra.mrb[0].mxu1 %v2783_v19  ;;  %v2862_v18 = vld [vmem:[%s3032_s18 + $0xf8] ss:$24 sps:$4 sm:$0xff]   ;;  %v2864_v19 = vld [vmem:[%s3032_s18 + $0x1e4] ss:$24 sps:$4 sm:$0xff]  }
  0x28   : > { %2517 = vmatpush3.bf16.msra.mxu1 %v2787_v21  ;;  %1500 = vmatpush1.bf16.msra.mxu0 %v2788_v22  ;;  %v2868_v21 = vld [vmem:[%s3032_s18 + $0x1e0] ss:$24 sps:$4 sm:$0xff]  }
  0x29   : > { %2518 = vmatprep.subr.bf16.mxu1 %v2789_v23  ;;  %1217 = vmatprep.mubr.bf16.mxu0 %v2791_v25  ;;  %v2869_v22 = vld [vmem:[%s3032_s18 + $0x128] ss:$24 sps:$4 sm:$0xff]   ;;  %v2870_v23 = vld [vmem:[%s3032_s18 + $0x214] ss:$24 sps:$4 sm:$0xff]  }
  0x2a   : > { %1313 = vmatprep.mubr.bf16.mxu1 %v2793_v26  ;;  %1501 = vmatprep.subr.bf16.mxu0 %v2957_v24  ;;  %v2875_v25 = vld [vmem:[%s3032_s18 + $0x210] ss:$24 sps:$4 sm:$0xff]  }
  0x2b   : > { %v2876_v26 = vld [vmem:[%s3032_s18 + $0x158] ss:$24 sps:$4 sm:$0xff]  }
  0x2c   : > { %2519 = vmatpush3.bf16.msra.mxu1 %v2790_v27  ;;  %1502 = vmatpush1.bf16.msra.mxu0 %v2800_v28  ;;  %v2877_v27 = vld [vmem:[%s3032_s18 + $0x18c] ss:$24 sps:$4 sm:$0xff]  }
  0x2d   : > { %2520 = vmatprep.subr.bf16.mxu1 %v2797_v31  ;;  %1503 = vmatprep.subr.bf16.mxu0 %v2957_v24  ;;  %v2881_v28 = vld [vmem:[%s3032_s18 + $0x14] ss:$24 sps:$4 sm:$0xff]  }
  0x2e   : > { %v2883_v31 = vld [vmem:[%s3032_s18 + $0x1bc] ss:$24 sps:$4 sm:$0xff]  }
  0x2f   : > { %1218 = vmatmul.mubr.bf16.gmra.mrb[4].mxu0 %v2795_v29  ;;  %1314 = vmatmul.mubr.bf16.gmra.mrb[4].mxu1 %v2796_v30  ;;  %v2879_v29 = vld [vmem:[%s3032_s18 + $0x10] ss:$24 sps:$4 sm:$0xff]  }
  0x30   : > { %2521 = vmatpush3.bf16.msra.mxu1 %v2798_v32  ;;  %1225 = vmatprep.mubr.bf16.mxu0 %v2802_v34  ;;  %v2882_v30 = vld [vmem:[%s3032_s18 + $0x188] ss:$24 sps:$4 sm:$0xff]   ;;  %v2885_v32 = vld [vmem:[%s3032_s18 + $0x44] ss:$24 sps:$4 sm:$0xff]  }
  0x31   : > { %2522 = vmatprep.subr.bf16.mxu1 %v2799_v33  ;;  %1321 = vmatprep.mubr.bf16.mxu1 %v2804_v35  ;;  %v2887_v33 = vld [vmem:[%s3032_s18 + $0x1b8] ss:$24 sps:$4 sm:$0xff]   ;;  %v2889_v35 = vld [vmem:[%s3032_s18 + $0x1ec] ss:$24 sps:$4 sm:$0xff]  }
  0x32   : > { %1504 = vmatpush1.bf16.msra.mxu0 %v2816_v36  ;;  %v2888_v34 = vld [vmem:[%s3032_s18 + $0x40] ss:$24 sps:$4 sm:$0xff]   ;;  %v2891_v36 = vld [vmem:[%s3032_s18 + $0x74] ss:$24 sps:$4 sm:$0xff]  }
  0x33   : > { %1505 = vmatprep.subr.bf16.mxu0 %v2957_v24 }
  0x34   : > { %2523 = vmatpush3.bf16.msra.mxu1 %v2801_v37  ;;  %v2893_v37 = vld [vmem:[%s3032_s18 + $0x1e8] ss:$24 sps:$4 sm:$0xff]  }
  0x35   : > { %2524 = vmatprep.subr.bf16.mxu1 %v2808_v39  ;;  %v2895_v39 = vld [vmem:[%s3032_s18 + $0x21c] ss:$24 sps:$4 sm:$0xff]  }
  0x36   : > { %1506 = vmatpush1.bf16.msra.mxu0 %v2829_v45  ;;  %v1790_v45 = vld [vmem:[%s3616_s3] sm:$0xff] }
  0x37   : > { %1226 = vmatmul.mubr.bf16.gmra.mrb[8].mxu0 %v2806_v38  ;;  %1322 = vmatmul.mubr.bf16.gmra.mrb[8].mxu1 %v2807_v40  ;;  %v2894_v38 = vld [vmem:[%s3032_s18 + $0x70] ss:$24 sps:$4 sm:$0xff]   ;;  %v2897_v40 = vld [vmem:[%s3032_s18 + $0xa4] ss:$24 sps:$4 sm:$0xff]  }
  0x38   : > { %2525 = vmatpush3.bf16.msra.mxu1 %v2809_v41  ;;  %1233 = vmatprep.mubr.bf16.mxu0 %v2812_v43  ;;  %v2899_v41 = vld [vmem:[%s3032_s18 + $0x218] ss:$24 sps:$4 sm:$0xff]   ;;  %v2901_v43 = vld [vmem:[%s3032_s18 + $0x24c] ss:$24 sps:$4 sm:$0xff]  }
  0x39   : > { %2526 = vmatprep.subr.bf16.mxu1 %v2810_v42  ;;  %1329 = vmatprep.mubr.bf16.mxu1 %v2814_v44  ;;  %v2900_v42 = vld [vmem:[%s3032_s18 + $0xa0] ss:$24 sps:$4 sm:$0xff]   ;;  %v2903_v44 = vld [vmem:[%s3032_s18 + $0xd4] ss:$24 sps:$4 sm:$0xff]  }
  0x3a   : > { %1507 = vmatprep.subr.bf16.mxu0 %v2957_v24 }
  0x3b   : > { %1508 = vmatpush1.bf16.msra.mxu0 %v2836_v50  ;;  %v2907_v50 = vld [vmem:[%s3032_s18 + $0x27c] ss:$24 sps:$4 sm:$0xff]  }
  0x3c   : > { %2527 = vmatpush3.bf16.msra.mxu1 %v2811_v46  ;;  %1509 = vmatprep.subr.bf16.mxu0 %v2957_v24  ;;  %v1791_v46 = vld [vmem:[%s3616_s3 + $0x8] sm:$0xff] }
  0x3d   : > { %2528 = vmatprep.subr.bf16.mxu1 %v2819_v49  ;;  %v2906_v49 = vld [vmem:[%s3032_s18 + $0xd0] ss:$24 sps:$4 sm:$0xff]  }
  0x3f   : > { %1234 = vmatmul.mubr.bf16.gmra.mrb[12].mxu0 %v2817_v47  ;;  %1330 = vmatmul.mubr.bf16.gmra.mrb[12].mxu1 %v2818_v48  ;;  %v2726_v47 = vpack.c.bf16 %v1791_v46, %v1790_v45  ;;  %v2905_v48 = vld [vmem:[%s3032_s18 + $0x248] ss:$24 sps:$4 sm:$0xff]  }
  0x40   : > { %2529 = vmatpush3.bf16.msra.mxu1 %v2820_v51  ;;  %1241 = vmatprep.mubr.bf16.mxu0 %v2823_v53  ;;  %v2909_v51 = vld [vmem:[%s3032_s18 + $0x104] ss:$24 sps:$4 sm:$0xff]   ;;  %v2912_v53 = vld [vmem:[%s3032_s18 + $0x100] ss:$24 sps:$4 sm:$0xff]  }
  0x41   : > { %2530 = vmatprep.subr.bf16.mxu1 %v2821_v52  ;;  %1370 = vmatprep.mubr.bf16.mxu1 %v2827_v54  ;;  %v2911_v52 = vld [vmem:[%s3032_s18 + $0x278] ss:$24 sps:$4 sm:$0xff]   ;;  %v2913_v54 = vld [vmem:[%s3032_s18 + $0x2ac] ss:$24 sps:$4 sm:$0xff]  }
  0x42   : > { %1510 = vmatpush1.bf16.msra.mxu0 %v2847_v55  ;;  %v2915_v55 = vld [vmem:[%s3032_s18 + $0x134] ss:$24 sps:$4 sm:$0xff]  }
  0x43   : > { %1511 = vmatprep.subr.bf16.mxu0 %v2957_v24 }
  0x44   : > { %2531 = vmatpush3.bf16.msra.mxu1 %v2822_v56  ;;  %v2917_v56 = vld [vmem:[%s3032_s18 + $0x2a8] ss:$24 sps:$4 sm:$0xff]  }
  0x45   : > { %2727 = vmatprep.subr.bf16.mxu1 %v2726_v47 }
  0x46   : > { %1512 = vmatpush1.bf16.msra.mxu0 %v2856_v61  ;;  %v2924_v61 = vld [vmem:[%s3032_s18 + $0x160] ss:$24 sps:$4 sm:$0xff]  }
  0x47   : > { %1242 = vmatmul.mubr.bf16.gmra.mrb[16].mxu0 %v2828_v58  ;;  %1371 = vmatmul.mubr.bf16.vlgmr.msra.gmra.mrb[16].mxu1 %v2825_v57  ;;  %v2918_v57 = vld [vmem:[%s3032_s18 + $0x130] ss:$24 sps:$4 sm:$0xff]   ;;  %v2919_v58 = vld [vmem:[%s3032_s18 + $0x2dc] ss:$24 sps:$4 sm:$0xff]  }
  0x48   : > { %1249 = vmatprep.mubr.bf16.mxu0 %v2830_v59  ;;  %1378 = vmatprep.mubr.bf16.mxu1 %v2832_v60  ;;  %v2921_v59 = vld [vmem:[%s3032_s18 + $0x164] ss:$24 sps:$4 sm:$0xff]   ;;  %v2923_v60 = vld [vmem:[%s3032_s18 + $0x2d8] ss:$24 sps:$4 sm:$0xff]  }
  0x49   : > { %1513 = vmatprep.subr.bf16.mxu0 %v2957_v24  ;;  %2729 = vmatpush3.bf16.msra.mxu1 %v2726_v47 }
  0x4a   : > { %1514 = vmatpush1.bf16.msra.mxu0 %v2863_v63  ;;  %v2927_v63 = vld [vmem:[%s3032_s18 + $0x190] ss:$24 sps:$4 sm:$0xff]  }
  0x4b   : > { %1515 = vmatprep.subr.bf16.mxu0 %v2957_v24  ;;  %v2872_v24 = vld [vmem:[%s3032_s18 + $0x15c] ss:$24 sps:$4 sm:$0xff]  }
  0x4e   : > { %1516 = vmatpush1.bf16.msra.mxu0 %v1175_v4  ;;  %v1793_v4 = vld [vmem:[%s3616_s3 + $0x18] sm:$0xff] }
  0x4f   : > { %1250 = vmatmul.mubr.bf16.gmra.mrb[20].mxu0 %v2834_v62  ;;  %1379 = vmatmul.mubr.bf16.gmra.mrb[20].mxu1 %v2835_v0  ;;  %v2925_v62 = vld [vmem:[%s3032_s18 + $0x194] ss:$24 sps:$4 sm:$0xff]   ;;  %v2928_v0 = vld [vmem:[%s3032_s18 + $0x1c4] ss:$24 sps:$4 sm:$0xff]  }
  0x50   : > { %1257 = vmatprep.mubr.bf16.mxu0 %v2837_v1  ;;  %1386 = vmatprep.mubr.bf16.mxu1 %v2839_v2  ;;  %v2930_v1 = vld [vmem:[%s3032_s18 + $0x1c0] ss:$24 sps:$4 sm:$0xff]   ;;  %v2931_v2 = vld [vmem:[%s3032_s18 + $0x1f4] ss:$24 sps:$4 sm:$0xff]  }
  0x57   : > { %1258 = vmatmul.mubr.bf16.gmra.mrb[24].mxu0 %v2841_v5  ;;  %1387 = vmatmul.mubr.bf16.gmra.mrb[24].mxu1 %v2842_v6  ;;  %v2730_v5 = vpack.c.bf16 %v1793_v4, %v1792_v3  ;;  %v2933_v6 = vld [vmem:[%s3032_s18 + $0x1f0] ss:$24 sps:$4 sm:$0xff]   ;;  %v3288_v4 = vld [vmem:[%s3615_s2] ss:$0 sm:$0xff] }
  0x58   : > { %1265 = vmatprep.mubr.bf16.mxu0 %v2843_v7  ;;  %1394 = vmatprep.mubr.bf16.mxu1 %v2845_v8  ;;  %v2934_v7 = vld [vmem:[%s3032_s18 + $0x224] ss:$24 sps:$4 sm:$0xff]   ;;  %v2936_v8 = vld [vmem:[%s3032_s18 + $0x220] ss:$24 sps:$4 sm:$0xff]  }
  0x59   : > { %2731 = vmatprep.subr.bf16.mxu1 %v2730_v5 }
  0x5a   : > { %2733 = vmatpush3.bf16.msra.mxu1 %v2730_v5 }
  0x5f   : > { %1266 = vmatmul.mubr.bf16.gmra.mrb[28].mxu0 %v2848_v9  ;;  %1395 = vmatmul.mubr.bf16.gmra.mrb[28].mxu1 %v2849_v10  ;;  %v2937_v9 = vld [vmem:[%s3032_s18 + $0x254] ss:$24 sps:$4 sm:$0xff]   ;;  %v1794_v10 = vld [vmem:[%s3616_s3 + $0x20] sm:$0xff] }
  0x60   : > { %1273 = vmatprep.mubr.bf16.mxu0 %v2850_v11  ;;  %1402 = vmatprep.mubr.bf16.mxu1 %v2852_v12  ;;  %v1795_v11 = vld [vmem:[%s3616_s3 + $0x28] sm:$0xff] }
  0x61   : > { %v2734_v12 = vpack.c.bf16 %v1795_v11, %v1794_v10 }
  0x63   : > { %2735 = vmatprep.subr.bf16.mxu1 %v2734_v12 }
  0x64   : > { %2737 = vmatpush3.bf16.msra.mxu1 %v2734_v12 }
  0x67   : > { %1274 = vmatmul.mubr.bf16.gmra.mrb[32].mxu0 %v2854_v13  ;;  %1403 = vmatmul.mubr.bf16.gmra.mrb[32].mxu1 %v2855_v14  ;;  %v2939_v13 = vld [vmem:[%s3032_s18 + $0x250] ss:$24 sps:$4 sm:$0xff]   ;;  %v2940_v14 = vld [vmem:[%s3032_s18 + $0x284] ss:$24 sps:$4 sm:$0xff]  }
  0x68   : > { %1281 = vmatprep.mubr.bf16.mxu0 %v2857_v15  ;;  %1410 = vmatprep.mubr.bf16.mxu1 %v2859_v16  ;;  %v2942_v15 = vld [vmem:[%s3032_s18 + $0x280] ss:$24 sps:$4 sm:$0xff]   ;;  %v2943_v16 = vld [vmem:[%s3032_s18 + $0x2b4] ss:$24 sps:$4 sm:$0xff]  }
  0x6f   : > { %1282 = vmatmul.mubr.bf16.gmra.mrb[36].mxu0 %v2861_v17  ;;  %1411 = vmatmul.mubr.bf16.gmra.mrb[36].mxu1 %v2862_v18  ;;  %v2945_v17 = vld [vmem:[%s3032_s18 + $0x2b0] ss:$24 sps:$4 sm:$0xff]   ;;  %v2946_v18 = vld [vmem:[%s3032_s18 + $0x2e4] ss:$24 sps:$4 sm:$0xff]  }
  0x70   : > { %1289 = vmatprep.mubr.bf16.mxu0 %v2864_v19  ;;  %1418 = vmatprep.mubr.bf16.mxu1 %v2866_v20 }
  0x77   : > { %1290 = vmatmul.mubr.bf16.gmra.mrb[40].mxu0 %v2868_v21  ;;  %1419 = vmatmul.mubr.bf16.gmra.mrb[40].mxu1 %v2869_v22  ;;  %v2948_v22 = vld [vmem:[%s3032_s18 + $0x2e0] ss:$24 sps:$4 sm:$0xff]  }
  0x78   : > { %1297 = vmatprep.mubr.bf16.mxu0 %v2870_v23  ;;  %1426 = vmatprep.mubr.bf16.mxu1 %v2872_v24 }
  0x7f   : > { %1298 = vmatmul.mubr.bf16.gmra.mrb[44].mxu0 %v2875_v25  ;;  %1427 = vmatmul.mubr.bf16.gmra.mrb[44].mxu1 %v2876_v26 }
  0x80   : > { %1434 = vmatprep.mubr.bf16.mxu1 %v2877_v27  ;;  %2354 = vmatprep.mubr.msk.bf16.mxu0 %vm1124_vm1, %v2881_v28 }
  0x87   : > { %1435 = vmatmul.mubr.bf16.gmra.mrb[48].mxu1 %v2882_v30  ;;  %1532 = vmatmul.mubr.bf16.vlgmr.msra.gmra.mrb[48].mxu0 %v2879_v29 }
  0x88   : > { %1442 = vmatprep.mubr.bf16.mxu1 %v2883_v31  ;;  %2355 = vmatprep.mubr.msk.bf16.mxu0 %vm1124_vm1, %v2885_v32 }
  0x8f   : > { %1443 = vmatmul.mubr.bf16.gmra.mrb[52].mxu1 %v2887_v33  ;;  %1540 = vmatmul.mubr.bf16.gmra.mrb[52].mxu0 %v2888_v34 }
  0x90   : > { %1450 = vmatprep.mubr.bf16.mxu1 %v2889_v35  ;;  %2356 = vmatprep.mubr.msk.bf16.mxu0 %vm1124_vm1, %v2891_v36 }
  0x97   : > { %1451 = vmatmul.mubr.bf16.gmra.mrb[56].mxu1 %v2893_v37  ;;  %1548 = vmatmul.mubr.bf16.gmra.mrb[56].mxu0 %v2894_v38 }
  0x98   : > { %1458 = vmatprep.mubr.bf16.mxu1 %v2895_v39  ;;  %2357 = vmatprep.mubr.msk.bf16.mxu0 %vm1124_vm1, %v2897_v40 }
  0x9f   : > { %1459 = vmatmul.mubr.bf16.gmra.mrb[60].mxu1 %v2899_v41  ;;  %1556 = vmatmul.mubr.bf16.gmra.mrb[60].mxu0 %v2900_v42 }
  0xa0   : > { %1466 = vmatprep.mubr.bf16.mxu1 %v2901_v43  ;;  %2358 = vmatprep.mubr.msk.bf16.mxu0 %vm1124_vm1, %v2903_v44 }
  0xa7   : > { %1467 = vmatmul.mubr.bf16.gmra.mrb[64].mxu1 %v2905_v48  ;;  %1564 = vmatmul.mubr.bf16.gmra.mrb[64].mxu0 %v2906_v49 }
  0xa8   : > { %1474 = vmatprep.mubr.bf16.mxu1 %v2907_v50  ;;  %2359 = vmatprep.mubr.msk.bf16.mxu0 %vm1124_vm1, %v2909_v51 }
  0xaf   : > { %1475 = vmatmul.mubr.bf16.gmra.mrb[68].mxu1 %v2911_v52  ;;  %1572 = vmatmul.mubr.bf16.gmra.mrb[68].mxu0 %v2912_v53 }
  0xb0   : > { %1482 = vmatprep.mubr.bf16.mxu1 %v2913_v54  ;;  %2360 = vmatprep.mubr.msk.bf16.mxu0 %vm1124_vm1, %v2915_v55 }
  0xb7   : > { %1483 = vmatmul.mubr.bf16.gmra.mrb[72].mxu1 %v2917_v56  ;;  %1580 = vmatmul.mubr.bf16.gmra.mrb[72].mxu0 %v2918_v57 }
  0xb8   : > { %1490 = vmatprep.mubr.bf16.mxu1 %v2919_v58  ;;  %2361 = vmatprep.mubr.msk.bf16.mxu0 %vm1124_vm1, %v2921_v59 }
  0xbf   : > { %1491 = vmatmul.mubr.bf16.gmra.mrb[76].mxu1 %v2923_v60  ;;  %1588 = vmatmul.mubr.bf16.gmra.mrb[76].mxu0 %v2924_v61 }
  0xc0   : > { %2362 = vmatprep.mubr.msk.bf16.mxu0 %vm1124_vm1, %v2925_v62 }
  0xc7   : > { %1596 = vmatmul.mubr.bf16.gmra.mrb[80].mxu0 %v2927_v63 }
  0xc8   : > { %2363 = vmatprep.mubr.msk.bf16.mxu0 %vm1124_vm1, %v2928_v0 }
  0xcf   : > { %1604 = vmatmul.mubr.bf16.gmra.mrb[84].mxu0 %v2930_v1 }
  0xd0   : > { %2364 = vmatprep.mubr.msk.bf16.mxu0 %vm1124_vm1, %v2931_v2 }
  0xd7   : > { %1612 = vmatmul.mubr.bf16.gmra.mrb[88].mxu0 %v2933_v6 }
  0xd8   : > { %2365 = vmatprep.mubr.msk.bf16.mxu0 %vm1124_vm1, %v2934_v7 }
  0xdf   : > { %1620 = vmatmul.mubr.bf16.gmra.mrb[92].mxu0 %v2936_v8 }
  0xe0   : > { %2366 = vmatprep.mubr.msk.bf16.mxu0 %vm1124_vm1, %v2937_v9 }
  0xe7   : > { %1628 = vmatmul.mubr.bf16.gmra.mrb[96].mxu0 %v2939_v13 }
  0xe8   : > { %2367 = vmatprep.mubr.msk.bf16.mxu0 %vm1124_vm1, %v2940_v14 }
  0xef   : > { %1636 = vmatmul.mubr.bf16.gmra.mrb[100].mxu0 %v2942_v15 }
  0xf0   : > { %2368 = vmatprep.mubr.msk.bf16.mxu0 %vm1124_vm1, %v2943_v16 }
  0xf7   : > { %1644 = vmatmul.mubr.bf16.gmra.mrb[104].mxu0 %v2945_v17 }
  0xf8   : > { %2369 = vmatprep.mubr.msk.bf16.mxu0 %vm1124_vm1, %v2946_v18 }
  0xfa   : > { %v2420_v19 = vpop.f32.mrb[0].mxu0  ;;  %v2492_v20 = vpop.f32.mrb[0].mxu1 }
  0xfb   : > { %v2421_v21 = vpop.f32.mrb[1].mxu0  ;;  %v2493_v23 = vpop.f32.mrb[1].mxu1 }
  0xfc   : > { %v2422_v24 = vadd.f32 %v2421_v21, %v2420_v19  ;;  %v2423_v25 = vpop.f32.mrb[2].mxu0  ;;  %v3269_v26 = vadd.f32 %v2493_v23, %v2492_v20  ;;  %v2495_v27 = vpop.f32.mrb[2].mxu1 }
  0xfd   : > { %v2424_v28 = vpop.f32.mrb[3].mxu0  ;;  %v2496_v29 = vpop.f32.mrb[3].mxu1 }
  0xfe   : > { %v2425_v30 = vadd.f32 %v2424_v28, %v2423_v25  ;;  %v3271_v31 = vadd.f32 %v2496_v29, %v2495_v27  ;;  %v1212_v9 = vadd.f32 %v2422_v24, %v3288_v4 }
  0xff   : > { %1652 = vmatmul.mubr.bf16.gmra.mrb[108].mxu0 %v2948_v22 }
 0x100   : > { %v1215_v16 = vadd.f32 %v2425_v30, %v3288_v4 }
 0x102   : > { %v2426_v32 = vpop.f32.mrb[4].mxu0  ;;  %v2498_v33 = vpop.f32.mrb[4].mxu1 }
 0x103   : > { %v2427_v34 = vpop.f32.mrb[5].mxu0  ;;  %v2499_v35 = vpop.f32.mrb[5].mxu1 }
 0x104   : > { %v2428_v36 = vadd.f32 %v2427_v34, %v2426_v32  ;;  %v2429_v37 = vpop.f32.mrb[6].mxu0  ;;  %v3273_v38 = vadd.f32 %v2499_v35, %v2498_v33  ;;  %v2501_v39 = vpop.f32.mrb[6].mxu1 }
 0x105   : > { %v2430_v40 = vpop.f32.mrb[7].mxu0  ;;  %v2502_v41 = vpop.f32.mrb[7].mxu1 }
 0x106   : > { %v2431_v42 = vadd.f32 %v2430_v40, %v2429_v37  ;;  %v3275_v43 = vadd.f32 %v2502_v41, %v2501_v39  ;;  %v1220_v25 = vadd.f32 %v2428_v36, %v3288_v4 }
 0x108   : > { %v1223_v34 = vadd.f32 %v2431_v42, %v3288_v4 }
 0x10a   : > { %v2432_v44 = vpop.f32.mrb[8].mxu0  ;;  %v2504_v45 = vpop.f32.mrb[8].mxu1 }
 0x10b   : > { %v2433_v46 = vpop.f32.mrb[9].mxu0  ;;  %v2505_v47 = vpop.f32.mrb[9].mxu1 }
 0x10c   : > { %v2434_v48 = vadd.f32 %v2433_v46, %v2432_v44  ;;  %v2435_v49 = vpop.f32.mrb[10].mxu0  ;;  %v3277_v50 = vadd.f32 %v2505_v47, %v2504_v45  ;;  %v2507_v51 = vpop.f32.mrb[10].mxu1 }
 0x10d   : > { %v2436_v52 = vpop.f32.mrb[11].mxu0  ;;  %v2508_v53 = vpop.f32.mrb[11].mxu1 }
 0x10e   : > { %v2437_v54 = vadd.f32 %v2436_v52, %v2435_v49  ;;  %v3279_v55 = vadd.f32 %v2508_v53, %v2507_v51  ;;  %v1228_v46 = vadd.f32 %v2434_v48, %v3288_v4 }
 0x112   : > { %v2438_v56 = vpop.f32.mrb[12].mxu0  ;;  %v2510_v57 = vpop.f32.mrb[12].mxu1 }
 0x113   : > { %v2439_v58 = vpop.f32.mrb[13].mxu0  ;;  %v2511_v59 = vpop.f32.mrb[13].mxu1 }
 0x114   : > { %v2440_v60 = vadd.f32 %v2439_v58, %v2438_v56  ;;  %v2441_v61 = vpop.f32.mrb[14].mxu0  ;;  %v3281_v62 = vadd.f32 %v2511_v59, %v2510_v57  ;;  %v2513_v63 = vpop.f32.mrb[14].mxu1  ;;  %v1231_v56 = vadd.f32 %v2437_v54, %v3288_v4 }
 0x115   : > { %v2442_v0 = vpop.f32.mrb[15].mxu0  ;;  %v2514_v1 = vpop.f32.mrb[15].mxu1 }
 0x116   : > { %v2443_v2 = vadd.f32 %v2442_v0, %v2441_v61  ;;  %v3283_v3 = vadd.f32 %v2514_v1, %v2513_v63 }
 0x11a   : > { %v2444_v5 = vpop.f32.mrb[16].mxu0  ;;  %v2532_v6 = vpop.f32.mrb[16].mxu1 }
 0x11b   : > { %v2445_v7 = vpop.f32.mrb[17].mxu0  ;;  %v2533_v8 = vpop.f32.mrb[17].mxu1 }
 0x11c   : > { %v3291_v10 = vadd.f32 %v2445_v7, %v2444_v5  ;;  %v2534_v11 = vadd.f32 %v2533_v8, %v2532_v6  ;;  %v2447_v12 = vpop.f32.mrb[18].mxu0  ;;  %v2535_v13 = vpop.f32.mrb[18].mxu1  ;;  %v1236_v5 = vadd.f32 %v2440_v60, %v3288_v4 }
 0x11d   : > { %v2448_v14 = vpop.f32.mrb[19].mxu0  ;;  %v2536_v15 = vpop.f32.mrb[19].mxu1 }
 0x11e   : > { %v3294_v17 = vadd.f32 %v2448_v14, %v2447_v12  ;;  %v2537_v18 = vadd.f32 %v2536_v15, %v2535_v13  ;;  %v3296_v19 = vadd.f32 %v2534_v11, %v1212_v9  ;;  %v1239_v12 = vadd.f32 %v2443_v2, %v3288_v4 }
 0x120   : > { %v3298_v20 = vadd.f32 %v2537_v18, %v1215_v16 }
 0x122   : > { %v2450_v21 = vpop.f32.mrb[20].mxu0  ;;  %v2538_v22 = vpop.f32.mrb[20].mxu1 }
 0x123   : > { %v2451_v23 = vpop.f32.mrb[21].mxu0  ;;  %v2539_v24 = vpop.f32.mrb[21].mxu1 }
 0x124   : > { %v3301_v27 = vadd.f32 %v2451_v23, %v2450_v21  ;;  %v2540_v28 = vadd.f32 %v2539_v24, %v2538_v22  ;;  %v2453_v29 = vpop.f32.mrb[22].mxu0  ;;  %v2541_v32 = vpop.f32.mrb[22].mxu1  ;;  %v1244_v23 = vadd.f32 %v3291_v10, %v3288_v4 }
 0x125   : > { %v2454_v33 = vpop.f32.mrb[23].mxu0  ;;  %v2542_v30 = vpop.f32.mrb[23].mxu1 }
 0x126   : > { %v3304_v35 = vadd.f32 %v2454_v33, %v2453_v29  ;;  %v2543_v37 = vadd.f32 %v2542_v30, %v2541_v32  ;;  %v3306_v39 = vadd.f32 %v2540_v28, %v1220_v25  ;;  %v1247_v33 = vadd.f32 %v3294_v17, %v3288_v4 }
 0x128   : > { %v3308_v40 = vadd.f32 %v2543_v37, %v1223_v34 }
 0x12a   : > { %v2456_v41 = vpop.f32.mrb[24].mxu0  ;;  %v2544_v44 = vpop.f32.mrb[24].mxu1 }
 0x12b   : > { %v2457_v45 = vpop.f32.mrb[25].mxu0  ;;  %v2545_v36 = vpop.f32.mrb[25].mxu1 }
 0x12c   : > { %v3311_v47 = vadd.f32 %v2457_v45, %v2456_v41  ;;  %v2546_v49 = vadd.f32 %v2545_v36, %v2544_v44  ;;  %v2459_v51 = vpop.f32.mrb[26].mxu0  ;;  %v2547_v52 = vpop.f32.mrb[26].mxu1 }
 0x12d   : > { %v2460_v53 = vpop.f32.mrb[27].mxu0  ;;  %v2548_v42 = vpop.f32.mrb[27].mxu1 }
 0x12e   : > { %v3314_v57 = vadd.f32 %v2460_v53, %v2459_v51  ;;  %v2549_v58 = vadd.f32 %v2548_v42, %v2547_v52  ;;  %v3316_v59 = vadd.f32 %v2546_v49, %v1228_v46  ;;  %v1252_v46 = vadd.f32 %v3301_v27, %v3288_v4 }
 0x130   : > { %v3318_v61 = vadd.f32 %v2549_v58, %v1231_v56  ;;  %v1255_v56 = vadd.f32 %v3304_v35, %v3288_v4 }
 0x132   : > { %v2462_v63 = vpop.f32.mrb[28].mxu0  ;;  %v2550_v0 = vpop.f32.mrb[28].mxu1 }
 0x133   : > { %v2463_v1 = vpop.f32.mrb[29].mxu0  ;;  %v2551_v48 = vpop.f32.mrb[29].mxu1 }
 0x134   : > { %v3321_v6 = vadd.f32 %v2463_v1, %v2462_v63  ;;  %v2552_v7 = vadd.f32 %v2551_v48, %v2550_v0  ;;  %v2465_v8 = vpop.f32.mrb[30].mxu0  ;;  %v2553_v9 = vpop.f32.mrb[30].mxu1 }
 0x135   : > { %v2466_v11 = vpop.f32.mrb[31].mxu0  ;;  %v2554_v54 = vpop.f32.mrb[31].mxu1 }
 0x136   : > { %v3324_v13 = vadd.f32 %v2466_v11, %v2465_v8  ;;  %v2555_v14 = vadd.f32 %v2554_v54, %v2553_v9  ;;  %v3326_v15 = vadd.f32 %v2552_v7, %v1236_v5  ;;  %v1260_v8 = vadd.f32 %v3311_v47, %v3288_v4 }
 0x138   : > { %v3328_v16 = vadd.f32 %v2555_v14, %v1239_v12 }
 0x13a   : > { %v2468_v18 = vpop.f32.mrb[32].mxu0  ;;  %v2556_v21 = vpop.f32.mrb[32].mxu1 }
 0x13b   : > { %v2469_v22 = vpop.f32.mrb[33].mxu0  ;;  %v2557_v60 = vpop.f32.mrb[33].mxu1 }
 0x13c   : > { %v3332_v24 = vadd.f32 %v2469_v22, %v2468_v18  ;;  %v2558_v25 = vadd.f32 %v2557_v60, %v2556_v21  ;;  %v2471_v28 = vpop.f32.mrb[34].mxu0  ;;  %v2559_v29 = vpop.f32.mrb[34].mxu1  ;;  %v1263_v18 = vadd.f32 %v3314_v57, %v3288_v4 }
 0x13d   : > { %v2472_v2 = vpop.f32.mrb[35].mxu0  ;;  %v2560_v32 = vpop.f32.mrb[35].mxu1 }
 0x13e   : > { %v3336_v30 = vadd.f32 %v2472_v2, %v2471_v28  ;;  %v2561_v34 = vadd.f32 %v2560_v32, %v2559_v29  ;;  %v3338_v37 = vadd.f32 %v2558_v25, %v1244_v23  ;;  %v1268_v2 = vadd.f32 %v3321_v6, %v3288_v4 }
 0x140   : > { %v3340_v41 = vadd.f32 %v2561_v34, %v1247_v33 }
 0x142   : > { %v2474_v44 = vpop.f32.mrb[36].mxu0  ;;  %v2562_v45 = vpop.f32.mrb[36].mxu1 }
 0x143   : > { %v2475_v10 = vpop.f32.mrb[37].mxu0  ;;  %v2563_v36 = vpop.f32.mrb[37].mxu1 }
 0x144   : > { %v3344_v49 = vadd.f32 %v2475_v10, %v2474_v44  ;;  %v2564_v51 = vadd.f32 %v2563_v36, %v2562_v45  ;;  %v2477_v52 = vpop.f32.mrb[38].mxu0  ;;  %v2565_v53 = vpop.f32.mrb[38].mxu1  ;;  %v1271_v10 = vadd.f32 %v3324_v13, %v3288_v4 }
 0x145   : > { %v2478_v17 = vpop.f32.mrb[39].mxu0  ;;  %v2566_v42 = vpop.f32.mrb[39].mxu1 }
 0x146   : > { %v3348_v58 = vadd.f32 %v2478_v17, %v2477_v52  ;;  %v2567_v63 = vadd.f32 %v2566_v42, %v2565_v53  ;;  %v3350_v0 = vadd.f32 %v2564_v51, %v1252_v46 }
 0x148   : > { %v3352_v1 = vadd.f32 %v2567_v63, %v1255_v56  ;;  %v1276_v63 = vadd.f32 %v3332_v24, %v3288_v4 }
 0x14a   : > { %v2480_v48 = vpop.f32.mrb[40].mxu0  ;;  %v2568_v5 = vpop.f32.mrb[40].mxu1 }
 0x14b   : > { %v2481_v27 = vpop.f32.mrb[41].mxu0  ;;  %v2569_v7 = vpop.f32.mrb[41].mxu1 }
 0x14c   : > { %v3356_v9 = vadd.f32 %v2481_v27, %v2480_v48  ;;  %v2570_v11 = vadd.f32 %v2569_v7, %v2568_v5  ;;  %v2483_v54 = vpop.f32.mrb[42].mxu0  ;;  %v2571_v12 = vpop.f32.mrb[42].mxu1  ;;  %v3381_v48 = vstv %s1660_s28 }
 0x14d   : > { %v2484_v35 = vpop.f32.mrb[43].mxu0  ;;  %v2572_v14 = vpop.f32.mrb[43].mxu1 }
 0x14e   : > { %v3360_v21 = vadd.f32 %v2484_v35, %v2483_v54  ;;  %v2573_v22 = vadd.f32 %v2572_v14, %v2571_v12  ;;  %v3362_v60 = vadd.f32 %v2570_v11, %v1260_v8  ;;  %v1279_v12 = vadd.f32 %v3336_v30, %v3288_v4 }
 0x150   : > { %v3364_v23 = vadd.f32 %v2573_v22, %v1263_v18 }
 0x152   : > { %v2486_v25 = vpop.f32.mrb[44].mxu0  ;;  %v2574_v28 = vpop.f32.mrb[44].mxu1 }
 0x153   : > { %v2487_v47 = vpop.f32.mrb[45].mxu0  ;;  %v2575_v29 = vpop.f32.mrb[45].mxu1 }
 0x154   : > { %v3368_v32 = vadd.f32 %v2487_v47, %v2486_v25  ;;  %v2576_v33 = vadd.f32 %v2575_v29, %v2574_v28  ;;  %v2489_v34 = vpop.f32.mrb[46].mxu0  ;;  %v2577_v44 = vpop.f32.mrb[46].mxu1 }
 0x155   : > { %v2490_v57 = vpop.f32.mrb[47].mxu0  ;;  %v2578_v45 = vpop.f32.mrb[47].mxu1 }
 0x156   : > { %v3372_v36 = vadd.f32 %v2490_v57, %v2489_v34  ;;  %v2579_v46 = vadd.f32 %v2578_v45, %v2577_v44  ;;  %v3374_v51 = vadd.f32 %v2576_v33, %v1268_v2  ;;  %v1284_v44 = vadd.f32 %v3344_v49, %v3288_v4 }
 0x158   : > { %v3376_v52 = vadd.f32 %v2579_v46, %v1271_v10 }
 0x15a   : > { %v2580_v53 = vpop.f32.mrb[48].mxu1  ;;  %v1533_v6 = vpop.f32.mrb[48].mxu0 }
 0x15b   : > { %v1534_v17 = vadd.f32 %v1533_v6, %v3296_v19  ;;  %v2581_v42 = vpop.f32.mrb[49].mxu1  ;;  %v1535_v56 = vpop.f32.mrb[49].mxu0 }
 0x15c   : > { %v2582_v5 = vadd.f32 %v2581_v42, %v2580_v53  ;;  %v2583_v13 = vpop.f32.mrb[50].mxu1  ;;  %v1536_v27 = vpop.f32.mrb[50].mxu0 }
 0x15d   : > { %v1693_v7 = vmin.f32 %v1534_v17, 0.0  ;;  %v1537_v8 = vadd.f32 %v1536_v27, %v3298_v20  ;;  %v2584_v11 = vpop.f32.mrb[51].mxu1  ;;  %v1538_v54 = vpop.f32.mrb[51].mxu0  ;;  %v1661_v14 = vmax.f32 %v1534_v17, 0.0 }
 0x15e   : > { %v2585_v35 = vadd.f32 %v2584_v11, %v2583_v13  ;;  %v3386_v19 = vadd.f32 %v2582_v5, %v1276_v63 }
 0x15f   : > { %v1726_v18 = vmul.f32 %v3381_v48, %v1693_v7  ;;  %v1694_v24 = vmin.f32 %v1537_v8, 0.0  ;;  %v1662_v28 = vmax.f32 %v1537_v8, 0.0 }
 0x160   : > { %v3389_v22 = vadd.f32 %v2585_v35, %v1279_v12 }
 0x161   : > { %v1758_v25 = vadd.f32 %v1726_v18, %v1661_v14  ;;  %v1727_v47 = vmul.f32 %v3381_v48, %v1694_v24  ;;  %v1292_v14 = vadd.f32 %v3356_v9, %v3288_v4 }
 0x162   : > { %v2586_v20 = vpop.f32.mrb[52].mxu1  ;;  %v1541_v29 = vpop.f32.mrb[52].mxu0 }
 0x163   : > { %v1759_v2 = vadd.f32 %v1727_v47, %v1662_v28  ;;  %v1542_v33 = vadd.f32 %v1541_v29, %v3306_v39  ;;  %v2587_v30 = vpop.f32.mrb[53].mxu1  ;;  %v1543_v34 = vpop.f32.mrb[53].mxu0  ;;  %2678 = vmatprep.mubr.msk.f32.mxu1 %vm1796_vm2, %v1758_v25  ;;  %v1287_v39 = vadd.f32 %v3348_v58, %v3288_v4 }
 0x164   : > { %v2588_v57 = vadd.f32 %v2587_v30, %v2586_v20  ;;  %v2589_v45 = vpop.f32.mrb[54].mxu1  ;;  %v1544_v10 = vpop.f32.mrb[54].mxu0 }
 0x165   : > { %v1695_v46 = vmin.f32 %v1542_v33, 0.0  ;;  %v1545_v53 = vadd.f32 %v1544_v10, %v3308_v40  ;;  %v2590_v6 = vpop.f32.mrb[55].mxu1  ;;  %v1546_v17 = vpop.f32.mrb[55].mxu0  ;;  %2679 = vmatmul.mubr.msk.f32.vlgmr.msra.gmra.mrb[80].mxu1 %vm1796_vm2, %v1759_v2  ;;  %v1663_v63 = vmax.f32 %v1542_v33, 0.0 }
 0x166   : > { %v2591_v42 = vadd.f32 %v2590_v6, %v2589_v45  ;;  %v3400_v56 = vadd.f32 %v2588_v57, %v1284_v44 }
 0x167   : > { %v1728_v5 = vmul.f32 %v3381_v48, %v1695_v46  ;;  %v1696_v49 = vmin.f32 %v1545_v53, 0.0  ;;  %v1664_v7 = vmax.f32 %v1545_v53, 0.0 }
 0x168   : > { %v3403_v13 = vadd.f32 %v2591_v42, %v1287_v39  ;;  %v1300_v39 = vadd.f32 %v3368_v32, %v3288_v4 }
 0x169   : > { %v1760_v27 = vadd.f32 %v1728_v5, %v1663_v63  ;;  %v1729_v40 = vmul.f32 %v3381_v48, %v1696_v49 }
 0x16a   : > { %v2592_v8 = vpop.f32.mrb[56].mxu1  ;;  %v1549_v11 = vpop.f32.mrb[56].mxu0 }
 0x16b   : > { %v1761_v54 = vadd.f32 %v1729_v40, %v1664_v7  ;;  %v1550_v12 = vadd.f32 %v1549_v11, %v3316_v59  ;;  %v2593_v35 = vpop.f32.mrb[57].mxu1  ;;  %v1551_v58 = vpop.f32.mrb[57].mxu0  ;;  %2681 = vmatprep.mubr.msk.f32.mxu1 %vm1796_vm2, %v1760_v27  ;;  %v1295_v59 = vadd.f32 %v3360_v21, %v3288_v4 }
 0x16c   : > { %v2594_v18 = vadd.f32 %v2593_v35, %v2592_v8  ;;  %v2595_v24 = vpop.f32.mrb[58].mxu1  ;;  %v1552_v25 = vpop.f32.mrb[58].mxu0 }
 0x16d   : > { %v1697_v28 = vmin.f32 %v1550_v12, 0.0  ;;  %v1553_v47 = vadd.f32 %v1552_v25, %v3318_v61  ;;  %v2596_v20 = vpop.f32.mrb[59].mxu1  ;;  %v1554_v29 = vpop.f32.mrb[59].mxu0  ;;  %2682 = vmatmul.mubr.msk.f32.gmra.mrb[82].mxu1 %vm1796_vm2, %v1761_v54  ;;  %v1665_v30 = vmax.f32 %v1550_v12, 0.0 }
 0x16e   : > { %v2597_v2 = vadd.f32 %v2596_v20, %v2595_v24  ;;  %v3414_v33 = vadd.f32 %v2594_v18, %v1292_v14  ;;  %v1308_v20 = vadd.f32 %v3269_v26, %v3288_v4 }
 0x16f   : > { %v1730_v34 = vmul.f32 %v3381_v48, %v1697_v28  ;;  %v1698_v9 = vmin.f32 %v1553_v47, 0.0  ;;  %v1666_v45 = vmax.f32 %v1553_v47, 0.0 }
 0x170   : > { %v3417_v44 = vadd.f32 %v2597_v2, %v1295_v59 }
 0x171   : > { %v1762_v57 = vadd.f32 %v1730_v34, %v1665_v30  ;;  %v1731_v61 = vmul.f32 %v3381_v48, %v1698_v9 }
 0x172   : > { %v2598_v10 = vpop.f32.mrb[60].mxu1  ;;  %v1557_v46 = vpop.f32.mrb[60].mxu0 }
 0x173   : > { %v1763_v53 = vadd.f32 %v1731_v61, %v1666_v45  ;;  %v1558_v6 = vadd.f32 %v1557_v46, %v3326_v15  ;;  %v2599_v17 = vpop.f32.mrb[61].mxu1  ;;  %v1559_v21 = vpop.f32.mrb[61].mxu0  ;;  %2684 = vmatprep.mubr.msk.f32.mxu1 %vm1796_vm2, %v1762_v57  ;;  %v1303_v15 = vadd.f32 %v3372_v36, %v3288_v4 }
 0x174   : > { %v2600_v42 = vadd.f32 %v2599_v17, %v2598_v10  ;;  %v2601_v63 = vpop.f32.mrb[62].mxu1  ;;  %v1560_v5 = vpop.f32.mrb[62].mxu0 }
 0x175   : > { %v1699_v49 = vmin.f32 %v1558_v6, 0.0  ;;  %v1561_v27 = vadd.f32 %v1560_v5, %v3328_v16  ;;  %v2602_v7 = vpop.f32.mrb[63].mxu1  ;;  %v1562_v40 = vpop.f32.mrb[63].mxu0  ;;  %2685 = vmatmul.mubr.msk.f32.gmra.mrb[84].mxu1 %vm1796_vm2, %v1763_v53  ;;  %v1667_v54 = vmax.f32 %v1558_v6, 0.0 }
 0x176   : > { %v2603_v8 = vadd.f32 %v2602_v7, %v2601_v63  ;;  %v3428_v11 = vadd.f32 %v2600_v42, %v1300_v39 }
 0x177   : > { %v1732_v12 = vmul.f32 %v3381_v48, %v1699_v49  ;;  %v1700_v32 = vmin.f32 %v1561_v27, 0.0  ;;  %v1668_v14 = vmax.f32 %v1561_v27, 0.0  ;;  %v1316_v49 = vadd.f32 %v3273_v38, %v3288_v4 }
 0x178   : > { %v3431_v35 = vadd.f32 %v2603_v8, %v1303_v15 }
 0x179   : > { %v1764_v58 = vadd.f32 %v1732_v12, %v1667_v54  ;;  %v1733_v16 = vmul.f32 %v3381_v48, %v1700_v32 }
 0x17a   : > { %v2604_v18 = vpop.f32.mrb[64].mxu1  ;;  %v1565_v24 = vpop.f32.mrb[64].mxu0 }
 0x17b   : > { %v1765_v25 = vadd.f32 %v1733_v16, %v1668_v14  ;;  %v1566_v28 = vadd.f32 %v1565_v24, %v3338_v37  ;;  %v2605_v47 = vpop.f32.mrb[65].mxu1  ;;  %v1567_v36 = vpop.f32.mrb[65].mxu0  ;;  %2687 = vmatprep.mubr.msk.f32.mxu1 %vm1796_vm2, %v1764_v58  ;;  %v1311_v37 = vadd.f32 %v3271_v31, %v3288_v4 }
 0x17c   : > { %v2606_v29 = vadd.f32 %v2605_v47, %v2604_v18  ;;  %v2607_v59 = vpop.f32.mrb[66].mxu1  ;;  %v1568_v2 = vpop.f32.mrb[66].mxu0 }
 0x17d   : > { %v1701_v30 = vmin.f32 %v1566_v28, 0.0  ;;  %v1569_v34 = vadd.f32 %v1568_v2, %v3340_v41  ;;  %v2608_v9 = vpop.f32.mrb[67].mxu1  ;;  %v1570_v57 = vpop.f32.mrb[67].mxu0  ;;  %2688 = vmatmul.mubr.msk.f32.gmra.mrb[86].mxu1 %vm1796_vm2, %v1765_v25  ;;  %v1669_v10 = vmax.f32 %v1566_v28, 0.0 }
 0x17e   : > { %v2609_v45 = vadd.f32 %v2608_v9, %v2607_v59  ;;  %v3442_v61 = vadd.f32 %v2606_v29, %v1308_v20  ;;  %v1324_v59 = vadd.f32 %v3277_v50, %v3288_v4 }
 0x17f   : > { %v1734_v46 = vmul.f32 %v3381_v48, %v1701_v30  ;;  %v1702_v26 = vmin.f32 %v1569_v34, 0.0  ;;  %v1670_v17 = vmax.f32 %v1569_v34, 0.0 }
 0x180   : > { %v3445_v53 = vadd.f32 %v2609_v45, %v1311_v37 }
 0x181   : > { %v1766_v6 = vadd.f32 %v1734_v46, %v1669_v10  ;;  %v1735_v41 = vmul.f32 %v3381_v48, %v1702_v26 }
 0x182   : > { %v2610_v21 = vpop.f32.mrb[68].mxu1  ;;  %v1573_v39 = vpop.f32.mrb[68].mxu0 }
 0x183   : > { %v1767_v42 = vadd.f32 %v1735_v41, %v1670_v17  ;;  %v1574_v63 = vadd.f32 %v1573_v39, %v3350_v0  ;;  %v2611_v5 = vpop.f32.mrb[69].mxu1  ;;  %v1575_v31 = vpop.f32.mrb[69].mxu0  ;;  %2690 = vmatprep.mubr.msk.f32.mxu1 %vm1796_vm2, %v1766_v6  ;;  %v1319_v0 = vadd.f32 %v3275_v43, %v3288_v4 }
 0x184   : > { %v2612_v27 = vadd.f32 %v2611_v5, %v2610_v21  ;;  %v2613_v7 = vpop.f32.mrb[70].mxu1  ;;  %v1576_v40 = vpop.f32.mrb[70].mxu0 }
 0x185   : > { %v1703_v15 = vmin.f32 %v1574_v63, 0.0  ;;  %v1577_v8 = vadd.f32 %v1576_v40, %v3352_v1  ;;  %v2614_v54 = vpop.f32.mrb[71].mxu1  ;;  %v1578_v12 = vpop.f32.mrb[71].mxu0  ;;  %2691 = vmatmul.mubr.msk.f32.gmra.mrb[88].mxu1 %vm1796_vm2, %v1767_v42  ;;  %v1671_v14 = vmax.f32 %v1574_v63, 0.0 }
 0x186   : > { %v2615_v32 = vadd.f32 %v2614_v54, %v2613_v7  ;;  %v3456_v58 = vadd.f32 %v2612_v27, %v1316_v49  ;;  %v1332_v49 = vadd.f32 %v3281_v62, %v3288_v4 }
 0x187   : > { %v1736_v16 = vmul.f32 %v3381_v48, %v1703_v15  ;;  %v1704_v38 = vmin.f32 %v1577_v8, 0.0  ;;  %v1672_v25 = vmax.f32 %v1577_v8, 0.0 }
 0x188   : > { %v3459_v18 = vadd.f32 %v2615_v32, %v1319_v0 }
 0x189   : > { %v1768_v24 = vadd.f32 %v1736_v16, %v1671_v14  ;;  %v1737_v1 = vmul.f32 %v3381_v48, %v1704_v38 }
 0x18a   : > { %v2616_v28 = vpop.f32.mrb[72].mxu1  ;;  %v1581_v47 = vpop.f32.mrb[72].mxu0 }
 0x18b   : > { %v1769_v36 = vadd.f32 %v1737_v1, %v1672_v25  ;;  %v1582_v20 = vadd.f32 %v1581_v47, %v3362_v60  ;;  %v2617_v29 = vpop.f32.mrb[73].mxu1  ;;  %v1583_v43 = vpop.f32.mrb[73].mxu0  ;;  %2693 = vmatprep.mubr.msk.f32.mxu1 %vm1796_vm2, %v1768_v24  ;;  %v1327_v60 = vadd.f32 %v3279_v55, %v3288_v4 }
 0x18c   : > { %v2618_v2 = vadd.f32 %v2617_v29, %v2616_v28  ;;  %v2619_v30 = vpop.f32.mrb[74].mxu1  ;;  %v1584_v34 = vpop.f32.mrb[74].mxu0 }
 0x18d   : > { %v1705_v9 = vmin.f32 %v1582_v20, 0.0  ;;  %v1585_v57 = vadd.f32 %v1584_v34, %v3364_v23  ;;  %v2620_v37 = vpop.f32.mrb[75].mxu1  ;;  %v1586_v45 = vpop.f32.mrb[75].mxu0  ;;  %2694 = vmatmul.mubr.msk.f32.gmra.mrb[90].mxu1 %vm1796_vm2, %v1769_v36  ;;  %v1673_v26 = vmax.f32 %v1582_v20, 0.0 }
 0x18e   : > { %v2621_v10 = vadd.f32 %v2620_v37, %v2619_v30  ;;  %v3470_v46 = vadd.f32 %v2618_v2, %v1324_v59 }
 0x18f   : > { %v1738_v6 = vmul.f32 %v3381_v48, %v1705_v9  ;;  %v1706_v50 = vmin.f32 %v1585_v57, 0.0  ;;  %v1674_v21 = vmax.f32 %v1585_v57, 0.0 }
 0x190   : > { %v3473_v17 = vadd.f32 %v2621_v10, %v1327_v60 }
 0x191   : > { %v1770_v41 = vadd.f32 %v1738_v6, %v1673_v26  ;;  %v1739_v23 = vmul.f32 %v3381_v48, %v1706_v50 }
 0x192   : > { %v2622_v39 = vpop.f32.mrb[76].mxu1  ;;  %v1589_v42 = vpop.f32.mrb[76].mxu0 }
 0x193   : > { %v1771_v63 = vadd.f32 %v1739_v23, %v1674_v21  ;;  %v1590_v5 = vadd.f32 %v1589_v42, %v3374_v51  ;;  %v2623_v31 = vpop.f32.mrb[77].mxu1  ;;  %v1591_v55 = vpop.f32.mrb[77].mxu0  ;;  %2696 = vmatprep.mubr.msk.f32.mxu1 %vm1796_vm2, %v1770_v41  ;;  %v1335_v51 = vadd.f32 %v3283_v3, %v3288_v4 }
 0x194   : > { %v2624_v27 = vadd.f32 %v2623_v31, %v2622_v39  ;;  %v2625_v7 = vpop.f32.mrb[78].mxu1  ;;  %v1592_v40 = vpop.f32.mrb[78].mxu0 }
 0x195   : > { %v1707_v15 = vmin.f32 %v1590_v5, 0.0  ;;  %v1593_v8 = vadd.f32 %v1592_v40, %v3376_v52  ;;  %v2626_v54 = vpop.f32.mrb[79].mxu1  ;;  %v1594_v12 = vpop.f32.mrb[79].mxu0  ;;  %2697 = vmatmul.mubr.msk.f32.gmra.mrb[92].mxu1 %vm1796_vm2, %v1771_v63  ;;  %v1675_v14 = vmax.f32 %v1590_v5, 0.0 }
 0x196   : > { %v2627_v0 = vadd.f32 %v2626_v54, %v2625_v7  ;;  %v3484_v32 = vadd.f32 %v2624_v27, %v1332_v49 }
 0x197   : > { %v1740_v16 = vmul.f32 %v3381_v48, %v1707_v15  ;;  %v1708_v62 = vmin.f32 %v1593_v8, 0.0  ;;  %v1676_v25 = vmax.f32 %v1593_v8, 0.0 }
 0x198   : > { %v3487_v38 = vadd.f32 %v2627_v0, %v1335_v51 }
 0x199   : > { %v1772_v24 = vadd.f32 %v1740_v16, %v1675_v14  ;;  %v1741_v52 = vmul.f32 %v3381_v48, %v1708_v62 }
 0x19a   : > { %v1597_v1 = vpop.f32.mrb[80].mxu0 }
 0x19b   : > { %v1773_v28 = vadd.f32 %v1741_v52, %v1676_v25  ;;  %v1598_v47 = vadd.f32 %v1597_v1, %v3386_v19  ;;  %v1599_v36 = vpop.f32.mrb[81].mxu0  ;;  %2699 = vmatprep.mubr.msk.f32.mxu1 %vm1796_vm2, %v1772_v24 }
 0x19c   : > { %v1600_v3 = vpop.f32.mrb[82].mxu0 }
 0x19d   : > { %v1709_v4 = vmin.f32 %v1598_v47, 0.0  ;;  %v1601_v20 = vadd.f32 %v1600_v3, %v3389_v22  ;;  %v1602_v29 = vpop.f32.mrb[83].mxu0  ;;  %2700 = vmatmul.mubr.msk.f32.gmra.mrb[94].mxu1 %vm1796_vm2, %v1773_v28  ;;  %v1677_v43 = vmax.f32 %v1598_v47, 0.0 }
 0x19f   : > { %v1742_v59 = vmul.f32 %v3381_v48, %v1709_v4  ;;  %v1710_v2 = vmin.f32 %v1601_v20, 0.0  ;;  %v1678_v34 = vmax.f32 %v1601_v20, 0.0 }
 0x1a1   : > { %v1774_v30 = vadd.f32 %v1742_v59, %v1677_v43  ;;  %v1743_v9 = vmul.f32 %v3381_v48, %v1710_v2 }
 0x1a2   : > { %v1605_v57 = vpop.f32.mrb[84].mxu0 }
 0x1a3   : > { %v1775_v19 = vadd.f32 %v1743_v9, %v1678_v34  ;;  %v1606_v37 = vadd.f32 %v1605_v57, %v3400_v56  ;;  %v1607_v45 = vpop.f32.mrb[85].mxu0  ;;  %2702 = vmatprep.mubr.msk.f32.mxu1 %vm1796_vm2, %v1774_v30 }
 0x1a4   : > { %v1608_v60 = vpop.f32.mrb[86].mxu0 }
 0x1a5   : > { %v1711_v22 = vmin.f32 %v1606_v37, 0.0  ;;  %v1609_v10 = vadd.f32 %v1608_v60, %v3403_v13  ;;  %v1610_v26 = vpop.f32.mrb[87].mxu0  ;;  %2703 = vmatmul.mubr.msk.f32.gmra.mrb[96].mxu1 %vm1796_vm2, %v1775_v19  ;;  %v1679_v6 = vmax.f32 %v1606_v37, 0.0 }
 0x1a7   : > { %v1744_v50 = vmul.f32 %v3381_v48, %v1711_v22  ;;  %v1712_v41 = vmin.f32 %v1609_v10, 0.0  ;;  %v1680_v23 = vmax.f32 %v1609_v10, 0.0 }
 0x1a9   : > { %v1776_v21 = vadd.f32 %v1744_v50, %v1679_v6  ;;  %v1745_v39 = vmul.f32 %v3381_v48, %v1712_v41 }
 0x1aa   : > { %v1613_v42 = vpop.f32.mrb[88].mxu0 }
 0x1ab   : > { %v1777_v56 = vadd.f32 %v1745_v39, %v1680_v23  ;;  %v1614_v63 = vadd.f32 %v1613_v42, %v3414_v33  ;;  %v1615_v5 = vpop.f32.mrb[89].mxu0  ;;  %2705 = vmatprep.mubr.msk.f32.mxu1 %vm1796_vm2, %v1776_v21 }
 0x1ac   : > { %v1616_v31 = vpop.f32.mrb[90].mxu0 }
 0x1ad   : > { %v1713_v13 = vmin.f32 %v1614_v63, 0.0  ;;  %v1617_v55 = vadd.f32 %v1616_v31, %v3417_v44  ;;  %v1618_v49 = vpop.f32.mrb[91].mxu0  ;;  %2706 = vmatmul.mubr.msk.f32.gmra.mrb[98].mxu1 %vm1796_vm2, %v1777_v56  ;;  %v1681_v27 = vmax.f32 %v1614_v63, 0.0 }
 0x1af   : > { %v1746_v7 = vmul.f32 %v3381_v48, %v1713_v13  ;;  %v1714_v40 = vmin.f32 %v1617_v55, 0.0  ;;  %v1682_v8 = vmax.f32 %v1617_v55, 0.0 }
 0x1b1   : > { %v1778_v15 = vadd.f32 %v1746_v7, %v1681_v27  ;;  %v1747_v54 = vmul.f32 %v3381_v48, %v1714_v40 }
 0x1b2   : > { %v1621_v12 = vpop.f32.mrb[92].mxu0 }
 0x1b3   : > { %v1779_v33 = vadd.f32 %v1747_v54, %v1682_v8  ;;  %v1622_v51 = vadd.f32 %v1621_v12, %v3428_v11  ;;  %v1623_v0 = vpop.f32.mrb[93].mxu0  ;;  %2708 = vmatprep.mubr.msk.f32.mxu1 %vm1796_vm2, %v1778_v15 }
 0x1b4   : > { %v1624_v14 = vpop.f32.mrb[94].mxu0 }
 0x1b5   : > { %v1715_v44 = vmin.f32 %v1622_v51, 0.0  ;;  %v1625_v16 = vadd.f32 %v1624_v14, %v3431_v35  ;;  %v1626_v62 = vpop.f32.mrb[95].mxu0  ;;  %2709 = vmatmul.mubr.msk.f32.gmra.mrb[100].mxu1 %vm1796_vm2, %v1779_v33  ;;  %v1683_v24 = vmax.f32 %v1622_v51, 0.0 }
 0x1b7   : > { %v1748_v25 = vmul.f32 %v3381_v48, %v1715_v44  ;;  %v1716_v52 = vmin.f32 %v1625_v16, 0.0  ;;  %v1684_v28 = vmax.f32 %v1625_v16, 0.0 }
 0x1b9   : > { %v1780_v1 = vadd.f32 %v1748_v25, %v1683_v24  ;;  %v1749_v47 = vmul.f32 %v3381_v48, %v1716_v52 }
 0x1ba   : > { %v1629_v36 = vpop.f32.mrb[96].mxu0 }
 0x1bb   : > { %v1781_v11 = vadd.f32 %v1749_v47, %v1684_v28  ;;  %v1630_v3 = vadd.f32 %v1629_v36, %v3442_v61  ;;  %v1631_v4 = vpop.f32.mrb[97].mxu0  ;;  %2711 = vmatprep.mubr.msk.f32.mxu1 %vm1796_vm2, %v1780_v1 }
 0x1bc   : > { %v1632_v20 = vpop.f32.mrb[98].mxu0 }
 0x1bd   : > { %v1717_v35 = vmin.f32 %v1630_v3, 0.0  ;;  %v1633_v29 = vadd.f32 %v1632_v20, %v3445_v53  ;;  %v1634_v43 = vpop.f32.mrb[99].mxu0  ;;  %2712 = vmatmul.mubr.msk.f32.gmra.mrb[102].mxu1 %vm1796_vm2, %v1781_v11  ;;  %v1685_v59 = vmax.f32 %v1630_v3, 0.0 }
 0x1bf   : > { %v1750_v2 = vmul.f32 %v3381_v48, %v1717_v35  ;;  %v1718_v30 = vmin.f32 %v1633_v29, 0.0  ;;  %v1686_v9 = vmax.f32 %v1633_v29, 0.0 }
 0x1c1   : > { %v1782_v34 = vadd.f32 %v1750_v2, %v1685_v59  ;;  %v1751_v57 = vmul.f32 %v3381_v48, %v1718_v30 }
 0x1c2   : > { %v1637_v19 = vpop.f32.mrb[100].mxu0 }
 0x1c3   : > { %v1783_v61 = vadd.f32 %v1751_v57, %v1686_v9  ;;  %v1638_v37 = vadd.f32 %v1637_v19, %v3456_v58  ;;  %v1639_v45 = vpop.f32.mrb[101].mxu0  ;;  %2714 = vmatprep.mubr.msk.f32.mxu1 %vm1796_vm2, %v1782_v34 }
 0x1c4   : > { %v1640_v60 = vpop.f32.mrb[102].mxu0 }
 0x1c5   : > { %v1719_v53 = vmin.f32 %v1638_v37, 0.0  ;;  %v1641_v22 = vadd.f32 %v1640_v60, %v3459_v18  ;;  %v1642_v10 = vpop.f32.mrb[103].mxu0  ;;  %2715 = vmatmul.mubr.msk.f32.gmra.mrb[104].mxu1 %vm1796_vm2, %v1783_v61  ;;  %v1687_v26 = vmax.f32 %v1638_v37, 0.0 }
 0x1c7   : > { %v1752_v6 = vmul.f32 %v3381_v48, %v1719_v53  ;;  %v1720_v50 = vmin.f32 %v1641_v22, 0.0  ;;  %v1688_v21 = vmax.f32 %v1641_v22, 0.0 }
 0x1c9   : > { %v1784_v41 = vadd.f32 %v1752_v6, %v1687_v26  ;;  %v1753_v23 = vmul.f32 %v3381_v48, %v1720_v50 }
 0x1ca   : > { %v1645_v39 = vpop.f32.mrb[104].mxu0 }
 0x1cb   : > { %v1785_v58 = vadd.f32 %v1753_v23, %v1688_v21  ;;  %v1646_v42 = vadd.f32 %v1645_v39, %v3470_v46  ;;  %v1647_v56 = vpop.f32.mrb[105].mxu0  ;;  %2717 = vmatprep.mubr.msk.f32.mxu1 %vm1796_vm2, %v1784_v41 }
 0x1cc   : > { %v1648_v63 = vpop.f32.mrb[106].mxu0 }
 0x1cd   : > { %v1721_v18 = vmin.f32 %v1646_v42, 0.0  ;;  %v1649_v5 = vadd.f32 %v1648_v63, %v3473_v17  ;;  %v1650_v31 = vpop.f32.mrb[107].mxu0  ;;  %2718 = vmatmul.mubr.msk.f32.gmra.mrb[106].mxu1 %vm1796_vm2, %v1785_v58  ;;  %v1689_v13 = vmax.f32 %v1646_v42, 0.0 }
 0x1cf   : > { %v1754_v55 = vmul.f32 %v3381_v48, %v1721_v18  ;;  %v1722_v49 = vmin.f32 %v1649_v5, 0.0  ;;  %v1690_v7 = vmax.f32 %v1649_v5, 0.0 }
 0x1d1   : > { %v1786_v27 = vadd.f32 %v1754_v55, %v1689_v13  ;;  %v1755_v40 = vmul.f32 %v3381_v48, %v1722_v49 }
 0x1d2   : > { %v1653_v15 = vpop.f32.mrb[108].mxu0 }
 0x1d3   : > { %v1787_v46 = vadd.f32 %v1755_v40, %v1690_v7  ;;  %v1654_v8 = vadd.f32 %v1653_v15, %v3484_v32  ;;  %v1655_v54 = vpop.f32.mrb[109].mxu0  ;;  %2720 = vmatprep.mubr.msk.f32.mxu1 %vm1796_vm2, %v1786_v27 }
 0x1d4   : > { %v1656_v17 = vpop.f32.mrb[110].mxu0 }
 0x1d5   : > { %v1723_v12 = vmin.f32 %v1654_v8, 0.0  ;;  %v1657_v33 = vadd.f32 %v1656_v17, %v3487_v38  ;;  %v1658_v51 = vpop.f32.mrb[111].mxu0  ;;  %2721 = vmatmul.mubr.msk.f32.gmra.mrb[108].mxu1 %vm1796_vm2, %v1787_v46  ;;  %v1691_v0 = vmax.f32 %v1654_v8, 0.0 }
 0x1d7   : > { %v1756_v14 = vmul.f32 %v3381_v48, %v1723_v12  ;;  %v1724_v44 = vmin.f32 %v1657_v33, 0.0  ;;  %v1692_v62 = vmax.f32 %v1657_v33, 0.0 }
 0x1d9   : > { %v1788_v16 = vadd.f32 %v1756_v14, %v1691_v0  ;;  %v1757_v24 = vmul.f32 %v3381_v48, %v1724_v44 }
 0x1db   : > { %v1789_v32 = vadd.f32 %v1757_v24, %v1692_v62  ;;  %2723 = vmatprep.mubr.msk.f32.mxu1 %vm1796_vm2, %v1788_v16 }
 0x1dd   : > { %2724 = vmatmul.mubr.msk.f32.gmra.mrb[110].mxu1 %vm1796_vm2, %v1789_v32 }
 0x238   : > { %v2680_v48 = vpop.f32.mrb[80].mxu1 }
 0x239   : > { %2120 = vst.msk [vmem:[%s3544_s7 + $0x8] sm:$0xff] %vm2118_vm3, %v2680_v48  ;;  %v1959_v38 = vpop.f32.mrb[81].mxu1 }
 0x23a   : > { %2119 = vst.msk [vmem:[%s3544_s7] sm:$0xff] %vm2118_vm3, %v1959_v38 }
 0x240   : > { %v2683_v25 = vpop.f32.mrb[82].mxu1 }
 0x241   : > { %2122 = vst.msk [vmem:[%s3544_s7 + $0x18] sm:$0xff] %vm2118_vm3, %v2683_v25  ;;  %v1969_v52 = vpop.f32.mrb[83].mxu1 }
 0x242   : > { %2121 = vst.msk [vmem:[%s3544_s7 + $0x10] sm:$0xff] %vm2118_vm3, %v1969_v52 }
 0x248   : > { %v2686_v1 = vpop.f32.mrb[84].mxu1 }
 0x249   : > { %2124 = vst.msk [vmem:[%s3544_s7 + $0x28] sm:$0xff] %vm2118_vm3, %v2686_v1  ;;  %v1979_v28 = vpop.f32.mrb[85].mxu1 }
 0x24a   : > { %2123 = vst.msk [vmem:[%s3544_s7 + $0x20] sm:$0xff] %vm2118_vm3, %v1979_v28 }
 0x250   : > { %v2689_v47 = vpop.f32.mrb[86].mxu1 }
 0x251   : > { %2126 = vst.msk [vmem:[%s3544_s7 + $0x38] sm:$0xff] %vm2118_vm3, %v2689_v47  ;;  %v1989_v36 = vpop.f32.mrb[87].mxu1 }
 0x252   : > { %2125 = vst.msk [vmem:[%s3544_s7 + $0x30] sm:$0xff] %vm2118_vm3, %v1989_v36 }
 0x258   : > { %v2692_v11 = vpop.f32.mrb[88].mxu1 }
 0x259   : > { %2128 = vst.msk [vmem:[%s3544_s7 + $0x48] sm:$0xff] %vm2118_vm3, %v2692_v11  ;;  %v1999_v3 = vpop.f32.mrb[89].mxu1 }
 0x25a   : > { %2127 = vst.msk [vmem:[%s3544_s7 + $0x40] sm:$0xff] %vm2118_vm3, %v1999_v3 }
 0x260   : > { %v2695_v4 = vpop.f32.mrb[90].mxu1 }
 0x261   : > { %2130 = vst.msk [vmem:[%s3544_s7 + $0x58] sm:$0xff] %vm2118_vm3, %v2695_v4  ;;  %v2009_v20 = vpop.f32.mrb[91].mxu1 }
 0x262   : > { %2129 = vst.msk [vmem:[%s3544_s7 + $0x50] sm:$0xff] %vm2118_vm3, %v2009_v20 }
 0x268   : > { %v2698_v35 = vpop.f32.mrb[92].mxu1 }
 0x269   : > { %2132 = vst.msk [vmem:[%s3544_s7 + $0x68] sm:$0xff] %vm2118_vm3, %v2698_v35  ;;  %v2019_v29 = vpop.f32.mrb[93].mxu1 }
 0x26a   : > { %2131 = vst.msk [vmem:[%s3544_s7 + $0x60] sm:$0xff] %vm2118_vm3, %v2019_v29 }
 0x270   : > { %v2701_v43 = vpop.f32.mrb[94].mxu1 }
 0x271   : > { %2134 = vst.msk [vmem:[%s3544_s7 + $0x78] sm:$0xff] %vm2118_vm3, %v2701_v43  ;;  %v2029_v59 = vpop.f32.mrb[95].mxu1 }
 0x272   : > { %2133 = vst.msk [vmem:[%s3544_s7 + $0x70] sm:$0xff] %vm2118_vm3, %v2029_v59 }
 0x278   : > { %v2704_v2 = vpop.f32.mrb[96].mxu1 }
 0x279   : > { %2136 = vst.msk [vmem:[%s3544_s7 + $0x88] sm:$0xff] %vm2118_vm3, %v2704_v2  ;;  %v2039_v30 = vpop.f32.mrb[97].mxu1 }
 0x27a   : > { %2135 = vst.msk [vmem:[%s3544_s7 + $0x80] sm:$0xff] %vm2118_vm3, %v2039_v30 }
 0x280   : > { %v2707_v34 = vpop.f32.mrb[98].mxu1 }
 0x281   : > { %2138 = vst.msk [vmem:[%s3544_s7 + $0x98] sm:$0xff] %vm2118_vm3, %v2707_v34  ;;  %v2049_v9 = vpop.f32.mrb[99].mxu1 }
 0x282   : > { %2137 = vst.msk [vmem:[%s3544_s7 + $0x90] sm:$0xff] %vm2118_vm3, %v2049_v9 }
 0x288   : > { %v2710_v57 = vpop.f32.mrb[100].mxu1 }
 0x289   : > { %2140 = vst.msk [vmem:[%s3544_s7 + $0xa8] sm:$0xff] %vm2118_vm3, %v2710_v57  ;;  %v2059_v19 = vpop.f32.mrb[101].mxu1 }
 0x28a   : > { %2139 = vst.msk [vmem:[%s3544_s7 + $0xa0] sm:$0xff] %vm2118_vm3, %v2059_v19 }
 0x290   : > { %v2713_v61 = vpop.f32.mrb[102].mxu1 }
 0x291   : > { %2142 = vst.msk [vmem:[%s3544_s7 + $0xb8] sm:$0xff] %vm2118_vm3, %v2713_v61  ;;  %v2069_v37 = vpop.f32.mrb[103].mxu1 }
 0x292   : > { %2141 = vst.msk [vmem:[%s3544_s7 + $0xb0] sm:$0xff] %vm2118_vm3, %v2069_v37 }
 0x298   : > { %v2716_v45 = vpop.f32.mrb[104].mxu1 }
 0x299   : > { %2144 = vst.msk [vmem:[%s3544_s7 + $0xc8] sm:$0xff] %vm2118_vm3, %v2716_v45  ;;  %v2079_v60 = vpop.f32.mrb[105].mxu1 }
 0x29a   : > { %2143 = vst.msk [vmem:[%s3544_s7 + $0xc0] sm:$0xff] %vm2118_vm3, %v2079_v60 }
 0x2a0   : > { %v2719_v53 = vpop.f32.mrb[106].mxu1 }
 0x2a1   : > { %2146 = vst.msk [vmem:[%s3544_s7 + $0xd8] sm:$0xff] %vm2118_vm3, %v2719_v53  ;;  %v2089_v22 = vpop.f32.mrb[107].mxu1 }
 0x2a2   : > { %2145 = vst.msk [vmem:[%s3544_s7 + $0xd0] sm:$0xff] %vm2118_vm3, %v2089_v22 }
 0x2a8   : > { %v2722_v10 = vpop.f32.mrb[108].mxu1 }
 0x2a9   : > { %2148 = vst.msk [vmem:[%s3544_s7 + $0xe8] sm:$0xff] %vm2118_vm3, %v2722_v10  ;;  %v2099_v26 = vpop.f32.mrb[109].mxu1 }
 0x2aa   : > { %2147 = vst.msk [vmem:[%s3544_s7 + $0xe0] sm:$0xff] %vm2118_vm3, %v2099_v26 }
 0x2b0   : > { %v2725_v6 = vpop.f32.mrb[110].mxu1 }
 0x2b1   : > { %2150 = vst.msk [vmem:[%s3544_s7 + $0xf8] sm:$0xff] %vm2118_vm3, %v2725_v6  ;;  %v2109_v50 = vpop.f32.mrb[111].mxu1 }
 0x2b2   : > { %2149 = vst.msk [vmem:[%s3544_s7 + $0xf0] sm:$0xff] %vm2118_vm3, %v2109_v50 }
 0x2b3 PF: > { %s16_s20 = sadd.s32 1, %s2955_s20  }
 0x2b4   : > { %p13_p4 = scmp.ge.s32.totalorder %s16_s20, 4  }
 0x2b6   :  { %15 = sbr.rel (!%p13_p4) target bundleno = 2 (0x2), region = 70 }

</bundles_post_ra>
